<compile_context>
chip_gen: v6e
topology: v6e:2x2x1
jax: 0.10.0
libtpu: 0.0.40
codegen_flags: <defaults>
</compile_context>

<pallas_src>
import functools

import jax
import jax.numpy as jnp
from jax import lax
from jax.experimental import pallas as pl
from jax.experimental.pallas import tpu as pltpu

EPS = 1e-5                      # torch.nn.LayerNorm default


# ----------------------------------------------------------------------------
# generation-aware sizing
# ----------------------------------------------------------------------------
@functools.lru_cache(maxsize=None)
def _vmem_capacity_bytes():
    try:
        return int(pltpu.get_tpu_info().vmem_capacity_bytes)
    except Exception:
        return 64 * 1024 * 1024          # conservative (v7x per-core VMEM)


def _big_vmem():
    return _vmem_capacity_bytes() >= 96 * 1024 * 1024   # v5e / v6e (128 MiB)


def _vmem_limit_bytes():
    cap = _vmem_capacity_bytes()
    return int(max(32 * 1024 * 1024,
                   min(cap - 16 * 1024 * 1024, 110 * 1024 * 1024)))


def _cparams(dims):
    return pltpu.CompilerParams(dimension_semantics=dims,
                                vmem_limit_bytes=_vmem_limit_bytes())


def _spec(shape, index_map, buffers=2):
    """BlockSpec, optionally with deeper pipelining (ignored if unsupported)."""
    if buffers > 2:
        try:
            return pl.BlockSpec(shape, index_map,
                                pipeline_mode=pl.Buffered(buffers))
        except (TypeError, AttributeError):
            pass
    return pl.BlockSpec(shape, index_map)


def _row_tile(rows, big_vmem):
    """Largest row tile that divides `rows`, prefers >=2 grid entries (v7x)."""
    cap = 1024 if big_vmem else 512
    for c in (1024, 512, 384, 256, 128):
        if c <= cap and rows % c == 0 and rows // c >= 2:
            return c
    for c in (1024, 512, 384, 256, 128):
        if c <= cap and rows % c == 0:
            return c
    return rows


def _default_ff_tile(ff_inner, big_vmem):
    cands = (1024, 512, 256, 128) if big_vmem else (512, 256, 128)
    for c in cands:
        if ff_inner % c == 0:
            return c
    return ff_inner


def _head_group(heads, dim_head):
    """Heads per attention grid step: as many as possible while the output
    block stays lane-dense (multiple of 128) and the head-group grid axis
    keeps >= 2 entries (keeps both v7x TensorCores busy even at batch 1)."""
    best = 1
    for hg in range(1, heads + 1):
        if heads % hg:
            continue
        if heads // hg < 2 and heads != 1:
            continue
        if hg == 1 or (hg * dim_head) % 128 == 0:
            best = hg
    return best


def _layernorm(x, g, b):
    mu = jnp.mean(x, axis=-1, keepdims=True)
    xc = x - mu
    var = jnp.mean(xc * xc, axis=-1, keepdims=True)
    return xc * lax.rsqrt(var + EPS) * g + b


# ----------------------------------------------------------------------------
# K12: fused pre-norm + packed QKV projection + attention, per (batch,
#      head-group).  q columns pre-scaled by dim_head^-0.5 host-side.
#      Output goes straight to the flattened "b n (h d)" layout (no glue).
# ----------------------------------------------------------------------------
def _attn_kernel(n_valid, seq_pad, hg, dh,
                 x_ref, g_ref, b_ref, wq_ref, wk_ref, wv_ref, o_ref):
    h = _layernorm(x_ref[...], g_ref[...], b_ref[...]).astype(jnp.bfloat16)
    q = jnp.dot(h, wq_ref[...],
                preferred_element_type=jnp.float32).astype(jnp.bfloat16)
    k = jnp.dot(h, wk_ref[...],
                preferred_element_type=jnp.float32).astype(jnp.bfloat16)
    v = jnp.dot(h, wv_ref[...],
                preferred_element_type=jnp.float32).astype(jnp.bfloat16)

    outs = []
    for hh in range(hg):                                  # static unroll
        sl = slice(hh * dh, (hh + 1) * dh)
        qh, kh, vh = q[:, sl], k[:, sl], v[:, sl]
        # q @ k^T, contracting k's minor dim directly (== pl.dot trans_b=True),
        # f32 accumulation for the scores.
        s = lax.dot_general(qh, kh, (((1,), (1,)), ((), ())),
                            preferred_element_type=jnp.float32)   # (Np, Np)
        if n_valid < seq_pad:                             # static key-pad mask
            col = lax.broadcasted_iota(jnp.int32, s.shape, 1)
            s = jnp.where(col < n_valid, s, -1e30)
        m = jnp.max(s, axis=-1, keepdims=True)
        p = jnp.exp(s - m)
        l = jnp.sum(p, axis=-1, keepdims=True)
        o = jnp.dot(p.astype(jnp.bfloat16), vh,
                    preferred_element_type=jnp.float32)
        # normalize AFTER the PV matmul: Np*Dh scales instead of Np*Np (EUP rcp)
        o = o * pl.reciprocal(l, approx=True)
        outs.append(o.astype(jnp.bfloat16))
    o_ref[...] = jnp.concatenate(outs, axis=-1) if hg > 1 else outs[0]


def fused_attention(x2d, ln_g, ln_b, wqkv, B, Np, heads, dim_head, n_valid):
    rows, d = x2d.shape
    inner = heads * dim_head
    hg = _head_group(heads, dim_head)
    G = heads // hg
    blk = hg * dim_head
    kern = functools.partial(_attn_kernel, n_valid, Np, hg, dim_head)
    return pl.pallas_call(
        kern,
        out_shape=jax.ShapeDtypeStruct((rows, inner), jnp.bfloat16),
        grid=(B, G),
        in_specs=[
            pl.BlockSpec((Np, d), lambda b, g: (b, 0)),          # x rows of batch b
            pl.BlockSpec((1, d), lambda b, g: (0, 0)),           # ln1 gamma
            pl.BlockSpec((1, d), lambda b, g: (0, 0)),           # ln1 beta
            pl.BlockSpec((d, blk), lambda b, g: (0, g)),         # wq cols (group g)
            pl.BlockSpec((d, blk), lambda b, g: (0, G + g)),     # wk cols
            pl.BlockSpec((d, blk), lambda b, g: (0, 2 * G + g)), # wv cols
        ],
        out_specs=pl.BlockSpec((Np, blk), lambda b, g: (b, g)),  # "b n (h d)"
        compiler_params=_cparams(("parallel", "parallel")),
    )(x2d, ln_g, ln_b, wqkv, wqkv, wqkv)


# ----------------------------------------------------------------------------
# K3: out-proj + residual + pre-norm FFN (tiled over ff_inner, accumulator in
#     VMEM scratch) + residual (+ optional fused final LayerNorm)
# ----------------------------------------------------------------------------
def _ffn_kernel(apply_final_norm,
                x_ref, a_ref, wo_ref, bo_ref, ln2g_ref, ln2b_ref,
                w1_ref, b1_ref, w2_ref, ffb2_ref, *rest):
    if apply_final_norm:
        fng_ref, fnb_ref, out_ref, xa_scr, h2_scr, acc_scr = rest
    else:
        out_ref, xa_scr, h2_scr, acc_scr = rest

    kk = pl.program_id(1)

    @pl.when(kk == 0)
    def _():
        attn_out = jnp.dot(a_ref[...], wo_ref[...],
                           preferred_element_type=jnp.float32) + bo_ref[...]
        xa = x_ref[...] + attn_out                      # residual after attn
        xa_scr[...] = xa
        h2_scr[...] = _layernorm(xa, ln2g_ref[...],
                                 ln2b_ref[...]).astype(jnp.bfloat16)
        acc_scr[...] = jnp.zeros_like(acc_scr)

    # one ff_inner tile: acc += gelu(h2 @ W1[:, k] + b1[k]) @ W2[k, :]
    z = jnp.dot(h2_scr[...], w1_ref[...],
                preferred_element_type=jnp.float32) + b1_ref[...]
    z = jax.nn.gelu(z, approximate=False).astype(jnp.bfloat16)   # exact GELU
    acc_scr[...] += jnp.dot(z, w2_ref[...], preferred_element_type=jnp.float32)

    @pl.when(kk == pl.num_programs(1) - 1)
    def _():
        y = xa_scr[...] + acc_scr[...] + ffb2_ref[...]
        if apply_final_norm:                            # TransformerWrapper.norm
            y = _layernorm(y, fng_ref[...], fnb_ref[...])
        out_ref[...] = y


def ffn_block(x2d, attn2d, lp, ff_tile, final_norm=None):
    rows, d = x2d.shape
    inner = attn2d.shape[1]
    ff_inner = lp["w1"].shape[1]
    tk = ff_tile
    n_k = ff_inner // tk
    big = _big_vmem()
    tm = _row_tile(rows, big)
    ff_buffers = 3 if big else 2          # deeper pipelining on v5e/v6e
    apply_fn = final_norm is not None

    args = [x2d, attn2d, lp["wo"], lp["bo"], lp["ln2_g"], lp["ln2_b"],
            lp["w1"], lp["b1"], lp["w2"], lp["b2"]]
    in_specs = [
        pl.BlockSpec((tm, d), lambda i, k: (i, 0)),        # x (residual)
        pl.BlockSpec((tm, inner), lambda i, k: (i, 0)),    # attn heads (b n (h d))
        pl.BlockSpec((inner, d), lambda i, k: (0, 0)),     # wo
        pl.BlockSpec((1, d), lambda i, k: (0, 0)),         # bo
        pl.BlockSpec((1, d), lambda i, k: (0, 0)),         # ln2 gamma
        pl.BlockSpec((1, d), lambda i, k: (0, 0)),         # ln2 beta
        _spec((d, tk), lambda i, k: (0, k), ff_buffers),   # w1 tile (streamed)
        pl.BlockSpec((1, tk), lambda i, k: (0, k)),        # b1 tile
        _spec((tk, d), lambda i, k: (k, 0), ff_buffers),   # w2 tile (streamed)
        pl.BlockSpec((1, d), lambda i, k: (0, 0)),         # b2
    ]
    if apply_fn:
        fng, fnb = final_norm
        args += [fng, fnb]
        in_specs += [pl.BlockSpec((1, d), lambda i, k: (0, 0)),
                     pl.BlockSpec((1, d), lambda i, k: (0, 0))]

    kern = functools.partial(_ffn_kernel, apply_fn)
    return pl.pallas_call(
        kern,
        out_shape=jax.ShapeDtypeStruct((rows, d), jnp.float32),
        grid=(rows // tm, n_k),
        in_specs=in_specs,
        out_specs=pl.BlockSpec((tm, d), lambda i, k: (i, 0)),
        scratch_shapes=[pltpu.VMEM((tm, d), jnp.float32),   # x after attention
                        pltpu.VMEM((tm, d), jnp.bfloat16),  # ln2(x) (FFN input)
                        pltpu.VMEM((tm, d), jnp.float32)],  # FFN accumulator
        compiler_params=_cparams(("parallel", "arbitrary")),
    )(*args)


# ----------------------------------------------------------------------------
# BERTEmbedder: embeddings (glue gather in JAX) + Pallas transformer stack.
# ----------------------------------------------------------------------------
class BERTEmbedderPallas:
    def __init__(self, n_embed, n_layer, vocab_size=30522, max_seq_len=77,
                 heads=8, dim_head=64, ff_mult=4, ff_tile=None, key=None):
        if key is None:
            key = jax.random.PRNGKey(0)
        assert n_layer >= 1
        self.dim = n_embed
        self.depth = n_layer
        self.heads = heads
        self.dim_head = dim_head
        self.max_seq_len = max_seq_len
        inner = heads * dim_head
        ff_inner = ff_mult * n_embed
        self.ff_tile = (ff_tile if ff_tile is not None
                        else _default_ff_tile(ff_inner, _big_vmem()))
        assert ff_inner % self.ff_tile == 0
        scale = dim_head ** -0.5

        def nrm(k, shape, std=0.02):
            return (std * jax.random.normal(k, shape)).astype(jnp.float32)

        keys = jax.random.split(key, 2 + 6 * n_layer)
        ki = iter(keys)
        # nn.Embedding weights (init_() in TransformerWrapper uses std=0.02)
        self.tok_emb = nrm(next(ki), (vocab_size, n_embed))
        self.pos_emb = nrm(next(ki), (max_seq_len, n_embed))

        self.layers = []
        for _ in range(n_layer):
            wq = nrm(next(ki), (n_embed, inner))
            wk = nrm(next(ki), (n_embed, inner))
            wv = nrm(next(ki), (n_embed, inner))
            lp = {
                "ln1_g": jnp.ones((1, n_embed), jnp.float32),
                "ln1_b": jnp.zeros((1, n_embed), jnp.float32),
                # packed QKV, softmax scale folded into the q columns (bf16)
                "wqkv": jnp.concatenate([wq * scale, wk, wv],
                                        axis=1).astype(jnp.bfloat16),
                "wo": nrm(next(ki), (inner, n_embed)).astype(jnp.bfloat16),
                "bo": jnp.zeros((1, n_embed), jnp.float32),
                "ln2_g": jnp.ones((1, n_embed), jnp.float32),
                "ln2_b": jnp.zeros((1, n_embed), jnp.float32),
                "w1": nrm(next(ki), (n_embed, ff_inner)).astype(jnp.bfloat16),
                "b1": jnp.zeros((1, ff_inner), jnp.float32),
                "w2": nrm(next(ki), (ff_inner, n_embed)).astype(jnp.bfloat16),
                "b2": jnp.zeros((1, n_embed), jnp.float32),
            }
            self.layers.append(lp)

        # TransformerWrapper.norm (fused into the last layer's kernel)
        self.norm_g = jnp.ones((1, n_embed), jnp.float32)
        self.norm_b = jnp.zeros((1, n_embed), jnp.float32)

    def __call__(self, tokens):
        # tokens: (B, N) int32  (already tokenized; see TODO above)
        B, N = tokens.shape
        assert N <= self.max_seq_len
        D = self.dim
        Np = ((N + 127) // 128) * 128          # lane/sublane-dense sequence

        # token embedding + absolute positional embedding (gather = XLA glue);
        # emb_dropout p=0.0 -> identity; project_emb is nn.Identity.
        x = self.tok_emb[tokens] + self.pos_emb[:N][None, :, :]
        x = jnp.pad(x, ((0, 0), (0, Np - N), (0, 0)))       # pad rows (masked)
        x2d = x.reshape(B * Np, D)                          # f32 residual stream

        for li, lp in enumerate(self.layers):
            # K12: fused pre-norm + packed QKV + masked attention per
            #      (batch, head-group); output already in "b n (h d)" layout.
            attn2d = fused_attention(x2d, lp["ln1_g"], lp["ln1_b"], lp["wqkv"],
                                     B, Np, self.heads, self.dim_head,
                                     n_valid=N)

            # K3: out-proj + residuals + tiled FFN (+ final norm on last layer)
            fn = (self.norm_g, self.norm_b) if li == self.depth - 1 else None
            x2d = ffn_block(x2d, attn2d, lp, self.ff_tile, final_norm=fn)

        # return_embeddings=True; drop the padded positions
        return x2d.reshape(B, Np, D)[:, :N, :]


if __name__ == "__main__":
    key = jax.random.PRNGKey(0)
    k_tok, k_model = jax.random.split(key)

    B = 2
    n_embed = 64
    n_layer = 2
    vocab_size = 1000
    max_seq_len = 77          # pads to 128 -> exercises the key-padding mask

    model = BERTEmbedderPallas(n_embed=n_embed, n_layer=n_layer,
                               vocab_size=vocab_size, max_seq_len=max_seq_len,
                               ff_tile=128,   # forces 2 FFN k-tiles at this size
                               key=k_model)

    tokens = jax.random.randint(k_tok, (B, max_seq_len), 0, vocab_size,
                                dtype=jnp.int32)

    z = model(tokens)
    jax.block_until_ready(z)
    assert z.shape == (B, max_seq_len, n_embed) and z.dtype == jnp.float32
    assert bool(jnp.all(jnp.isfinite(z)))
    print("KERNEL_OK")
</pallas_src>

<mosaic_0001>
module attributes {stable_mosaic.version = 11 : i64} {
  func.func @_attn_kernel(%arg0: i32, %arg1: i32, %arg2: memref<128x64xf32, #tpu.memory_space<vmem>>, %arg3: memref<1x64xf32, #tpu.memory_space<vmem>>, %arg4: memref<1x64xf32, #tpu.memory_space<vmem>>, %arg5: memref<64x256xbf16, #tpu.memory_space<vmem>>, %arg6: memref<64x256xbf16, #tpu.memory_space<vmem>>, %arg7: memref<64x256xbf16, #tpu.memory_space<vmem>>, %arg8: memref<128x256xbf16, #tpu.memory_space<vmem>>) attributes {dimension_semantics = [#tpu.dimension_semantics<parallel>, #tpu.dimension_semantics<parallel>], iteration_bounds = array<i64: 2, 2>, scalar_prefetch = 0 : i64, scratch_operands = 0 : i64, tpu.core_type = #tpu.core_type<tc>, window_params = [{transform_indices = @transform_0, window_bounds = array<i64: 128, 64>}, {pipeline_mode = #tpu.pipeline_mode<synchronous>, transform_indices = @transform_1, window_bounds = array<i64: 1, 64>}, {pipeline_mode = #tpu.pipeline_mode<synchronous>, transform_indices = @transform_2, window_bounds = array<i64: 1, 64>}, {transform_indices = @transform_3, window_bounds = array<i64: 64, 256>}, {transform_indices = @transform_4, window_bounds = array<i64: 64, 256>}, {transform_indices = @transform_5, window_bounds = array<i64: 64, 256>}, {transform_indices = @transform_6, window_bounds = array<i64: 128, 256>}]} {
    %c0 = arith.constant 0 : index
    %c0_0 = arith.constant 0 : index
    %0 = vector.load %arg2[%c0, %c0_0] : memref<128x64xf32, #tpu.memory_space<vmem>>, vector<128x64xf32>
    %c0_1 = arith.constant 0 : index
    %c0_2 = arith.constant 0 : index
    %1 = vector.load %arg3[%c0_1, %c0_2] : memref<1x64xf32, #tpu.memory_space<vmem>>, vector<1x64xf32>
    %c0_3 = arith.constant 0 : index
    %c0_4 = arith.constant 0 : index
    %2 = vector.load %arg4[%c0_3, %c0_4] : memref<1x64xf32, #tpu.memory_space<vmem>>, vector<1x64xf32>
    %cst = arith.constant dense<0.000000e+00> : vector<128xf32>
    %3 = vector.multi_reduction <add>, %0, %cst [1] : vector<128x64xf32> to vector<128xf32>
    %4 = vector.shape_cast %3 : vector<128xf32> to vector<128x1xf32>
    %cst_5 = arith.constant 6.400000e+01 : f32
    %5 = vector.broadcast %cst_5 : f32 to vector<128x1xf32>
    %6 = arith.divf %4, %5 : vector<128x1xf32>
    %7 = vector.broadcast %6 : vector<128x1xf32> to vector<128x64xf32>
    %8 = arith.subf %0, %7 : vector<128x64xf32>
    %9 = arith.mulf %8, %8 : vector<128x64xf32>
    %cst_6 = arith.constant dense<0.000000e+00> : vector<128xf32>
    %10 = vector.multi_reduction <add>, %9, %cst_6 [1] : vector<128x64xf32> to vector<128xf32>
    %11 = vector.shape_cast %10 : vector<128xf32> to vector<128x1xf32>
    %cst_7 = arith.constant 6.400000e+01 : f32
    %12 = vector.broadcast %cst_7 : f32 to vector<128x1xf32>
    %13 = arith.divf %11, %12 : vector<128x1xf32>
    %cst_8 = arith.constant 9.99999974E-6 : f32
    %14 = vector.broadcast %cst_8 : f32 to vector<128x1xf32>
    %15 = arith.addf %13, %14 : vector<128x1xf32>
    %16 = math.rsqrt %15 : vector<128x1xf32>
    %17 = vector.broadcast %16 : vector<128x1xf32> to vector<128x64xf32>
    %18 = arith.mulf %8, %17 : vector<128x64xf32>
    %19 = vector.broadcast %1 : vector<1x64xf32> to vector<128x64xf32>
    %20 = arith.mulf %18, %19 : vector<128x64xf32>
    %21 = vector.broadcast %2 : vector<1x64xf32> to vector<128x64xf32>
    %22 = arith.addf %20, %21 : vector<128x64xf32>
    %23 = arith.truncf %22 : vector<128x64xf32> to vector<128x64xbf16>
    %c0_9 = arith.constant 0 : index
    %c0_10 = arith.constant 0 : index
    %24 = vector.load %arg5[%c0_9, %c0_10] : memref<64x256xbf16, #tpu.memory_space<vmem>>, vector<64x256xbf16>
    %cst_11 = arith.constant dense<0.000000e+00> : vector<128x256xf32>
    %25 = tpu.matmul %23, %24, %cst_11 {dimension_numbers = #tpu.dot_dimension_numbers<[1], [0], [0], [1], [0, 0, 1, 1], [], []>} : vector<128x64xbf16>, vector<64x256xbf16>, vector<128x256xf32> -> vector<128x256xf32>
    %26 = arith.truncf %25 : vector<128x256xf32> to vector<128x256xbf16>
    %c0_12 = arith.constant 0 : index
    %c0_13 = arith.constant 0 : index
    %27 = vector.load %arg6[%c0_12, %c0_13] : memref<64x256xbf16, #tpu.memory_space<vmem>>, vector<64x256xbf16>
    %cst_14 = arith.constant dense<0.000000e+00> : vector<128x256xf32>
    %28 = tpu.matmul %23, %27, %cst_14 {dimension_numbers = #tpu.dot_dimension_numbers<[1], [0], [0], [1], [0, 0, 1, 1], [], []>} : vector<128x64xbf16>, vector<64x256xbf16>, vector<128x256xf32> -> vector<128x256xf32>
    %29 = arith.truncf %28 : vector<128x256xf32> to vector<128x256xbf16>
    %c0_15 = arith.constant 0 : index
    %c0_16 = arith.constant 0 : index
    %30 = vector.load %arg7[%c0_15, %c0_16] : memref<64x256xbf16, #tpu.memory_space<vmem>>, vector<64x256xbf16>
    %cst_17 = arith.constant dense<0.000000e+00> : vector<128x256xf32>
    %31 = tpu.matmul %23, %30, %cst_17 {dimension_numbers = #tpu.dot_dimension_numbers<[1], [0], [0], [1], [0, 0, 1, 1], [], []>} : vector<128x64xbf16>, vector<64x256xbf16>, vector<128x256xf32> -> vector<128x256xf32>
    %32 = arith.truncf %31 : vector<128x256xf32> to vector<128x256xbf16>
    %33 = vector.extract_strided_slice %26 {offsets = [0, 0], sizes = [128, 64], strides = [1, 1]} : vector<128x256xbf16> to vector<128x64xbf16>
    %34 = vector.extract_strided_slice %29 {offsets = [0, 0], sizes = [128, 64], strides = [1, 1]} : vector<128x256xbf16> to vector<128x64xbf16>
    %35 = vector.extract_strided_slice %32 {offsets = [0, 0], sizes = [128, 64], strides = [1, 1]} : vector<128x256xbf16> to vector<128x64xbf16>
    %cst_18 = arith.constant dense<0.000000e+00> : vector<128x128xf32>
    %36 = tpu.matmul %33, %34, %cst_18 {dimension_numbers = #tpu.dot_dimension_numbers<[1], [1], [0], [0], [0, 0, 1, 0], [], []>} : vector<128x64xbf16>, vector<128x64xbf16>, vector<128x128xf32> -> vector<128x128xf32>
    %37 = tpu.iota {dimensions = array<i32: 1>} : vector<128x128xi32>
    %c77_i32 = arith.constant 77 : i32
    %38 = vector.broadcast %c77_i32 : i32 to vector<128x128xi32>
    %39 = arith.cmpi slt, %37, %38 : vector<128x128xi32>
    %cst_19 = arith.constant -1.000000e+30 : f32
    %40 = vector.broadcast %cst_19 : f32 to vector<128x128xf32>
    %41 = arith.select %39, %36, %40 : vector<128x128xi1>, vector<128x128xf32>
    %cst_20 = arith.constant dense<0xFF800000> : vector<128xf32>
    %42 = vector.multi_reduction <maximumf>, %41, %cst_20 [1] : vector<128x128xf32> to vector<128xf32>
    %43 = vector.shape_cast %42 : vector<128xf32> to vector<128x1xf32>
    %44 = vector.broadcast %43 : vector<128x1xf32> to vector<128x128xf32>
    %45 = arith.subf %41, %44 : vector<128x128xf32>
    %46 = math.exp %45 : vector<128x128xf32>
    %cst_21 = arith.constant dense<0.000000e+00> : vector<128xf32>
    %47 = vector.multi_reduction <add>, %46, %cst_21 [1] : vector<128x128xf32> to vector<128xf32>
    %48 = vector.shape_cast %47 : vector<128xf32> to vector<128x1xf32>
    %49 = arith.truncf %46 : vector<128x128xf32> to vector<128x128xbf16>
    %cst_22 = arith.constant dense<0.000000e+00> : vector<128x64xf32>
    %50 = tpu.matmul %49, %35, %cst_22 {dimension_numbers = #tpu.dot_dimension_numbers<[1], [0], [0], [1], [0, 0, 1, 1], [], []>} : vector<128x128xbf16>, vector<128x64xbf16>, vector<128x64xf32> -> vector<128x64xf32>
    %51 = tpu.reciprocal %48 {approx = true} : vector<128x1xf32> -> vector<128x1xf32>
    %52 = vector.broadcast %51 : vector<128x1xf32> to vector<128x64xf32>
    %53 = arith.mulf %50, %52 : vector<128x64xf32>
    %54 = arith.truncf %53 : vector<128x64xf32> to vector<128x64xbf16>
    %55 = vector.extract_strided_slice %26 {offsets = [0, 64], sizes = [128, 64], strides = [1, 1]} : vector<128x256xbf16> to vector<128x64xbf16>
    %56 = vector.extract_strided_slice %29 {offsets = [0, 64], sizes = [128, 64], strides = [1, 1]} : vector<128x256xbf16> to vector<128x64xbf16>
    %57 = vector.extract_strided_slice %32 {offsets = [0, 64], sizes = [128, 64], strides = [1, 1]} : vector<128x256xbf16> to vector<128x64xbf16>
    %cst_23 = arith.constant dense<0.000000e+00> : vector<128x128xf32>
    %58 = tpu.matmul %55, %56, %cst_23 {dimension_numbers = #tpu.dot_dimension_numbers<[1], [1], [0], [0], [0, 0, 1, 0], [], []>} : vector<128x64xbf16>, vector<128x64xbf16>, vector<128x128xf32> -> vector<128x128xf32>
    %59 = tpu.iota {dimensions = array<i32: 1>} : vector<128x128xi32>
    %c77_i32_24 = arith.constant 77 : i32
    %60 = vector.broadcast %c77_i32_24 : i32 to vector<128x128xi32>
    %61 = arith.cmpi slt, %59, %60 : vector<128x128xi32>
    %cst_25 = arith.constant -1.000000e+30 : f32
    %62 = vector.broadcast %cst_25 : f32 to vector<128x128xf32>
    %63 = arith.select %61, %58, %62 : vector<128x128xi1>, vector<128x128xf32>
    %cst_26 = arith.constant dense<0xFF800000> : vector<128xf32>
    %64 = vector.multi_reduction <maximumf>, %63, %cst_26 [1] : vector<128x128xf32> to vector<128xf32>
    %65 = vector.shape_cast %64 : vector<128xf32> to vector<128x1xf32>
    %66 = vector.broadcast %65 : vector<128x1xf32> to vector<128x128xf32>
    %67 = arith.subf %63, %66 : vector<128x128xf32>
    %68 = math.exp %67 : vector<128x128xf32>
    %cst_27 = arith.constant dense<0.000000e+00> : vector<128xf32>
    %69 = vector.multi_reduction <add>, %68, %cst_27 [1] : vector<128x128xf32> to vector<128xf32>
    %70 = vector.shape_cast %69 : vector<128xf32> to vector<128x1xf32>
    %71 = arith.truncf %68 : vector<128x128xf32> to vector<128x128xbf16>
    %cst_28 = arith.constant dense<0.000000e+00> : vector<128x64xf32>
    %72 = tpu.matmul %71, %57, %cst_28 {dimension_numbers = #tpu.dot_dimension_numbers<[1], [0], [0], [1], [0, 0, 1, 1], [], []>} : vector<128x128xbf16>, vector<128x64xbf16>, vector<128x64xf32> -> vector<128x64xf32>
    %73 = tpu.reciprocal %70 {approx = true} : vector<128x1xf32> -> vector<128x1xf32>
    %74 = vector.broadcast %73 : vector<128x1xf32> to vector<128x64xf32>
    %75 = arith.mulf %72, %74 : vector<128x64xf32>
    %76 = arith.truncf %75 : vector<128x64xf32> to vector<128x64xbf16>
    %77 = vector.extract_strided_slice %26 {offsets = [0, 128], sizes = [128, 64], strides = [1, 1]} : vector<128x256xbf16> to vector<128x64xbf16>
    %78 = vector.extract_strided_slice %29 {offsets = [0, 128], sizes = [128, 64], strides = [1, 1]} : vector<128x256xbf16> to vector<128x64xbf16>
    %79 = vector.extract_strided_slice %32 {offsets = [0, 128], sizes = [128, 64], strides = [1, 1]} : vector<128x256xbf16> to vector<128x64xbf16>
    %cst_29 = arith.constant dense<0.000000e+00> : vector<128x128xf32>
    %80 = tpu.matmul %77, %78, %cst_29 {dimension_numbers = #tpu.dot_dimension_numbers<[1], [1], [0], [0], [0, 0, 1, 0], [], []>} : vector<128x64xbf16>, vector<128x64xbf16>, vector<128x128xf32> -> vector<128x128xf32>
    %81 = tpu.iota {dimensions = array<i32: 1>} : vector<128x128xi32>
    %c77_i32_30 = arith.constant 77 : i32
    %82 = vector.broadcast %c77_i32_30 : i32 to vector<128x128xi32>
    %83 = arith.cmpi slt, %81, %82 : vector<128x128xi32>
    %cst_31 = arith.constant -1.000000e+30 : f32
    %84 = vector.broadcast %cst_31 : f32 to vector<128x128xf32>
    %85 = arith.select %83, %80, %84 : vector<128x128xi1>, vector<128x128xf32>
    %cst_32 = arith.constant dense<0xFF800000> : vector<128xf32>
    %86 = vector.multi_reduction <maximumf>, %85, %cst_32 [1] : vector<128x128xf32> to vector<128xf32>
    %87 = vector.shape_cast %86 : vector<128xf32> to vector<128x1xf32>
    %88 = vector.broadcast %87 : vector<128x1xf32> to vector<128x128xf32>
    %89 = arith.subf %85, %88 : vector<128x128xf32>
    %90 = math.exp %89 : vector<128x128xf32>
    %cst_33 = arith.constant dense<0.000000e+00> : vector<128xf32>
    %91 = vector.multi_reduction <add>, %90, %cst_33 [1] : vector<128x128xf32> to vector<128xf32>
    %92 = vector.shape_cast %91 : vector<128xf32> to vector<128x1xf32>
    %93 = arith.truncf %90 : vector<128x128xf32> to vector<128x128xbf16>
    %cst_34 = arith.constant dense<0.000000e+00> : vector<128x64xf32>
    %94 = tpu.matmul %93, %79, %cst_34 {dimension_numbers = #tpu.dot_dimension_numbers<[1], [0], [0], [1], [0, 0, 1, 1], [], []>} : vector<128x128xbf16>, vector<128x64xbf16>, vector<128x64xf32> -> vector<128x64xf32>
    %95 = tpu.reciprocal %92 {approx = true} : vector<128x1xf32> -> vector<128x1xf32>
    %96 = vector.broadcast %95 : vector<128x1xf32> to vector<128x64xf32>
    %97 = arith.mulf %94, %96 : vector<128x64xf32>
    %98 = arith.truncf %97 : vector<128x64xf32> to vector<128x64xbf16>
    %99 = vector.extract_strided_slice %26 {offsets = [0, 192], sizes = [128, 64], strides = [1, 1]} : vector<128x256xbf16> to vector<128x64xbf16>
    %100 = vector.extract_strided_slice %29 {offsets = [0, 192], sizes = [128, 64], strides = [1, 1]} : vector<128x256xbf16> to vector<128x64xbf16>
    %101 = vector.extract_strided_slice %32 {offsets = [0, 192], sizes = [128, 64], strides = [1, 1]} : vector<128x256xbf16> to vector<128x64xbf16>
    %cst_35 = arith.constant dense<0.000000e+00> : vector<128x128xf32>
    %102 = tpu.matmul %99, %100, %cst_35 {dimension_numbers = #tpu.dot_dimension_numbers<[1], [1], [0], [0], [0, 0, 1, 0], [], []>} : vector<128x64xbf16>, vector<128x64xbf16>, vector<128x128xf32> -> vector<128x128xf32>
    %103 = tpu.iota {dimensions = array<i32: 1>} : vector<128x128xi32>
    %c77_i32_36 = arith.constant 77 : i32
    %104 = vector.broadcast %c77_i32_36 : i32 to vector<128x128xi32>
    %105 = arith.cmpi slt, %103, %104 : vector<128x128xi32>
    %cst_37 = arith.constant -1.000000e+30 : f32
    %106 = vector.broadcast %cst_37 : f32 to vector<128x128xf32>
    %107 = arith.select %105, %102, %106 : vector<128x128xi1>, vector<128x128xf32>
    %cst_38 = arith.constant dense<0xFF800000> : vector<128xf32>
    %108 = vector.multi_reduction <maximumf>, %107, %cst_38 [1] : vector<128x128xf32> to vector<128xf32>
    %109 = vector.shape_cast %108 : vector<128xf32> to vector<128x1xf32>
    %110 = vector.broadcast %109 : vector<128x1xf32> to vector<128x128xf32>
    %111 = arith.subf %107, %110 : vector<128x128xf32>
    %112 = math.exp %111 : vector<128x128xf32>
    %cst_39 = arith.constant dense<0.000000e+00> : vector<128xf32>
    %113 = vector.multi_reduction <add>, %112, %cst_39 [1] : vector<128x128xf32> to vector<128xf32>
    %114 = vector.shape_cast %113 : vector<128xf32> to vector<128x1xf32>
    %115 = arith.truncf %112 : vector<128x128xf32> to vector<128x128xbf16>
    %cst_40 = arith.constant dense<0.000000e+00> : vector<128x64xf32>
    %116 = tpu.matmul %115, %101, %cst_40 {dimension_numbers = #tpu.dot_dimension_numbers<[1], [0], [0], [1], [0, 0, 1, 1], [], []>} : vector<128x128xbf16>, vector<128x64xbf16>, vector<128x64xf32> -> vector<128x64xf32>
    %117 = tpu.reciprocal %114 {approx = true} : vector<128x1xf32> -> vector<128x1xf32>
    %118 = vector.broadcast %117 : vector<128x1xf32> to vector<128x64xf32>
    %119 = arith.mulf %116, %118 : vector<128x64xf32>
    %120 = arith.truncf %119 : vector<128x64xf32> to vector<128x64xbf16>
    %121 = tpu.concatenate %54, %76, %98, %120 in 1 : vector<128x64xbf16>, vector<128x64xbf16>, vector<128x64xbf16>, vector<128x64xbf16> -> vector<128x256xbf16>
    %c0_41 = arith.constant 0 : index
    %c0_42 = arith.constant 0 : index
    %122 = vector.load %arg8[%c0_41, %c0_42] : memref<128x256xbf16, #tpu.memory_space<vmem>>, vector<128x256xbf16>
    tpu.vector_store %arg8[%c0_41, %c0_42], %121 {strides = array<i32>} : memref<128x256xbf16, #tpu.memory_space<vmem>>, vector<128x256xbf16>,
    return
  }
  func.func @transform_0(%arg0: i32, %arg1: i32) -> (i32, i32) {
    %c0_i32 = arith.constant 0 : i32
    %c0_i32_0 = arith.constant 0 : i32
    return %arg0, %c0_i32 : i32, i32
  }
  func.func @transform_1(%arg0: i32, %arg1: i32) -> (i32, i32) {
    %c0_i32 = arith.constant 0 : i32
    %c0_i32_0 = arith.constant 0 : i32
    %c0_i32_1 = arith.constant 0 : i32
    return %c0_i32, %c0_i32_0 : i32, i32
  }
  func.func @transform_2(%arg0: i32, %arg1: i32) -> (i32, i32) {
    %c0_i32 = arith.constant 0 : i32
    %c0_i32_0 = arith.constant 0 : i32
    %c0_i32_1 = arith.constant 0 : i32
    return %c0_i32, %c0_i32_0 : i32, i32
  }
  func.func @transform_3(%arg0: i32, %arg1: i32) -> (i32, i32) {
    %c0_i32 = arith.constant 0 : i32
    %c0_i32_0 = arith.constant 0 : i32
    return %c0_i32, %arg1 : i32, i32
  }
  func.func @transform_4(%arg0: i32, %arg1: i32) -> (i32, i32) {
    %c2_i32 = arith.constant 2 : i32
    %0 = arith.addi %c2_i32, %arg1 : i32
    %c0_i32 = arith.constant 0 : i32
    %c0_i32_0 = arith.constant 0 : i32
    return %c0_i32, %0 : i32, i32
  }
  func.func @transform_5(%arg0: i32, %arg1: i32) -> (i32, i32) {
    %c4_i32 = arith.constant 4 : i32
    %0 = arith.addi %c4_i32, %arg1 : i32
    %c0_i32 = arith.constant 0 : i32
    %c0_i32_0 = arith.constant 0 : i32
    return %c0_i32, %0 : i32, i32
  }
  func.func @transform_6(%arg0: i32, %arg1: i32) -> (i32, i32) {
    %c0_i32 = arith.constant 0 : i32
    return %arg0, %arg1 : i32, i32
  }
}

</mosaic_0001>

<bundles_post_ra>
// kernel: tpu_custom_call.1
= control target key start
LH: loop header
LB: loop body
LE: loop exit
PB: predicated region body
PF: predicated region fallthrough
CT: control target
= control target key end

     0   :  { %s6648_s0 = inlined_call_operand.vmem [shape: f32[256,64], index: 0, kind: input, shape index: {}]   ;;  %s6649_s1 = inlined_call_operand.vmem [shape: f32[1,64], index: 1, kind: input, shape index: {}]   ;;  %s6650_s2 = inlined_call_operand.vmem [shape: f32[1,64], index: 2, kind: input, shape index: {}]   ;;  %s6651_s3 = inlined_call_operand.vmem [shape: bf16[64,1536], index: 3, kind: input, shape index: {}]   ;;  %s6652_s4 = inlined_call_operand.hbm [shape: bf16[64,1536], index: 4, kind: input, shape index: {}]   ;;  %s6653_s5 = inlined_call_operand.hbm [shape: bf16[64,1536], index: 5, kind: input, shape index: {}]   ;;  %s6654_s6 = inlined_call_operand.hbm [shape: bf16[256,512], index: 6, kind: output, shape index: {}]  }
   0x1   :  { %6684 = sst [smem:[#allocation80_spill]] %s6648_s0 }
   0x2   :  { %6685 = sst [smem:[#allocation81_spill]] %s6649_s1 }
   0x3   :  { %6686 = sst [smem:[#allocation82_spill]] %s6650_s2 }
   0x4   :  { %6687 = sst [smem:[#allocation83_spill]] %s6651_s3 }
   0x5   :  { %6688 = sst [smem:[#allocation84_spill]] %s6652_s4 }
   0x6   :  { %6689 = sst [smem:[#allocation85_spill]] %s6654_s6 }
   0x7   :  { %11 = vsyncpa [#allocation4], 0 }
   0x8   :  { %13 = vsyncpa [#allocation4 + $0x1], 0 }
   0x9   :  { %14 = vsyncpa [#allocation7], 0 }
   0xa   :  { %16 = vsyncpa [#allocation7 + $0x1], 0 }
   0xb   :  { %17 = vsyncpa [#allocation5], 0 }
   0xc   :  { %19 = vsyncpa [#allocation5 + $0x1], 0  ;;  %s4743_s21 = smov 0   ;;  %s4745_s22 = smov 0  }
   0xd   :  { %s4747_s23 = smov 0   ;;  %s4749_s24 = smov 0  }
   0xe   :  { %s4751_s25 = smov 0   ;;  %s4753_s26 = smov 0  }
   0xf   :  { %s4755_s27 = smov 0   ;;  %s4757_s28 = smov 0  }
  0x10   :  { %s4759_s29 = smov 0   ;;  %s4761_s30 = smov 0  }
  0x11   :  { %s4763_s7 = smov 0   ;;  %s4765_s8 = smov 0  }
  0x12   :  { %s4767_s9 = smov 0   ;;  %s4769_s10 = smov 0  }
  0x13   :  { %s4771_s11 = smov 0   ;;  %s4773_s12 = smov 0  }
  0x14 LB: > { %6690 = sst [smem:[#allocation12_spill]] %s4635_s21  ;;  %s34_s15 = sadd.s32 1, %s4687_s10  ;;  %s4695_s12 = sphi %s4773_s12, %s25_s12   ;;  %s4691_s11 = sphi %s4771_s11, %s6865_s11   ;;  %s4687_s10 = sphi %s4769_s10, %s6876_s10   ;;  %s4683_s9 = sphi %s4767_s9, %s6863_s9   ;;  %s4679_s8 = sphi %s4765_s8, %s6875_s8   ;;  %s4675_s7 = sphi %s4763_s7, %s6862_s7   ;;  %s4671_s30 = sphi %s4761_s30, %s6874_s30   ;;  %s4667_s29 = sphi %s4759_s29, %s6860_s29   ;;  %s4663_s28 = sphi %s4757_s28, %s6873_s28   ;;  %s4659_s27 = sphi %s4755_s27, %s6872_s27   ;;  %s4655_s26 = sphi %s4753_s26, %s6871_s26   ;;  %s4651_s25 = sphi %s4751_s25, %s6870_s25   ;;  %s4647_s24 = sphi %s4749_s24, %s6869_s24   ;;  %s4643_s23 = sphi %s4747_s23, %s6857_s23   ;;  %s4639_s22 = sphi %s4745_s22, %s6868_s22   ;;  %s4635_s21 = sphi %s4743_s21, %s6866_s21  }
  0x15   : > { %6691 = sst [smem:[#allocation13_spill]] %s4643_s23  ;;  %s37_s16 = sadd.s32 1, %s4691_s11 }
  0x16   : > { %6692 = sst [smem:[#allocation14_spill]] %s4667_s29  ;;  %p35_p0 = scmp.ge.s32.totalorder %s34_s15, 2 }
  0x17   : > { %6693 = sst [smem:[#allocation15_spill]] %s4675_s7  ;;  %s112_s17 = sadd.s32 1, %s4675_s7 }
  0x18   : > { %6694 = sst [smem:[#allocation16_spill]] %s4679_s8  ;;  %p119_p1 = scmp.ne.s32.totalorder %s4675_s7, %s4671_s30 }
  0x19   : > { %6695 = sst [smem:[#allocation17_spill]] %s4683_s9  ;;  %p120_p2 = scmp.eq.s32.totalorder %s4695_s12, 0 }
  0x1a   : > { %6696 = sst [smem:[#allocation18_spill]] %s4691_s11  ;;  %s6878_s15 = smov (%p35_p0, %s34_s15), 0 }
  0x1b   : > { %6697 = sst [smem:[#allocation19_spill]] %s6878_s15  ;;  %s6880_s16 = smov (!%p35_p0, %s37_s16), %s4691_s11 }
  0x1c   : > { %s109_s18 = ssub.s32 %s4687_s10, %s6878_s15  ;;  %p4838_p3 = por %p120_p2, %p119_p1 }
  0x1d   : > { %p39_p4 = scmp.ge.s32.totalorder %s6880_s16, 2  ;;  %p110_p5 = scmp.eq.s32.totalorder %s109_s18, 0 }
  0x1e   : > { %s135_s20 = sadd.s32 2, %s4687_s10  ;;  %s136_s14 = sadd.s32 2, %s6878_s15 }
  0x1f   : > { %s6882_s16 = smov (%p39_p4, %s6880_s16), 0  ;;  %s137_s6 = ssub.s32 %s135_s20, %s136_s14 }
  0x20   : > { %6699 = sst [smem:[#allocation20_spill]] %s6882_s16  ;;  %s140_s8 = sadd.s32 1, %s4667_s29 }
  0x21   : > { %s4847_s13 = scalar_select %p110_p5, %s4675_s7, %s112_s17  }
  0x22   : > { %p138_p6 = scmp.eq.s32.totalorder %s137_s6, 0  ;;  %p147_p7 = scmp.ne.s32.totalorder %s4667_s29, %s4663_s28 }
  0x23   : > { %6700 = sst [smem:[#allocation21_spill]] %s4847_s13  ;;  %p153_p8 = scmp.ne.s32.totalorder %s4663_s28, %s4659_s27 }
  0x24   : > { %s6701_s2 = sadd.s32 4294967295, %s4695_s12   ;;  %p4865_p10 = por %p147_p7, %p120_p2 }
  0x25   : > { %p4856_p9 = scmp.eq.s32.totalorder %s6701_s2, 0  ;;  %s163_s2 = sadd.s32 4, %s4687_s10 }
  0x26   : > { %s4861_s17 = scalar_select %p138_p6, %s4667_s29, %s140_s8  }
  0x27   : > { %p4871_p11 = por %p4856_p9, %p153_p8  ;;  %s164_s27 = sadd.s32 4, %s6878_s15 }
  0x28   : > { %6703 = sst [smem:[#allocation22_spill]] %s4861_s17  ;;  %s165_s8 = ssub.s32 %s163_s2, %s164_s27 }
  0x29   : > { %s168_s20 = sadd.s32 1, %s4655_s26  ;;  %p166_p12 = scmp.eq.s32.totalorder %s165_s8, 0 }
  0x2a   : > { %p175_p13 = scmp.ne.s32.totalorder %s4655_s26, %s4651_s25  ;;  %p181_p0 = scmp.ne.s32.totalorder %s4651_s25, %s4647_s24 }
  0x2b   : > { %s191_s13 = ssub.s32 %s4691_s11, %s6882_s16  ;;  %s196_s2 = sadd.s32 1, %s4643_s23 }
  0x2c   : > { %s4885_s17 = scalar_select %p166_p12, %s4655_s26, %s168_s20  }
  0x2d   : > { %p4889_p1 = por %p175_p13, %p120_p2  ;;  %p4895_p4 = por %p181_p0, %p4856_p9 }
  0x2e   : > { %6706 = sst [smem:[#allocation23_spill]] %s4885_s17  ;;  %s193_s15 = sor.u32 %s191_s13, %s109_s18 }
  0x2f   : > { %p194_p5 = scmp.eq.s32.totalorder %s193_s15, 0  ;;  %p206_p6 = scmp.ne.s32.totalorder %s4643_s23, %s4639_s22 }
  0x30   : > { %s6709_s27 = sadd.s32 4294967295, %s4695_s12   ;;  %p212_p8 = scmp.ne.s32.totalorder %s4639_s22, %s4635_s21 }
  0x31   : > { %p207_p7 = scmp.eq.s32.totalorder %s6709_s27, 3  ;;  %s6712_s20 = sadd.s32 4294967294, %s4695_s12  }
  0x32   : > { %s4907_s24 = scalar_select %p194_p5, %s4643_s23, %s196_s2  }
  0x33   : > { %p4909_p12 = por %p207_p7, %p206_p6  ;;  %p213_p2 = scmp.eq.s32.totalorder %s6712_s20, 3 }
  0x34   : > { %6710 = sst [smem:[#allocation24_spill]] %s4907_s24  ;;  %p3468_p9 = scmp.ge.s32.totalorder %s4695_s12, 4 }
  0x35   : > { %p4915_p13 = por %p213_p2, %p212_p8 }
  0x36   : > { %235 = sbr.rel (%p3468_p9) target bundleno = 104 (0x68), region = 24 }
  0x37   : > { %s6713_s1 = scalar_select %p4915_p13, 1, 0 }
  0x39   : > { %6714 = sst [smem:[#allocation25_spill]] %s6713_s1 }
  0x3b   : > { %247 = sbr.rel (!%p4838_p3) target bundleno = 73 (0x49), region = 32  ;;  %s249_s13 = sand.u32 (%p4838_p3), 1, %s4675_s7  }
  0x3c   : > { %s3588_s15 = sshll.u32 (%p4838_p3), %s4687_s10, 3  ;;  %s3469_s18 = sshll.u32 (%p4838_p3), %s249_s13, 6 }
  0x3d   : > { %s6715_s3 = sld [smem:[#allocation83_spill]] (%p4838_p3)  ;;  %s251_s20 = scalar_lea.vmem (%p4838_p3), [#allocation2], %s3469_s18 }
  0x43   : > { %s254_s16 = scalar_lea.vmem %s6715_s3, %s3588_s15 }
  0x44   : > { %v297_v0 = vld [vmem:[%s254_s16] sm:$0xff]  ;;  %v299_v1 = vld [vmem:[%s254_s16 + $0x30] sm:$0xff] }
  0x45   : > { %v301_v2 = vld [vmem:[%s254_s16 + $0x60] sm:$0xff]  ;;  %298 = vst [vmem:[%s251_s20] sm:$0xff] %v297_v0  ;;  %300 = vst [vmem:[%s251_s20 + $0x8] sm:$0xff] %v299_v1  ;;  %v303_v3 = vld [vmem:[%s254_s16 + $0x90] sm:$0xff] }
  0x46   : > { %302 = vst [vmem:[%s251_s20 + $0x10] sm:$0xff] %v301_v2  ;;  %v305_v4 = vld [vmem:[%s254_s16 + $0xc0] sm:$0xff]  ;;  %v307_v5 = vld [vmem:[%s254_s16 + $0xf0] sm:$0xff]  ;;  %304 = vst [vmem:[%s251_s20 + $0x18] sm:$0xff] %v303_v3 }
  0x47   : > { %306 = vst [vmem:[%s251_s20 + $0x20] sm:$0xff] %v305_v4  ;;  %308 = vst [vmem:[%s251_s20 + $0x28] sm:$0xff] %v307_v5  ;;  %v309_v6 = vld [vmem:[%s254_s16 + $0x120] sm:$0xff]  ;;  %v311_v7 = vld [vmem:[%s254_s16 + $0x150] sm:$0xff] }
  0x48   : > { %310 = vst [vmem:[%s251_s20 + $0x30] sm:$0xff] %v309_v6  ;;  %312 = vst [vmem:[%s251_s20 + $0x38] sm:$0xff] %v311_v7 }
  0x49 PF: > { %s319_s19 = sand.u32 1, %s4667_s29   ;;  %s3473_s13 = sshll.u32 %s4687_s10, 7 }
  0x4a   : > { %s3472_s15 = sshll.u32 %s319_s19, 6  ;;  %s6716_s4 = sld [smem:[#allocation84_spill]] }
  0x4b   : > { %s323_s11 = scalar_lea.vmem [#allocation3], %s3472_s15  ;;  %s320_s16 = scalar_lea.sflag [#allocation4], %s319_s19 }
  0x4c   : > { %s331_s7 = sshll.u32 %s323_s11, 4  ;;  %s4697_s20 = smov [#allocation3]   ;;  %s332_s7 = int_to_ptr.vmem [resolvable:$true] %s331_s7 }
  0x4d   : > { %s4489_s17 = scalar_lea.vmem %s332_s7, 1024  ;;  %s4493_s24 = sshll.u32 %s4697_s20, 4  ;;  %s4494_s24 = int_to_ptr.vmem [resolvable:$false] %s4493_s24 }
  0x4e   : > { %p4490_p3 = scmp.ne.s32.totalorder %s332_s7, %s4489_s17  ;;  %s4495_s29 = scalar_lea.vmem %s4494_s24, 2048 }
  0x4f   : > { %p4496_p6 = scmp.lt.s32.totalorder %s332_s7, %s4494_s24  ;;  %p4497_p7 = scmp.lt.s32.totalorder %s4495_s29, %s4489_s17 }
  0x50   : > { %s3363_s27 = scalar_lea.hbm %s6716_s4, %s3473_s13  ;;  %p4491_p0 = pnand %p4490_p3, %p4865_p10 }
  0x51   : > { %s3364_s3 = scalar_lea.hbm %s3363_s27, 256  ;;  %p4498_p8 = por %p4497_p7, %p4496_p6 }
  0x52   : > { %p4492_p5 = pneg %p4491_p0 }
  0x54   : > { %p4499_p2 = pnand %p4498_p8, %p4492_p5 }
  0x56   : > { %4502 = shalt.err (!%p4499_p2)
}
  0x57   : > { %s4698_s18 = smov 768   ;;  %s4699_s11 = smov 128  }
  0x58   : > { %s4700_s19 = smov 8   ;;  %s341_s15 = sand.u32 1, %s4655_s26  }
  0x59   : > { %4006 = dma.hbm_to_vmem [thread:$0]  (%p4865_p10), %s3364_s3, 1024, %s332_s7, %s320_s16, %s4698_s18, %s4699_s11, %s4700_s19  }
  0x5a   : > { %s3369_s24 = scalar_lea.hbm %s6653_s5, %s3473_s13  ;;  %s3474_s29 = sshll.u32 %s341_s15, 6 }
  0x5b   : > { %s3370_s17 = scalar_lea.hbm %s3369_s24, 512  ;;  %s345_s20 = scalar_lea.vmem [#allocation6], %s3474_s29 }
  0x5c   : > { %s353_s4 = sshll.u32 %s345_s20, 4  ;;  %s342_s23 = scalar_lea.sflag [#allocation7], %s341_s15  ;;  %s354_s4 = int_to_ptr.vmem [resolvable:$true] %s353_s4 }
  0x5d   : > { %s4516_s1 = scalar_lea.vmem %s354_s4, 1024  ;;  %s4701_s14 = smov [#allocation6]  }
  0x5e   : > { %p4517_p9 = scmp.ne.s32.totalorder %s354_s4, %s4516_s1  ;;  %s4520_s21 = sshll.u32 %s4701_s14, 4  ;;  %s4521_s21 = int_to_ptr.vmem [resolvable:$false] %s4520_s21 }
  0x5f   : > { %s4522_s3 = scalar_lea.vmem %s4521_s21, 2048  ;;  %p4523_p10 = scmp.lt.s32.totalorder %s354_s4, %s4521_s21 }
  0x60   : > { %p4518_p3 = pnand %p4517_p9, %p4889_p1  ;;  %p4524_p5 = scmp.lt.s32.totalorder %s4522_s3, %s4516_s1 }
  0x62   : > { %p4519_p0 = pneg %p4518_p3  ;;  %p4525_p6 = por %p4524_p5, %p4523_p10 }
  0x64   : > { %p4526_p7 = pnand %p4525_p6, %p4519_p0 }
  0x66   : > { %4529 = shalt.err (!%p4526_p7)
}
  0x67   : > { %4007 = dma.hbm_to_vmem [thread:$0]  (%p4889_p1), %s3370_s17, 1024, %s354_s4, %s342_s23, %s4698_s18, %s4699_s11, %s4700_s19  }
  0x68 PF: > { %p3476_p8 = scmp.ge.s32.totalorder %s4695_s12, 1  ;;  %p361_p2 = scmp.lt.s32.totalorder %s4695_s12, 5 }
  0x6a   : > { %p362_p9 = pnand %p3476_p8, %p361_p2 }
  0x6c   : > { %365 = sbr.rel (%p362_p9) target bundleno = 2142 (0x85e), region = 78 }
  0x71   : > { %s368_s7 = sand.u32 1, %s4671_s30   ;;  %s374_s21 = sand.u32 1, %s4663_s28  }
  0x72   : > { %s3477_s1 = sshll.u32 %s368_s7, 6  ;;  %s3478_s13 = sshll.u32 %s374_s21, 6 }
  0x73   : > { %s4954_s16 = scalar_lea.vmem [#allocation2], %s3477_s1  ;;  %s375_s15 = scalar_lea.sflag [#allocation4], %s374_s21 }
  0x74   : > { %s4956_s0 = scalar_lea.vmem [#allocation3], %s3478_s13 }
  0x75   : > { %4622 = dma.done.wait (%p4871_p11), %s375_s15, 1024  }
  0x76   : > { %4624 = vsyncadd (%p4871_p11), %s375_s15, 4294966272  ;;  %s383_s4 = sand.u32 1, %s4651_s25  }
  0x77   : > { %s3479_s23 = sshll.u32 %s383_s4, 6  ;;  %s384_s18 = scalar_lea.sflag [#allocation7], %s383_s4 }
  0x78   : > { %s4963_s11 = scalar_lea.vmem [#allocation6], %s3479_s23 }
  0x79   : > { %4626 = dma.done.wait (%p4895_p4), %s384_s18, 1024  }
  0x7a   : > { %4628 = vsyncadd (%p4895_p4), %s384_s18, 4294966272  ;;  %s6717_s30 = sld [smem:[#allocation17_spill]]  ;;  %vm462_vm0 = vcmask 523264   ;;  %s4703_s21 = smov 64  }
  0x7b   : > { %s6718_s24 = sld [smem:[#allocation80_spill]]  ;;  %s427_s1 = sand.u32 1, %s4639_s22  }
  0x7c   : > { %s6719_s20 = sld [smem:[#allocation81_spill]]  ;;  %s3480_s13 = sshll.u32 %s427_s1, 7 }
  0x7d   : > { %s6720_s7 = sld [smem:[#allocation82_spill]]  ;;  %s6567_s27 = scalar_lea.sflag [#allocation5], %s427_s1 }
  0x7e   : > { %s6844_s15 = sld [smem:[#allocation16_spill]] }
  0x80   : > { %s3481_s19 = sshll.u32 %s6717_s30, 4  ;;  %s3589_s4 = sshll.u32 %s6717_s30, 6 }
  0x81   : > { %p431_p1 = scmp.lt.s32.totalorder %s3481_s19, 31 }
  0x83   : > { %s6884_s19 = smov (!%p431_p1, %s3481_s19), 31 }
  0x84   : > { %s3482_s2 = sshll.u32 %s6884_s19, 3 }
  0x85   : > { %s4973_s29 = scalar_lea.vmem %s6718_s24, %s3482_s2  ;;  %s6852_s2 = sld [smem:[#allocation85_spill]] }
  0x86   : > { %v444_v8 = vld [vmem:[%s4973_s29] sm:$0xff]  ;;  %v446_v9 = vld [vmem:[%s4973_s29 + $0x10] sm:$0xff]  ;;  %v445_v10 = vld [vmem:[%s4973_s29 + $0x8] sm:$0xff] }
  0x87   : > { %v463_v11 = vsel %vm462_vm0, %v444_v8, 0.0  ;;  %v469_v12 = vsel %vm462_vm0, %v446_v9, 0.0  ;;  %v447_v13 = vld [vmem:[%s4973_s29 + $0x18] sm:$0xff]  ;;  %v466_v14 = vsel %vm462_vm0, %v445_v10, 0.0  ;;  %v448_v16 = vld [vmem:[%s4973_s29 + $0x20] sm:$0xff]  ;;  %v449_v17 = vld [vmem:[%s4973_s29 + $0x28] sm:$0xff] }
  0x88   : > { %464 = vadd.xlane.f32.xlu0 %v463_v11  ;;  %470 = vadd.xlane.f32.xlu1 %v469_v12  ;;  %v472_v15 = vsel %vm462_vm0, %v447_v13, 0.0  ;;  %v4986_v18 = vld [vmem:[%s4973_s29 + $0x30] sm:$0xff]  ;;  %v4989_v19 = vld [vmem:[%s4973_s29 + $0x38] sm:$0xff]  ;;  %v475_v20 = vsel %vm462_vm0, %v448_v16, 0.0  ;;  %v478_v21 = vsel %vm462_vm0, %v449_v17, 0.0  ;;  %v4994_v22 = vld [vmem:[%s4973_s29 + $0x40] sm:$0xff] }
  0x89   : > { %v4997_v23 = vld [vmem:[%s4973_s29 + $0x48] sm:$0xff]  ;;  %v481_v24 = vsel %vm462_vm0, %v4986_v18, 0.0  ;;  %v484_v25 = vsel %vm462_vm0, %v4989_v19, 0.0  ;;  %v487_v26 = vsel %vm462_vm0, %v4994_v22, 0.0  ;;  %v5008_v28 = vld [vmem:[%s4973_s29 + $0x50] sm:$0xff]  ;;  %v5011_v29 = vld [vmem:[%s4973_s29 + $0x58] sm:$0xff] }
  0x8a   : > { %v490_v27 = vsel %vm462_vm0, %v4997_v23, 0.0  ;;  %v493_v30 = vsel %vm462_vm0, %v5008_v28, 0.0  ;;  %v496_v31 = vsel %vm462_vm0, %v5011_v29, 0.0  ;;  %v5018_v32 = vld [vmem:[%s4973_s29 + $0x60] sm:$0xff]  ;;  %v5021_v33 = vld [vmem:[%s4973_s29 + $0x68] sm:$0xff]  ;;  %v5028_v36 = vld [vmem:[%s4973_s29 + $0x70] sm:$0xff] }
  0x8b   : > { %v499_v34 = vsel %vm462_vm0, %v5018_v32, 0.0  ;;  %v502_v35 = vsel %vm462_vm0, %v5021_v33, 0.0  ;;  %v5031_v37 = vld [vmem:[%s4973_s29 + $0x78] sm:$0xff]  ;;  %v505_v38 = vsel %vm462_vm0, %v5028_v36, 0.0  ;;  %s4704_s29 = smov [#allocation8]  }
  0x8c   : > { %467 = vadd.xlane.f32.xlu0 %v466_v14  ;;  %473 = vadd.xlane.f32.xlu1 %v472_v15  ;;  %v508_v39 = vsel %vm462_vm0, %v5031_v37, 0.0  ;;  %s4535_s9 = sshll.u32 %s4704_s29, 4  ;;  %s4536_s9 = int_to_ptr.vmem [resolvable:$false] %s4535_s9 }
  0x8d   : > { %s4537_s17 = scalar_lea.vmem %s4536_s9, 4096 }
  0x90   : > { %476 = vadd.xlane.f32.xlu0 %v475_v20  ;;  %479 = vadd.xlane.f32.xlu1 %v478_v21 }
  0x94   : > { %482 = vadd.xlane.f32.xlu0 %v481_v24  ;;  %485 = vadd.xlane.f32.xlu1 %v484_v25 }
  0x98   : > { %488 = vadd.xlane.f32.xlu0 %v487_v26  ;;  %491 = vadd.xlane.f32.xlu1 %v490_v27 }
  0x9c   : > { %494 = vadd.xlane.f32.xlu0 %v493_v30  ;;  %497 = vadd.xlane.f32.xlu1 %v496_v31 }
  0xa0   : > { %500 = vadd.xlane.f32.xlu0 %v499_v34  ;;  %503 = vadd.xlane.f32.xlu1 %v502_v35 }
  0xa4   : > { %506 = vadd.xlane.f32.xlu0 %v505_v38  ;;  %509 = vadd.xlane.f32.xlu1 %v508_v39 }
 0x111   : > { %v465_v40 = vpop.xlane.xlu0 %464  ;;  %v471_v41 = vpop.xlane.xlu1 %470 }
 0x112   : > { %v512_v42 = vmul.f32 0.015625, %v465_v40  ;;  %v514_v43 = vmul.f32 0.015625, %v471_v41 }
 0x114   : > { %v5037_v44 = vsub.f32 %v444_v8, %v512_v42  ;;  %v5039_v45 = vsub.f32 %v446_v9, %v514_v43 }
 0x115   : > { %v468_v46 = vpop.xlane.xlu0 %467  ;;  %v474_v47 = vpop.xlane.xlu1 %473 }
 0x116   : > { %v513_v48 = vmul.f32 0.015625, %v468_v46  ;;  %v515_v49 = vmul.f32 0.015625, %v474_v47  ;;  %v544_v50 = vmul.f32 %v5037_v44, %v5037_v44  ;;  %v546_v51 = vmul.f32 %v5039_v45, %v5039_v45 }
 0x118   : > { %v5045_v52 = vsub.f32 %v445_v10, %v513_v48  ;;  %v5047_v53 = vsub.f32 %v447_v13, %v515_v49  ;;  %v560_v54 = vsel %vm462_vm0, %v544_v50, 0.0  ;;  %v566_v57 = vsel %vm462_vm0, %v546_v51, 0.0 }
 0x119   : > { %561 = vadd.xlane.f32.xlu0 %v560_v54  ;;  %v477_v55 = vpop.xlane.xlu0 %476  ;;  %v480_v56 = vpop.xlane.xlu1 %479 }
 0x11a   : > { %v516_v58 = vmul.f32 0.015625, %v477_v55  ;;  %v517_v59 = vmul.f32 0.015625, %v480_v56  ;;  %v545_v60 = vmul.f32 %v5045_v52, %v5045_v52  ;;  %v547_v61 = vmul.f32 %v5047_v53, %v5047_v53 }
 0x11c   : > { %v5055_v62 = vsub.f32 %v448_v16, %v516_v58  ;;  %v5057_v63 = vsub.f32 %v449_v17, %v517_v59  ;;  %v563_v0 = vsel %vm462_vm0, %v545_v60, 0.0  ;;  %v569_v3 = vsel %vm462_vm0, %v547_v61, 0.0  ;;  %v4155_v58 = vld [vmem:[%s4956_s0 + $0x34] ss:$8 sps:$4 sm:$0xff]   ;;  %v4157_v59 = vld [vmem:[%s4954_s16 + $0x30] ss:$8 sps:$4 sm:$0xff]  }
 0x11d   : > { %567 = vadd.xlane.f32.xlu0 %v566_v57  ;;  %564 = vadd.xlane.f32.xlu1 %v563_v0  ;;  %v483_v1 = vpop.xlane.xlu0 %482  ;;  %v486_v2 = vpop.xlane.xlu1 %485  ;;  %v4153_v57 = vld [vmem:[%s4954_s16 + $0x34] ss:$8 sps:$4 sm:$0xff]   ;;  %v4158_v60 = vld [vmem:[%s4956_s0 + $0x30] ss:$8 sps:$4 sm:$0xff]  }
 0x11e   : > { %v518_v4 = vmul.f32 0.015625, %v483_v1  ;;  %v519_v5 = vmul.f32 0.015625, %v486_v2  ;;  %v548_v6 = vmul.f32 %v5055_v62, %v5055_v62  ;;  %v549_v7 = vmul.f32 %v5057_v63, %v5057_v63  ;;  %804 = vmatprep.subr.bf16.mxu0 %v4153_v57  ;;  %981 = vmatprep.subr.bf16.mxu1 %v4155_v58  ;;  %v4159_v1 = vld [vmem:[%s4954_s16 + $0x24] ss:$8 sps:$4 sm:$0xff]  }
 0x11f   : > { %805 = vmatpush1.bf16.msra.mxu0 %v4157_v59  ;;  %982 = vmatpush1.bf16.msra.mxu1 %v4158_v60  ;;  %v4161_v2 = vld [vmem:[%s4956_s0 + $0x24] ss:$8 sps:$4 sm:$0xff]  }
 0x120   : > { %v5066_v8 = vsub.f32 %v4986_v18, %v518_v4  ;;  %v5069_v9 = vsub.f32 %v4989_v19, %v519_v5  ;;  %v572_v10 = vsel %vm462_vm0, %v548_v6, 0.0  ;;  %v575_v13 = vsel %vm462_vm0, %v549_v7, 0.0  ;;  %v4164_v4 = vld [vmem:[%s4956_s0 + $0x20] ss:$8 sps:$4 sm:$0xff]   ;;  %806 = vmatprep.subr.bf16.mxu0 %v4159_v1  ;;  %983 = vmatprep.subr.bf16.mxu1 %v4161_v2  ;;  %v4165_v6 = vld [vmem:[%s4954_s16 + $0x14] ss:$8 sps:$4 sm:$0xff]  }
 0x121   : > { %570 = vadd.xlane.f32.xlu1 %v569_v3  ;;  %573 = vadd.xlane.f32.xlu0 %v572_v10  ;;  %v489_v11 = vpop.xlane.xlu0 %488  ;;  %v492_v12 = vpop.xlane.xlu1 %491  ;;  %v4163_v3 = vld [vmem:[%s4954_s16 + $0x20] ss:$8 sps:$4 sm:$0xff]   ;;  %v4167_v7 = vld [vmem:[%s4956_s0 + $0x14] ss:$8 sps:$4 sm:$0xff]   ;;  %v4169_v10 = vld [vmem:[%s4954_s16 + $0x10] ss:$8 sps:$4 sm:$0xff]  }
 0x122   : > { %v520_v14 = vmul.f32 0.015625, %v489_v11  ;;  %v521_v15 = vmul.f32 0.015625, %v492_v12  ;;  %v550_v16 = vmul.f32 %v5066_v8, %v5066_v8  ;;  %v551_v17 = vmul.f32 %v5069_v9, %v5069_v9  ;;  %v4170_v11 = vld [vmem:[%s4956_s0 + $0x10] ss:$8 sps:$4 sm:$0xff]   ;;  %v4171_v12 = vld [vmem:[%s4954_s16 + $0x4] ss:$8 sps:$4 sm:$0xff]  }
 0x123   : > { %807 = vmatpush1.bf16.msra.mxu0 %v4163_v3  ;;  %984 = vmatpush1.bf16.msra.mxu1 %v4164_v4 }
 0x124   : > { %v5078_v18 = vsub.f32 %v4994_v22, %v520_v14  ;;  %v5081_v19 = vsub.f32 %v4997_v23, %v521_v15  ;;  %v578_v20 = vsel %vm462_vm0, %v550_v16, 0.0  ;;  %v581_v25 = vsel %vm462_vm0, %v551_v17, 0.0  ;;  %808 = vmatprep.subr.bf16.mxu0 %v4165_v6  ;;  %985 = vmatprep.subr.bf16.mxu1 %v4167_v7  ;;  %v4175_v14 = vld [vmem:[%s4954_s16] ss:$8 sps:$4 sm:$0xff]   ;;  %v4179_v17 = vld [vmem:[%s4963_s11 + $0x34] ss:$8 sps:$4 sm:$0xff]  }
 0x125   : > { %576 = vadd.xlane.f32.xlu1 %v575_v13  ;;  %579 = vadd.xlane.f32.xlu0 %v578_v20  ;;  %v495_v21 = vpop.xlane.xlu0 %494  ;;  %v498_v24 = vpop.xlane.xlu1 %497  ;;  %v4173_v13 = vld [vmem:[%s4956_s0 + $0x4] ss:$8 sps:$4 sm:$0xff]   ;;  %v4176_v15 = vld [vmem:[%s4956_s0] ss:$8 sps:$4 sm:$0xff]   ;;  %v4702_v16 = vmov 0   ;;  %s6492_s16 = scalar_lea.vmem [#allocation8], %s3480_s13 }
 0x126   : > { %v522_v26 = vmul.f32 0.015625, %v495_v21  ;;  %v523_v27 = vmul.f32 0.015625, %v498_v24  ;;  %v552_v30 = vmul.f32 %v5078_v18, %v5078_v18  ;;  %v553_v22 = vmul.f32 %v5081_v19, %v5081_v19  ;;  %828 = vmatprep.mubr.bf16.mxu0 %v4702_v16  ;;  %1005 = vmatprep.mubr.bf16.mxu1 %v4702_v16  ;;  %s3583_s0 = sshll.u32 %s6844_s15, 1  ;;  %s3323_s18 = sshll.u32 %s6492_s16, 4  ;;  %s6548_s18 = int_to_ptr.vmem [resolvable:$true] %s3323_s18 }
 0x127   : > { %809 = vmatpush1.bf16.msra.mxu0 %v4169_v10  ;;  %986 = vmatpush1.bf16.msra.mxu1 %v4170_v11  ;;  %s3320_s23 = sadd.s32 %s3589_s4, %s3583_s0  ;;  %s4531_s24 = scalar_lea.vmem %s6548_s18, 2048 }
 0x128   : > { %v5090_v31 = vsub.f32 %v5008_v28, %v522_v26  ;;  %v5093_v23 = vsub.f32 %v5011_v29, %v523_v27  ;;  %v584_v34 = vsel %vm462_vm0, %v552_v30, 0.0  ;;  %v587_v39 = vsel %vm462_vm0, %v553_v22, 0.0  ;;  %810 = vmatprep.subr.bf16.mxu0 %v4171_v12  ;;  %987 = vmatprep.subr.bf16.mxu1 %v4173_v13  ;;  %v4177_v12 = vld [vmem:[%s4963_s11 + $0x30] ss:$8 sps:$4 sm:$0xff]   ;;  %p4532_p11 = scmp.ne.s32.totalorder %s6548_s18, %s4531_s24  ;;  %p4538_p0 = scmp.lt.s32.totalorder %s6548_s18, %s4536_s9 }
 0x129   : > { %582 = vadd.xlane.f32.xlu1 %v581_v25  ;;  %585 = vadd.xlane.f32.xlu0 %v584_v34  ;;  %v501_v35 = vpop.xlane.xlu0 %500  ;;  %v504_v38 = vpop.xlane.xlu1 %503  ;;  %p4539_p10 = scmp.lt.s32.totalorder %s4537_s17, %s4531_s24 }
 0x12a   : > { %v524_v40 = vmul.f32 0.015625, %v501_v35  ;;  %v525_v41 = vmul.f32 0.015625, %v504_v38  ;;  %v554_v42 = vmul.f32 %v5090_v31, %v5090_v31  ;;  %v555_v28 = vmul.f32 %v5093_v23, %v5093_v23  ;;  %p4533_p4 = pnand %p4532_p11, %p4909_p12 }
 0x12b   : > { %811 = vmatpush1.bf16.msra.mxu0 %v4175_v14  ;;  %988 = vmatpush1.bf16.msra.mxu1 %v4176_v15  ;;  %p4540_p5 = por %p4539_p10, %p4538_p0 }
 0x12c   : > { %v5102_v29 = vsub.f32 %v5018_v32, %v524_v40  ;;  %v5105_v43 = vsub.f32 %v5021_v33, %v525_v41  ;;  %v590_v46 = vsel %vm462_vm0, %v554_v42, 0.0  ;;  %v593_v49 = vsel %vm462_vm0, %v555_v28, 0.0  ;;  %1158 = vmatprep.subr.bf16.mxu0 %v4179_v17  ;;  %v4182_v17 = vld [vmem:[%s4963_s11 + $0x24] ss:$8 sps:$4 sm:$0xff]   ;;  %p4534_p3 = pneg %p4533_p4 }
 0x12d   : > { %588 = vadd.xlane.f32.xlu1 %v587_v39  ;;  %591 = vadd.xlane.f32.xlu0 %v590_v46  ;;  %v507_v47 = vpop.xlane.xlu0 %506  ;;  %v510_v48 = vpop.xlane.xlu1 %509 }
 0x12e   : > { %v526_v50 = vmul.f32 0.015625, %v507_v47  ;;  %v527_v51 = vmul.f32 0.015625, %v510_v48  ;;  %v556_v32 = vmul.f32 %v5102_v29, %v5102_v29  ;;  %v557_v54 = vmul.f32 %v5105_v43, %v5105_v43  ;;  %p4541_p6 = pnand %p4540_p5, %p4534_p3 }
 0x130   : > { %v5114_v33 = vsub.f32 %v5028_v36, %v526_v50  ;;  %v5117_v55 = vsub.f32 %v5031_v37, %v527_v51  ;;  %v596_v56 = vsel %vm462_vm0, %v556_v32, 0.0  ;;  %v599_v61 = vsel %vm462_vm0, %v557_v54, 0.0 }
 0x131   : > { %594 = vadd.xlane.f32.xlu1 %v593_v49  ;;  %597 = vadd.xlane.f32.xlu0 %v596_v56  ;;  %v5150_v56 = vld [vmem:[%s6719_s20] ss:$0 sm:$0xff] }
 0x132   : > { %v558_v36 = vmul.f32 %v5114_v33, %v5114_v33  ;;  %v559_v37 = vmul.f32 %v5117_v55, %v5117_v55 }
 0x134   : > { %v602_v0 = vsel %vm462_vm0, %v558_v36, 0.0  ;;  %v605_v5 = vsel %vm462_vm0, %v559_v37, 0.0 }
 0x135   : > { %600 = vadd.xlane.f32.xlu1 %v599_v61  ;;  %603 = vadd.xlane.f32.xlu0 %v602_v0 }
 0x139   : > { %606 = vadd.xlane.f32.xlu1 %v605_v5 }
 0x1a2   : > { %v562_v20 = vpop.xlane.xlu0 %561 }
 0x1a3   : > { %v608_v21 = vmul.f32 0.015625, %v562_v20 }
 0x1a5   : > { %v624_v24 = vadd.f32 1e-05, %v608_v21 }
 0x1a6   : > { %v565_v25 = vpop.xlane.xlu1 %564  ;;  %v568_v26 = vpop.xlane.xlu0 %567 }
 0x1a7   : > { %4189 = vrsqrt.f32 %v624_v24  ;;  %v609_v27 = vmul.f32 0.015625, %v565_v25  ;;  %v610_v30 = vmul.f32 0.015625, %v568_v26 }
 0x1a9   : > { %v625_v22 = vadd.f32 1e-05, %v609_v27  ;;  %v626_v34 = vadd.f32 1e-05, %v610_v30  ;;  %v4180_v27 = vld [vmem:[%s4963_s11 + $0x20] ss:$8 sps:$4 sm:$0xff]  }
 0x1aa   : > { %v571_v35 = vpop.xlane.xlu1 %570  ;;  %v574_v38 = vpop.xlane.xlu0 %573  ;;  %v4185_v30 = vld [vmem:[%s4963_s11 + $0x14] ss:$8 sps:$4 sm:$0xff]  }
 0x1ab   : > { %4191 = vrsqrt.f32 %v625_v22  ;;  %v611_v39 = vmul.f32 0.015625, %v571_v35  ;;  %v612_v41 = vmul.f32 0.015625, %v574_v38 }
 0x1ac   : > { %4193 = vrsqrt.f32 %v626_v34 }
 0x1ad   : > { %v627_v40 = vadd.f32 1e-05, %v611_v39  ;;  %v628_v46 = vadd.f32 1e-05, %v612_v41  ;;  %v4183_v41 = vld [vmem:[%s4963_s11 + $0x10] ss:$8 sps:$4 sm:$0xff]  }
 0x1ae   : > { %v577_v42 = vpop.xlane.xlu1 %576  ;;  %v580_v48 = vpop.xlane.xlu0 %579 }
 0x1af   : > { %4195 = vrsqrt.f32 %v627_v40  ;;  %v613_v28 = vmul.f32 0.015625, %v577_v42  ;;  %v614_v32 = vmul.f32 0.015625, %v580_v48 }
 0x1b1   : > { %v629_v47 = vadd.f32 1e-05, %v613_v28  ;;  %v630_v59 = vadd.f32 1e-05, %v614_v32  ;;  %v4188_v28 = vld [vmem:[%s4963_s11 + $0x4] ss:$8 sps:$4 sm:$0xff]  }
 0x1b2   : > { %v583_v49 = vpop.xlane.xlu1 %582  ;;  %v586_v61 = vpop.xlane.xlu0 %585  ;;  %v4186_v32 = vld [vmem:[%s4963_s11] ss:$8 sps:$4 sm:$0xff]   ;;  %s3585_s11 = sshll.u32 %s3320_s23, 6 }
 0x1b3   : > { %4197 = vrsqrt.f32 %v629_v47  ;;  %v615_v50 = vmul.f32 0.015625, %v583_v49  ;;  %v616_v4 = vmul.f32 0.015625, %v586_v61  ;;  %s6559_s6 = scalar_lea.hbm %s6852_s2, %s3585_s11 }
 0x1b4   : > { %v4190_v51 = vpop.eup %4189  ;;  %4199 = vrsqrt.f32 %v628_v46 }
 0x1b5   : > { %v656_v54 = vmul.f32 %v4190_v51, %v5037_v44  ;;  %v631_v57 = vadd.f32 1e-05, %v615_v50  ;;  %v5157_v44 = vld [vmem:[%s6720_s7] ss:$0 sm:$0xff]  ;;  %v632_v20 = vadd.f32 1e-05, %v616_v4 }
 0x1b6   : > { %v589_v60 = vpop.xlane.xlu1 %588  ;;  %v592_v21 = vpop.xlane.xlu0 %591 }
 0x1b7   : > { %v678_v37 = vmul.f32 %v5150_v56, %v656_v54  ;;  %4201 = vrsqrt.f32 %v631_v57  ;;  %v617_v1 = vmul.f32 0.015625, %v589_v60  ;;  %v618_v22 = vmul.f32 0.015625, %v592_v21 }
 0x1b8   : > { %v4192_v58 = vpop.eup %4191  ;;  %4203 = vrsqrt.f32 %v630_v59 }
 0x1b9   : > { %v657_v36 = vmul.f32 %v4192_v58, %v5045_v52  ;;  %v4194_v0 = vpop.eup %4193  ;;  %v700_v5 = vadd.f32 %v5157_v44, %v678_v37  ;;  %v633_v10 = vadd.f32 1e-05, %v617_v1  ;;  %v634_v47 = vadd.f32 1e-05, %v618_v22 }
 0x1ba   : > { %v658_v6 = vmul.f32 %v4194_v0, %v5039_v45  ;;  %v595_v14 = vpop.xlane.xlu1 %594  ;;  %v598_v48 = vpop.xlane.xlu0 %597 }
 0x1bb   : > { %v679_v2 = vmul.f32 %v5150_v56, %v657_v36  ;;  %4205 = vrsqrt.f32 %v633_v10  ;;  %v619_v24 = vmul.f32 0.015625, %v595_v14  ;;  %v620_v54 = vmul.f32 0.015625, %v598_v48 }
 0x1bc   : > { %v4196_v3 = vpop.eup %4195  ;;  %v680_v45 = vmul.f32 %v5150_v56, %v658_v6  ;;  %4207 = vrsqrt.f32 %v632_v20 }
 0x1bd   : > { %v701_v52 = vadd.f32 %v5157_v44, %v679_v2  ;;  %v659_v7 = vmul.f32 %v4196_v3, %v5047_v53  ;;  %v635_v38 = vadd.f32 1e-05, %v619_v24  ;;  %v636_v0 = vadd.f32 1e-05, %v620_v54 }
 0x1be   : > { %v702_v34 = vadd.f32 %v5157_v44, %v680_v45  ;;  %v604_v2 = vpop.xlane.xlu0 %603 }
 0x1bf   : > { %v5164_v11 = vpack.c.bf16 %v701_v52, %v700_v5  ;;  %v681_v15 = vmul.f32 %v5150_v56, %v659_v7  ;;  %4209 = vrsqrt.f32 %v635_v38  ;;  %v622_v5 = vmul.f32 0.015625, %v604_v2 }
 0x1c0   : > { %v4198_v13 = vpop.eup %4197  ;;  %4211 = vrsqrt.f32 %v634_v47 }
 0x1c1   : > { %3493 = vmatmul.mubr.msk.bf16.vlgmr.msra.gmra.mxu0 %vm462_vm0, %v5164_v11  ;;  %3509 = vmatmul.mubr.msk.bf16.vlgmr.msra.gmra.mxu1 %vm462_vm0, %v5164_v11  ;;  %v4200_v53 = vpop.eup %4199  ;;  %v703_v25 = vadd.f32 %v5157_v44, %v681_v15  ;;  %v661_v26 = vmul.f32 %v4198_v13, %v5057_v63  ;;  %v601_v63 = vpop.xlane.xlu1 %600  ;;  %v638_v14 = vadd.f32 1e-05, %v622_v5 }
 0x1c2   : > { %838 = vmatprep.mubr.bf16.mxu0 %v4702_v16  ;;  %1015 = vmatprep.mubr.bf16.mxu1 %v4702_v16  ;;  %v660_v35 = vmul.f32 %v4200_v53, %v5055_v62  ;;  %v621_v49 = vmul.f32 0.015625, %v601_v63 }
 0x1c3   : > { %1159 = vmatpush1.bf16.msra.mxu0 %v4177_v12  ;;  %v5182_v39 = vpack.c.bf16 %v703_v25, %v702_v34  ;;  %v683_v40 = vmul.f32 %v5150_v56, %v661_v26 }
 0x1c4   : > { %1160 = vmatprep.subr.bf16.mxu0 %v4182_v17  ;;  %v4202_v42 = vpop.eup %4201  ;;  %v682_v62 = vmul.f32 %v5150_v56, %v660_v35  ;;  %v637_v59 = vadd.f32 1e-05, %v621_v49 }
 0x1c5   : > { %v4204_v46 = vpop.eup %4203  ;;  %v705_v50 = vadd.f32 %v5157_v44, %v683_v40  ;;  %v663_v51 = vmul.f32 %v4202_v42, %v5069_v9  ;;  %v607_v37 = vpop.xlane.xlu1 %606 }
 0x1c6   : > { %v704_v57 = vadd.f32 %v5157_v44, %v682_v62  ;;  %v662_v58 = vmul.f32 %v4204_v46, %v5066_v8  ;;  %4213 = vrsqrt.f32 %v637_v59  ;;  %v623_v8 = vmul.f32 0.015625, %v607_v37 }
 0x1c7   : > { %1161 = vmatpush1.bf16.msra.mxu0 %v4180_v27  ;;  %v685_v61 = vmul.f32 %v5150_v56, %v663_v51  ;;  %4215 = vrsqrt.f32 %v636_v0 }
 0x1c8   : > { %1162 = vmatprep.subr.bf16.mxu0 %v4185_v30  ;;  %v5199_v60 = vpack.c.bf16 %v705_v50, %v704_v57  ;;  %v4206_v36 = vpop.eup %4205  ;;  %v684_v9 = vmul.f32 %v5150_v56, %v662_v58  ;;  %v639_v7 = vadd.f32 1e-05, %v623_v8 }
 0x1c9   : > { %3494 = vmatmul.mubr.msk.bf16.gmra.mxu0 %vm462_vm0, %v5182_v39  ;;  %3510 = vmatmul.mubr.msk.bf16.gmra.mxu1 %vm462_vm0, %v5182_v39  ;;  %v4208_v1 = vpop.eup %4207  ;;  %v707_v3 = vadd.f32 %v5157_v44, %v685_v61  ;;  %v665_v4 = vmul.f32 %v4206_v36, %v5081_v19 }
 0x1ca   : > { %848 = vmatprep.mubr.bf16.mxu0 %v4702_v16  ;;  %1025 = vmatprep.mubr.bf16.mxu1 %v4702_v16  ;;  %v706_v52 = vadd.f32 %v5157_v44, %v684_v9  ;;  %v664_v6 = vmul.f32 %v4208_v1, %v5078_v18  ;;  %4217 = vrsqrt.f32 %v639_v7 }
 0x1cb   : > { %1163 = vmatpush1.bf16.msra.mxu0 %v4183_v41  ;;  %v687_v12 = vmul.f32 %v5150_v56, %v665_v4  ;;  %4219 = vrsqrt.f32 %v638_v14 }
 0x1cc   : > { %1164 = vmatprep.subr.bf16.mxu0 %v4188_v28  ;;  %v719_v10 = vpack.c.bf16 %v707_v3, %v706_v52  ;;  %v4210_v13 = vpop.eup %4209  ;;  %v686_v15 = vmul.f32 %v5150_v56, %v664_v6 }
 0x1cd   : > { %v4212_v17 = vpop.eup %4211  ;;  %v709_v18 = vadd.f32 %v5157_v44, %v687_v12  ;;  %v667_v19 = vmul.f32 %v4210_v13, %v5093_v23 }
 0x1ce   : > { %v708_v20 = vadd.f32 %v5157_v44, %v686_v15  ;;  %v666_v45 = vmul.f32 %v4212_v17, %v5090_v31 }
 0x1cf   : > { %1165 = vmatpush1.bf16.msra.mxu0 %v4186_v32  ;;  %v689_v21 = vmul.f32 %v5150_v56, %v667_v19 }
 0x1d0   : > { %v720_v53 = vpack.c.bf16 %v709_v18, %v708_v20  ;;  %v688_v25 = vmul.f32 %v5150_v56, %v666_v45 }
 0x1d1   : > { %3495 = vmatmul.mubr.msk.bf16.gmra.mxu0 %vm462_vm0, %v5199_v60  ;;  %3511 = vmatmul.mubr.msk.bf16.gmra.mxu1 %vm462_vm0, %v5199_v60  ;;  %v711_v23 = vadd.f32 %v5157_v44, %v689_v21 }
 0x1d2   : > { %858 = vmatprep.mubr.bf16.mxu0 %v4702_v16  ;;  %1035 = vmatprep.mubr.bf16.mxu1 %v4702_v16  ;;  %v710_v31 = vadd.f32 %v5157_v44, %v688_v25 }
 0x1d3   : > { %v4214_v24 = vpop.eup %4213 }
 0x1d4   : > { %v4216_v26 = vpop.eup %4215  ;;  %v669_v27 = vmul.f32 %v4214_v24, %v5105_v43  ;;  %v721_v22 = vpack.c.bf16 %v711_v23, %v710_v31 }
 0x1d5   : > { %v668_v30 = vmul.f32 %v4216_v26, %v5102_v29 }
 0x1d6   : > { %v691_v34 = vmul.f32 %v5150_v56, %v669_v27 }
 0x1d7   : > { %v4218_v35 = vpop.eup %4217  ;;  %v690_v38 = vmul.f32 %v5150_v56, %v668_v30 }
 0x1d8   : > { %v4220_v40 = vpop.eup %4219  ;;  %v713_v43 = vadd.f32 %v5157_v44, %v691_v34  ;;  %v671_v41 = vmul.f32 %v4218_v35, %v5117_v55 }
 0x1d9   : > { %3496 = vmatmul.mubr.msk.bf16.gmra.mxu0 %vm462_vm0, %v719_v10  ;;  %3512 = vmatmul.mubr.msk.bf16.gmra.mxu1 %vm462_vm0, %v719_v10  ;;  %v712_v29 = vadd.f32 %v5157_v44, %v690_v38  ;;  %v670_v42 = vmul.f32 %v4220_v40, %v5114_v33 }
 0x1da   : > { %868 = vmatprep.mubr.bf16.mxu0 %v4702_v16  ;;  %1045 = vmatprep.mubr.bf16.mxu1 %v4702_v16  ;;  %v693_v28 = vmul.f32 %v5150_v56, %v671_v41 }
 0x1db   : > { %v722_v63 = vpack.c.bf16 %v713_v43, %v712_v29  ;;  %v692_v46 = vmul.f32 %v5150_v56, %v670_v42 }
 0x1dc   : > { %v715_v47 = vadd.f32 %v5157_v44, %v693_v28 }
 0x1dd   : > { %v714_v55 = vadd.f32 %v5157_v44, %v692_v46 }
 0x1df   : > { %v723_v62 = vpack.c.bf16 %v715_v47, %v714_v55 }
 0x1e1   : > { %3497 = vmatmul.mubr.msk.bf16.gmra.mxu0 %vm462_vm0, %v720_v53  ;;  %3513 = vmatmul.mubr.msk.bf16.gmra.mxu1 %vm462_vm0, %v720_v53 }
 0x1e2   : > { %878 = vmatprep.mubr.bf16.mxu0 %v4702_v16  ;;  %1055 = vmatprep.mubr.bf16.mxu1 %v4702_v16 }
 0x1e9   : > { %3498 = vmatmul.mubr.msk.bf16.gmra.mxu0 %vm462_vm0, %v721_v22  ;;  %3514 = vmatmul.mubr.msk.bf16.gmra.mxu1 %vm462_vm0, %v721_v22 }
 0x1ea   : > { %888 = vmatprep.mubr.bf16.mxu0 %v4702_v16  ;;  %1065 = vmatprep.mubr.bf16.mxu1 %v4702_v16 }
 0x1f1   : > { %3499 = vmatmul.mubr.msk.bf16.gmra.mxu0 %vm462_vm0, %v722_v63  ;;  %3515 = vmatmul.mubr.msk.bf16.gmra.mxu1 %vm462_vm0, %v722_v63 }
 0x1f2   : > { %898 = vmatprep.mubr.bf16.mxu0 %v4702_v16  ;;  %1075 = vmatprep.mubr.bf16.mxu1 %v4702_v16 }
 0x1f9   : > { %3500 = vmatmul.mubr.msk.bf16.gmra.mxu0 %vm462_vm0, %v723_v62  ;;  %3516 = vmatmul.mubr.msk.bf16.gmra.mxu1 %vm462_vm0, %v723_v62 }
 0x1fa   : > { %1182 = vmatprep.mubr.bf16.mxu0 %v4702_v16 }
 0x201   : > { %3525 = vmatmul.mubr.msk.bf16.vlgmr.msra.gmra.mxu0 %vm462_vm0, %v5164_v11 }
 0x202   : > { %1192 = vmatprep.mubr.bf16.mxu0 %v4702_v16 }
 0x209   : > { %3526 = vmatmul.mubr.msk.bf16.gmra.mxu0 %vm462_vm0, %v5182_v39 }
 0x20a   : > { %1202 = vmatprep.mubr.bf16.mxu0 %v4702_v16 }
 0x211   : > { %3527 = vmatmul.mubr.msk.bf16.gmra.mxu0 %vm462_vm0, %v5199_v60 }
 0x212   : > { %1212 = vmatprep.mubr.bf16.mxu0 %v4702_v16 }
 0x219   : > { %3528 = vmatmul.mubr.msk.bf16.gmra.mxu0 %vm462_vm0, %v719_v10 }
 0x21a   : > { %1222 = vmatprep.mubr.bf16.mxu0 %v4702_v16 }
 0x221   : > { %3529 = vmatmul.mubr.msk.bf16.gmra.mxu0 %vm462_vm0, %v720_v53 }
 0x222   : > { %1232 = vmatprep.mubr.bf16.mxu0 %v4702_v16 }
 0x229   : > { %3530 = vmatmul.mubr.msk.bf16.gmra.mxu0 %vm462_vm0, %v721_v22 }
 0x22a   : > { %1242 = vmatprep.mubr.bf16.mxu0 %v4702_v16 }
 0x231   : > { %3531 = vmatmul.mubr.msk.bf16.gmra.mxu0 %vm462_vm0, %v722_v63 }
 0x232   : > { %1252 = vmatprep.mubr.bf16.mxu0 %v4702_v16 }
 0x239   : > { %3532 = vmatmul.mubr.msk.bf16.gmra.mxu0 %vm462_vm0, %v723_v62 }
 0x281   : > { %v830_v33 = vpop.f32.mrf.mxu0  ;;  %v1007_v56 = vpop.f32.mrf.mxu1 }
 0x283   : > { %v832_v44 = vpop.f32.mrf.mxu0  ;;  %v1009_v11 = vpop.f32.mrf.mxu1 }
 0x285   : > { %v834_v39 = vpop.f32.mrf.mxu0  ;;  %v1011_v48 = vpop.f32.mrf.mxu1 }
 0x286   : > { %v5272_v49 = vpack.c.bf16 %v834_v39, %v830_v33  ;;  %v5274_v50 = vpack.c.bf16 %v1011_v48, %v1007_v56 }
 0x287   : > { %v836_v51 = vpop.f32.mrf.mxu0  ;;  %v1013_v32 = vpop.f32.mrf.mxu1 }
 0x288   : > { %v5276_v54 = vpack.c.bf16 %v836_v51, %v832_v44  ;;  %v5278_v57 = vpack.c.bf16 %v1013_v32, %v1009_v11  ;;  %3734 = vmatprep.mubr.msk.bf16.mxu1 %vm462_vm0, %v5272_v49 }
 0x289   : > { %v5282_v16 = vpop.f32.mrf.mxu0  ;;  %v5284_v58 = vpop.f32.mrf.mxu1 }
 0x28a   : > { %6721 = vst [vmem:[#allocation26_spill] sm:$0xff] %v5276_v54  ;;  %6722 = vst [vmem:[#allocation27_spill] sm:$0xff] %v5278_v57 }
 0x28b   : > { %v842_v59 = vpop.f32.mrf.mxu0  ;;  %v1019_v60 = vpop.f32.mrf.mxu1 }
 0x28d   : > { %v5286_v61 = vpop.f32.mrf.mxu0  ;;  %v5288_v36 = vpop.f32.mrf.mxu1 }
 0x28f   : > { %v846_v37 = vpop.f32.mrf.mxu0  ;;  %v1023_v0 = vpop.f32.mrf.mxu1 }
 0x290   : > { %v5290_v9 = vpack.c.bf16 %v846_v37, %v842_v59  ;;  %v5292_v1 = vpack.c.bf16 %v1023_v0, %v1019_v60 }
 0x291   : > { %v5294_v2 = vpop.f32.mrf.mxu0  ;;  %v5296_v8 = vpop.f32.mrf.mxu1 }
 0x292   : > { %6723 = vst [vmem:[#allocation28_spill] sm:$0xff] %v5292_v1 }
 0x293   : > { %v852_v3 = vpop.f32.mrf.mxu0  ;;  %v1029_v4 = vpop.f32.mrf.mxu1 }
 0x295   : > { %v5298_v5 = vpop.f32.mrf.mxu0  ;;  %v5300_v52 = vpop.f32.mrf.mxu1 }
 0x297   : > { %v856_v6 = vpop.f32.mrf.mxu0  ;;  %v1033_v7 = vpop.f32.mrf.mxu1 }
 0x298   : > { %v5302_v10 = vpack.c.bf16 %v856_v6, %v852_v3  ;;  %v5304_v12 = vpack.c.bf16 %v1033_v7, %v1029_v4 }
 0x299   : > { %v5306_v13 = vpop.f32.mrf.mxu0  ;;  %v1037_v14 = vpop.f32.mrf.mxu1 }
 0x29a   : > { %6724 = vst [vmem:[#allocation29_spill] sm:$0xff] %v5302_v10 }
 0x29b   : > { %v862_v15 = vpop.f32.mrf.mxu0  ;;  %v1039_v17 = vpop.f32.mrf.mxu1 }
 0x29d   : > { %v5308_v18 = vpop.f32.mrf.mxu0  ;;  %v1041_v19 = vpop.f32.mrf.mxu1 }
 0x29f   : > { %v866_v20 = vpop.f32.mrf.mxu0  ;;  %v1043_v45 = vpop.f32.mrf.mxu1 }
 0x2a0   : > { %v5310_v53 = vpack.c.bf16 %v866_v20, %v862_v15  ;;  %v5312_v21 = vpack.c.bf16 %v1043_v45, %v1039_v17 }
 0x2a1   : > { %v5314_v24 = vpop.f32.mrf.mxu0  ;;  %v1047_v25 = vpop.f32.mrf.mxu1 }
 0x2a3   : > { %v872_v26 = vpop.f32.mrf.mxu0  ;;  %v1049_v23 = vpop.f32.mrf.mxu1 }
 0x2a5   : > { %v5316_v27 = vpop.f32.mrf.mxu0  ;;  %v1051_v31 = vpop.f32.mrf.mxu1 }
 0x2a6   : > { %v1094_v7 = vpack.c.bf16 %v1051_v31, %v1047_v25 }
 0x2a7   : > { %v876_v30 = vpop.f32.mrf.mxu0  ;;  %v1053_v22 = vpop.f32.mrf.mxu1 }
 0x2a8   : > { %v5318_v34 = vpack.c.bf16 %v876_v30, %v872_v26  ;;  %v5320_v35 = vpack.c.bf16 %v1053_v22, %v1049_v23  ;;  %v5350_v23 = vpack.c.bf16 %v5300_v52, %v5296_v8  ;;  %v1092_v30 = vpack.c.bf16 %v1041_v19, %v1037_v14 }
 0x2a9   : > { %v5322_v38 = vpop.f32.mrf.mxu0  ;;  %v1057_v40 = vpop.f32.mrf.mxu1  ;;  %v5358_v22 = vpack.c.bf16 %v5288_v36, %v5284_v58  ;;  %v5369_v14 = vpack.c.bf16 %v5286_v61, %v5282_v16  ;;  %v5378_v19 = vpack.c.bf16 %v5298_v5, %v5294_v2  ;;  %v5393_v2 = vpack.c.bf16 %v5316_v27, %v5314_v24 }
 0x2aa   : > { %6725 = vst [vmem:[#allocation30_spill] sm:$0xff] %v5318_v34 }
 0x2ab   : > { %v882_v43 = vpop.f32.mrf.mxu0  ;;  %v1059_v41 = vpop.f32.mrf.mxu1 }
 0x2ad   : > { %v5324_v29 = vpop.f32.mrf.mxu0  ;;  %v1061_v42 = vpop.f32.mrf.mxu1 }
 0x2ae   : > { %v1096_v37 = vpack.c.bf16 %v1061_v42, %v1057_v40  ;;  %v5397_v5 = vpack.c.bf16 %v5324_v29, %v5322_v38 }
 0x2af   : > { %v886_v63 = vpop.f32.mrf.mxu0  ;;  %v1063_v28 = vpop.f32.mrf.mxu1 }
 0x2b0   : > { %v5326_v46 = vpack.c.bf16 %v886_v63, %v882_v43  ;;  %v5328_v47 = vpack.c.bf16 %v1063_v28, %v1059_v41  ;;  %v5382_v41 = vpack.c.bf16 %v5308_v18, %v5306_v13 }
 0x2b1   : > { %v5330_v55 = vpop.f32.mrf.mxu0  ;;  %v1067_v62 = vpop.f32.mrf.mxu1 }
 0x2b3   : > { %v892_v33 = vpop.f32.mrf.mxu0  ;;  %v5332_v56 = vpop.f32.mrf.mxu1 }
 0x2b5   : > { %v5334_v44 = vpop.f32.mrf.mxu0  ;;  %v1071_v11 = vpop.f32.mrf.mxu1 }
 0x2b6   : > { %v1098_v39 = vpack.c.bf16 %v1071_v11, %v1067_v62  ;;  %v5406_v63 = vpack.c.bf16 %v5334_v44, %v5330_v55  ;;  %v1316_v62 = vsel %vm462_vm0, %v1094_v7, 0 }
 0x2b7   : > { %v896_v48 = vpop.f32.mrf.mxu0  ;;  %v5336_v51 = vpop.f32.mrf.mxu1 }
 0x2b8   : > { %v5338_v32 = vpack.c.bf16 %v896_v48, %v892_v33  ;;  %1744 = vrot.lane.b32.xlu1 %v1098_v39, %s4703_s21  ;;  %v1322_v52 = vsel %vm462_vm0, %v1098_v39, 0  ;;  %v5419_v33 = vpack.c.bf16 %v5336_v51, %v5332_v56 }
 0x2b9   : > { %v900_v59 = vpop.f32.mrf.mxu0  ;;  %v1077_v60 = vpop.f32.mrf.mxu1 }
 0x2ba   : > { %6726 = vst [vmem:[#allocation31_spill] sm:$0xff] %v5338_v32 }
 0x2bb   : > { %v902_v0 = vpop.f32.mrf.mxu0  ;;  %v1079_v3 = vpop.f32.mrf.mxu1 }
 0x2bc   : > { %1742 = vrot.lane.b32.xlu1 %v1096_v37, %s4703_s21 }
 0x2bd   : > { %v904_v4 = vpop.f32.mrf.mxu0  ;;  %v1081_v6 = vpop.f32.mrf.mxu1 }
 0x2be   : > { %v1100_v15 = vpack.c.bf16 %v1081_v6, %v1077_v60  ;;  %v5408_v24 = vpack.c.bf16 %v904_v4, %v900_v59  ;;  %v1313_v60 = vsel %vm462_vm0, %v1092_v30, 0 }
 0x2bf   : > { %v906_v17 = vpop.f32.mrf.mxu0  ;;  %v1083_v27 = vpop.f32.mrf.mxu1 }
 0x2c0   : > { %v5342_v20 = vpack.c.bf16 %v906_v17, %v902_v0  ;;  %1740 = vrot.lane.b32.xlu1 %v1094_v7, %s4703_s21  ;;  %1746 = vrot.lane.b32.xlu0 %v1100_v15, %s4703_s21  ;;  %v1325_v45 = vsel %vm462_vm0, %v1100_v15, 0  ;;  %v5421_v55 = vpack.c.bf16 %v1083_v27, %v1079_v3 }
 0x2c1   : > { %3974 = vmatprep.subr.msk.bf16.mxu1 %vm462_vm0, %v1100_v15  ;;  %v1184_v26 = vpop.f32.mrf.mxu0 }
 0x2c2   : > { %3719 = vmatpush3.bf16.xpose.msra.mxu1 %v1325_v45  ;;  %v1310_v45 = vsel %vm462_vm0, %v5350_v23, 0 }
 0x2c3   : > { %3975 = vmatprep.subr.msk.bf16.mxu1 %vm462_vm0, %v1098_v39  ;;  %v1186_v25 = vpop.f32.mrf.mxu0 }
 0x2c4   : > { %1736 = vrot.lane.b32.xlu1 %v5350_v23, %s4703_s21  ;;  %1738 = vrot.lane.b32.xlu0 %v1092_v30, %s4703_s21 }
 0x2c5   : > { %v1188_v31 = vpop.f32.mrf.mxu0 }
 0x2c6   : > { %v5428_v39 = vpack.c.bf16 %v1188_v31, %v1184_v26 }
 0x2c7   : > { %v1190_v40 = vpop.f32.mrf.mxu0 }
 0x2c8   : > { %v5360_v43 = vpack.c.bf16 %v1190_v40, %v1186_v25  ;;  %1732 = vrot.lane.b32.xlu1 %v5274_v50, %s4703_s21  ;;  %1734 = vrot.lane.b32.xlu0 %v5358_v22, %s4703_s21 }
 0x2c9   : > { %v1194_v8 = vpop.f32.mrf.mxu0 }
 0x2ca   : > { %6727 = vst [vmem:[#allocation32_spill] sm:$0xff] %v5360_v43  ;;  %3721 = vmatpush3.bf16.xpose.msra.mxu1 %v1322_v52  ;;  %v1307_v52 = vsel %vm462_vm0, %v5358_v22, 0 }
 0x2cb   : > { %3976 = vmatprep.subr.msk.bf16.mxu1 %vm462_vm0, %v1096_v37  ;;  %v1196_v58 = vpop.f32.mrf.mxu0 }
 0x2cc   : > { %1710 = vrot.lane.b32.xlu1 %v5369_v14, %s4703_s21  ;;  %1708 = vrot.lane.b32.xlu0 %v5272_v49, %s4703_s21  ;;  %v1319_v49 = vsel %vm462_vm0, %v1096_v37, 0 }
 0x2cd   : > { %v1198_v36 = vpop.f32.mrf.mxu0 }
 0x2ce   : > { %v5430_v48 = vpack.c.bf16 %v1198_v36, %v1194_v8 }
 0x2cf   : > { %v1200_v16 = vpop.f32.mrf.mxu0 }
 0x2d0   : > { %v5384_v61 = vpack.c.bf16 %v1200_v16, %v1196_v58  ;;  %1714 = vrot.lane.b32.xlu1 %v5382_v41, %s4703_s21  ;;  %1712 = vrot.lane.b32.xlu0 %v5378_v19, %s4703_s21 }
 0x2d1   : > { %v1204_v42 = vpop.f32.mrf.mxu0 }
 0x2d2   : > { %6728 = vst [vmem:[#allocation33_spill] sm:$0xff] %v5384_v61  ;;  %3723 = vmatpush3.bf16.xpose.msra.mxu1 %v1319_v49 }
 0x2d3   : > { %3977 = vmatprep.subr.msk.bf16.mxu1 %vm462_vm0, %v1094_v7  ;;  %v1206_v13 = vpop.f32.mrf.mxu0 }
 0x2d4   : > { %1718 = vrot.lane.b32.xlu1 %v5397_v5, %s4703_s21  ;;  %1716 = vrot.lane.b32.xlu0 %v5393_v2, %s4703_s21 }
 0x2d5   : > { %v1208_v18 = vpop.f32.mrf.mxu0 }
 0x2d6   : > { %v1267_v37 = vpack.c.bf16 %v1208_v18, %v1204_v42 }
 0x2d7   : > { %v1210_v38 = vpop.f32.mrf.mxu0 }
 0x2d8   : > { %v5410_v29 = vpack.c.bf16 %v1210_v38, %v1206_v13  ;;  %1720 = vrot.lane.b32.xlu0 %v5406_v63, %s4703_s21  ;;  %1722 = vrot.lane.b32.xlu1 %v5408_v24, %s4703_s21  ;;  %v1304_v13 = vsel %vm462_vm0, %v5274_v50, 0 }
 0x2d9   : > { %v1214_v28 = vpop.f32.mrf.mxu0 }
 0x2da   : > { %6729 = vst [vmem:[#allocation34_spill] sm:$0xff] %v5410_v29  ;;  %3725 = vmatpush3.bf16.xpose.msra.mxu1 %v1316_v62 }
 0x2db   : > { %3978 = vmatprep.subr.msk.bf16.mxu1 %vm462_vm0, %v1092_v30  ;;  %v1216_v44 = vpop.f32.mrf.mxu0 }
 0x2dc   : > { %2660 = vrot.lane.b32.xlu0 %v5419_v33, %s4703_s21  ;;  %2662 = vrot.lane.b32.xlu1 %v5421_v55, %s4703_s21 }
 0x2dd   : > { %v1218_v11 = vpop.f32.mrf.mxu0 }
 0x2de   : > { %v1269_v4 = vpack.c.bf16 %v1218_v11, %v1214_v28 }
 0x2df   : > { %v1220_v59 = vpop.f32.mrf.mxu0 }
 0x2e0   : > { %v5432_v56 = vpack.c.bf16 %v1220_v59, %v1216_v44  ;;  %2037 = vrot.lane.b32.xlu0 %v5428_v39, %s4703_s21  ;;  %2039 = vrot.lane.b32.xlu1 %v5430_v48, %s4703_s21 }
 0x2e1   : > { %v1224_v51 = vpop.f32.mrf.mxu0 }
 0x2e2   : > { %3727 = vmatpush3.bf16.xpose.msra.mxu1 %v1313_v60 }
 0x2e3   : > { %3979 = vmatprep.subr.msk.bf16.mxu1 %vm462_vm0, %v5350_v23  ;;  %v1226_v0 = vpop.f32.mrf.mxu0 }
 0x2e4   : > { %2041 = vrot.lane.b32.xlu0 %v1267_v37, %s4703_s21 }
 0x2e5   : > { %v1228_v3 = vpop.f32.mrf.mxu0 }
 0x2e6   : > { %v1271_v6 = vpack.c.bf16 %v1228_v3, %v1224_v51 }
 0x2e7   : > { %v1230_v7 = vpop.f32.mrf.mxu0 }
 0x2e8   : > { %v5442_v15 = vpack.c.bf16 %v1230_v7, %v1226_v0  ;;  %2043 = vrot.lane.b32.xlu0 %v1269_v4, %s4703_s21  ;;  %2045 = vrot.lane.b32.xlu1 %v1271_v6, %s4703_s21 }
 0x2e9   : > { %v1234_v17 = vpop.f32.mrf.mxu0 }
 0x2ea   : > { %3729 = vmatpush3.bf16.xpose.msra.mxu1 %v1310_v45 }
 0x2eb   : > { %3980 = vmatprep.subr.msk.bf16.mxu1 %vm462_vm0, %v5358_v22  ;;  %v1236_v26 = vpop.f32.mrf.mxu0 }
 0x2ed   : > { %v1238_v30 = vpop.f32.mrf.mxu0 }
 0x2ee   : > { %v1273_v25 = vpack.c.bf16 %v1238_v30, %v1234_v17  ;;  %v2244_v30 = vsel %vm462_vm0, %v5421_v55, 0 }
 0x2ef   : > { %v1240_v31 = vpop.f32.mrf.mxu0 }
 0x2f0   : > { %v5450_v40 = vpack.c.bf16 %v1240_v31, %v1236_v26  ;;  %2047 = vrot.lane.b32.xlu0 %v1273_v25, %s4703_s21  ;;  %v2241_v31 = vsel %vm462_vm0, %v5419_v33, 0 }
 0x2f1   : > { %v1244_v8 = vpop.f32.mrf.mxu0 }
 0x2f2   : > { %3731 = vmatpush3.bf16.xpose.msra.mxu1 %v1307_v52 }
 0x2f3   : > { %3981 = vmatprep.subr.msk.bf16.mxu1 %vm462_vm0, %v5274_v50  ;;  %v1246_v23 = vpop.f32.mrf.mxu0 }
 0x2f5   : > { %v1248_v58 = vpop.f32.mrf.mxu0 }
 0x2f6   : > { %v1275_v36 = vpack.c.bf16 %v1248_v58, %v1244_v8  ;;  %v2229_v58 = vsel %vm462_vm0, %v5304_v12, 0 }
 0x2f7   : > { %v1250_v16 = vpop.f32.mrf.mxu0 }
 0x2f8   : > { %v5457_v42 = vpack.c.bf16 %v1250_v16, %v1246_v23  ;;  %2049 = vrot.lane.b32.xlu1 %v1275_v36, %s4703_s21  ;;  %v2232_v23 = vsel %vm462_vm0, %v5312_v21, 0  ;;  %v2223_v16 = vsel %vm462_vm0, %v5278_v57, 0 }
 0x2f9   : > { %v1254_v49 = vpop.f32.mrf.mxu0 }
 0x2fa   : > { %3733 = vmatpush3.bf16.xpose.msra.mxu1 %v1304_v13 }
 0x2fb   : > { %v5462_v18 = vpop.f32.mrf.mxu0 }
 0x2fd   : > { %v1258_v22 = vpop.f32.mrf.mxu0 }
 0x2fe   : > { %v1277_v27 = vpack.c.bf16 %v1258_v22, %v1254_v49  ;;  %v1424_v49 = vlaneseq }
 0x300   : > { %2051 = vrot.lane.b32.xlu0 %v1277_v27, %s4703_s21  ;;  %3750 = vmatprep.subr.bf16.mxu1 %v1277_v27  ;;  %v5560_v13 = vand.u32 127, %v1424_v49 }
 0x301   : > { %3735 = vmatmul.mubr.msk.bf16.vlgmr.msra.gmra.mxu1 %vm462_vm0, %v5369_v14 }
 0x302   : > { %3738 = vmatprep.mubr.msk.bf16.mxu1 %vm462_vm0, %v5378_v19  ;;  %3751 = vmatpush3.bf16.msra.mxu1 %v1277_v27  ;;  %vm1426_vm1 = vcmp.lt.s32.totalorder %v5560_v13, 77 }
 0x303   : > { %3752 = vmatprep.subr.bf16.mxu1 %v1275_v36 }
 0x306   : > { %3753 = vmatpush3.bf16.msra.mxu1 %v1275_v36  ;;  %v2226_v36 = vsel %vm462_vm0, %v5292_v1, 0 }
 0x307   : > { %3754 = vmatprep.subr.bf16.mxu1 %v1273_v25 }
 0x309   : > { %3739 = vmatmul.mubr.msk.bf16.gmra.mxu1 %vm462_vm0, %v5382_v41 }
 0x30a   : > { %3742 = vmatprep.mubr.msk.bf16.mxu1 %vm462_vm0, %v5393_v2  ;;  %3755 = vmatpush3.bf16.msra.mxu1 %v1273_v25 }
 0x30b   : > { %3756 = vmatprep.subr.bf16.mxu1 %v1271_v6 }
 0x30e   : > { %3757 = vmatpush3.bf16.msra.mxu1 %v1271_v6 }
 0x30f   : > { %3758 = vmatprep.subr.bf16.mxu1 %v1269_v4 }
 0x311   : > { %3743 = vmatmul.mubr.msk.bf16.gmra.mxu1 %vm462_vm0, %v5397_v5 }
 0x312   : > { %3746 = vmatprep.mubr.msk.bf16.mxu1 %vm462_vm0, %v5406_v63  ;;  %3759 = vmatpush3.bf16.msra.mxu1 %v1269_v4 }
 0x313   : > { %3760 = vmatprep.subr.bf16.mxu1 %v1267_v37 }
 0x316   : > { %3761 = vmatpush3.bf16.msra.mxu1 %v1267_v37 }
 0x317   : > { %3762 = vmatprep.subr.bf16.mxu1 %v5430_v48 }
 0x319   : > { %3747 = vmatmul.mubr.msk.bf16.gmra.mxu1 %vm462_vm0, %v5408_v24 }
 0x31a   : > { %3763 = vmatpush3.bf16.msra.mxu1 %v5430_v48 }
 0x31b   : > { %3764 = vmatprep.subr.bf16.mxu1 %v5428_v39 }
 0x31e   : > { %3765 = vmatpush3.bf16.msra.mxu1 %v5428_v39 }
 0x32a   : > { %v1745_v19 = vpop.permute.xlu1 %1744 }
 0x32b   : > { %v1791_v5 = vsel %vm462_vm0, %v1745_v19, 0 }
 0x32e   : > { %v1743_v63 = vpop.permute.xlu1 %1742 }
 0x32f   : > { %v1788_v38 = vsel %vm462_vm0, %v1743_v63, 0 }
 0x332   : > { %v1747_v50 = vpop.permute.xlu0 %1746  ;;  %v1741_v28 = vpop.permute.xlu1 %1740 }
 0x333   : > { %3982 = vmatprep.subr.msk.bf16.mxu0 %vm462_vm0, %v1747_v50  ;;  %v1794_v14 = vsel %vm462_vm0, %v1747_v50, 0  ;;  %v1785_v44 = vsel %vm462_vm0, %v1741_v28, 0 }
 0x334   : > { %3783 = vmatpush3.bf16.xpose.msra.mxu0 %v1794_v14 }
 0x335   : > { %3983 = vmatprep.subr.msk.bf16.mxu0 %vm462_vm0, %v1745_v19 }
 0x336   : > { %v1739_v41 = vpop.permute.xlu0 %1738  ;;  %v1737_v59 = vpop.permute.xlu1 %1736 }
 0x337   : > { %v1782_v48 = vsel %vm462_vm0, %v1739_v41, 0  ;;  %v1779_v60 = vsel %vm462_vm0, %v1737_v59, 0 }
 0x33a   : > { %v1735_v2 = vpop.permute.xlu0 %1734  ;;  %v1733_v3 = vpop.permute.xlu1 %1732 }
 0x33b   : > { %v1776_v0 = vsel %vm462_vm0, %v1735_v2, 0  ;;  %v1773_v7 = vsel %vm462_vm0, %v1733_v3, 0 }
 0x33c   : > { %3785 = vmatpush3.bf16.xpose.msra.mxu0 %v1791_v5 }
 0x33d   : > { %3984 = vmatprep.subr.msk.bf16.mxu0 %vm462_vm0, %v1743_v63 }
 0x33e   : > { %v1709_v24 = vpop.permute.xlu0 %1708  ;;  %v1711_v45 = vpop.permute.xlu1 %1710 }
 0x33f   : > { %3798 = vmatprep.mubr.msk.bf16.mxu0 %vm462_vm0, %v1709_v24 }
 0x342   : > { %v1713_v62 = vpop.permute.xlu0 %1712  ;;  %v1715_v25 = vpop.permute.xlu1 %1714 }
 0x344   : > { %3787 = vmatpush3.bf16.xpose.msra.mxu0 %v1788_v38 }
 0x345   : > { %3985 = vmatprep.subr.msk.bf16.mxu0 %vm462_vm0, %v1741_v28 }
 0x346   : > { %v1717_v11 = vpop.permute.xlu0 %1716  ;;  %v1719_v8 = vpop.permute.xlu1 %1718 }
 0x34a   : > { %v1721_v39 = vpop.permute.xlu0 %1720  ;;  %v1723_v52 = vpop.permute.xlu1 %1722 }
 0x34c   : > { %3789 = vmatpush3.bf16.xpose.msra.mxu0 %v1785_v44 }
 0x34d   : > { %3986 = vmatprep.subr.msk.bf16.mxu0 %vm462_vm0, %v1739_v41 }
 0x34e   : > { %v5495_v51 = vpop.permute.xlu0 %2660 }
 0x34f   : > { %6730 = vst [vmem:[#allocation35_spill] sm:$0xff] %v5495_v51 }
 0x352   : > { %v5499_v37 = vpop.permute.xlu0 %2037 }
 0x354   : > { %3791 = vmatpush3.bf16.xpose.msra.mxu0 %v1782_v48 }
 0x355   : > { %3987 = vmatprep.subr.msk.bf16.mxu0 %vm462_vm0, %v1737_v59 }
 0x356   : > { %v5502_v4 = vpop.permute.xlu0 %2041 }
 0x35a   : > { %v5505_v6 = vpop.permute.xlu0 %2043 }
 0x35c   : > { %3793 = vmatpush3.bf16.xpose.msra.mxu0 %v1779_v60 }
 0x35d   : > { %3988 = vmatprep.subr.msk.bf16.mxu0 %vm462_vm0, %v1735_v2 }
 0x362   : > { %v5510_v17 = vpop.permute.xlu0 %2047 }
 0x364   : > { %3795 = vmatpush3.bf16.xpose.msra.mxu0 %v1776_v0 }
 0x365   : > { %3989 = vmatprep.subr.msk.bf16.mxu0 %vm462_vm0, %v1733_v3 }
 0x36c   : > { %3797 = vmatpush3.bf16.xpose.msra.mxu0 %v1773_v7 }
 0x36d   : > { %3990 = vmatprep.subr.msk.bf16.mxu0 %vm462_vm0, %v5421_v55  ;;  %v2238_v55 = vsel %vm462_vm0, %v5328_v47, 0 }
 0x372   : > { %v5512_v26 = vpop.permute.xlu0 %2051 }
 0x373   : > { %3799 = vmatmul.mubr.msk.bf16.vlgmr.msra.gmra.mxu0 %vm462_vm0, %v1711_v45  ;;  %3814 = vmatprep.subr.bf16.mxu1 %v5512_v26 }
 0x374   : > { %3802 = vmatprep.mubr.msk.bf16.mxu0 %vm462_vm0, %v1713_v62  ;;  %3847 = vmatpush3.bf16.xpose.msra.mxu0 %v2244_v30 }
 0x375   : > { %3991 = vmatprep.subr.msk.bf16.mxu0 %vm462_vm0, %v5419_v33  ;;  %v2235_v33 = vsel %vm462_vm0, %v5320_v35, 0 }
 0x37b   : > { %3803 = vmatmul.mubr.msk.bf16.gmra.mxu0 %vm462_vm0, %v1715_v25 }
 0x37c   : > { %3806 = vmatprep.mubr.msk.bf16.mxu0 %vm462_vm0, %v1717_v11  ;;  %3849 = vmatpush3.bf16.xpose.msra.mxu0 %v2241_v31 }
 0x37d   : > { %3992 = vmatprep.subr.msk.bf16.mxu0 %vm462_vm0, %v5328_v47 }
 0x383   : > { %3807 = vmatmul.mubr.msk.bf16.gmra.mxu0 %vm462_vm0, %v1719_v8 }
 0x384   : > { %3810 = vmatprep.mubr.msk.bf16.mxu0 %vm462_vm0, %v1721_v39  ;;  %3851 = vmatpush3.bf16.xpose.msra.mxu0 %v2238_v55 }
 0x385   : > { %3993 = vmatprep.subr.msk.bf16.mxu0 %vm462_vm0, %v5320_v35 }
 0x38b   : > { %3811 = vmatmul.mubr.msk.bf16.gmra.mxu0 %vm462_vm0, %v1723_v52 }
 0x38c   : > { %3853 = vmatpush3.bf16.xpose.msra.mxu0 %v2235_v33  ;;  %3862 = vmatprep.mubr.msk.bf16.mxu0 %vm462_vm0, %v5276_v54 }
 0x38d   : > { %3994 = vmatprep.subr.msk.bf16.mxu0 %vm462_vm0, %v5312_v21 }
 0x394   : > { %3855 = vmatpush3.bf16.xpose.msra.mxu0 %v2232_v23 }
 0x395   : > { %3995 = vmatprep.subr.msk.bf16.mxu0 %vm462_vm0, %v5304_v12 }
 0x39c   : > { %3857 = vmatpush3.bf16.xpose.msra.mxu0 %v2229_v58 }
 0x39d   : > { %3996 = vmatprep.subr.msk.bf16.mxu0 %vm462_vm0, %v5292_v1 }
 0x3a4   : > { %3859 = vmatpush3.bf16.xpose.msra.mxu0 %v2226_v36  ;;  %v5651_v36 = vpop.f32.mrf.mxu0 }
 0x3a5   : > { %3997 = vmatprep.subr.msk.bf16.mxu0 %vm462_vm0, %v5278_v57 }
 0x3ac   : > { %3861 = vmatpush3.bf16.xpose.msra.mxu0 %v2223_v16 }
 0x3b3   : > { %3863 = vmatmul.mubr.msk.bf16.vlgmr.msra.gmra.mxu0 %vm462_vm0, %v5290_v9 }
 0x3b4   : > { %3866 = vmatprep.mubr.msk.bf16.mxu0 %vm462_vm0, %v5302_v10 }
 0x3bb   : > { %3867 = vmatmul.mubr.msk.bf16.gmra.mxu0 %vm462_vm0, %v5310_v53 }
 0x3bc   : > { %3870 = vmatprep.mubr.msk.bf16.mxu0 %vm462_vm0, %v5318_v34 }
 0x3c1   : > { %v3736_v22 = vpop.f32.mrf.mxu1 }
 0x3c2   : > { %v5567_v27 = vsel %vm1426_vm1, %v3736_v22, -1e+30 }
 0x3c3   : > { %v1361_v50 = vpop.f32.mrf.mxu1  ;;  %1447 = vmax.xlane.f32.xlu0 %v5567_v27  ;;  %3871 = vmatmul.mubr.msk.bf16.gmra.mxu0 %vm462_vm0, %v5326_v46 }
 0x3c4   : > { %3874 = vmatprep.mubr.msk.bf16.mxu0 %vm462_vm0, %v5338_v32  ;;  %v5576_v19 = vsel %vm1426_vm1, %v1361_v50, -1e+30 }
 0x3c5   : > { %v3737_v14 = vpop.f32.mrf.mxu1 }
 0x3c6   : > { %v5586_v63 = vsel %vm1426_vm1, %v3737_v14, -1e+30 }
 0x3c7   : > { %v1364_v41 = vpop.f32.mrf.mxu1  ;;  %1443 = vmax.xlane.f32.xlu0 %v5576_v19 }
 0x3c8   : > { %v5581_v2 = vsel %vm1426_vm1, %v1364_v41, -1e+30 }
 0x3c9   : > { %v3740_v5 = vpop.f32.mrf.mxu1  ;;  %1445 = vmax.xlane.f32.xlu1 %v5581_v2 }
 0x3ca   : > { %v5597_v62 = vsel %vm1426_vm1, %v3740_v5, -1e+30 }
 0x3cb   : > { %v1377_v24 = vpop.f32.mrf.mxu1  ;;  %1449 = vmax.xlane.f32.xlu0 %v5586_v63  ;;  %3875 = vmatmul.mubr.msk.bf16.gmra.mxu0 %vm462_vm0, %v5342_v20 }
 0x3cc   : > { %v5607_v48 = vsel %vm1426_vm1, %v1377_v24, -1e+30 }
 0x3cd   : > { %v3741_v38 = vpop.f32.mrf.mxu1 }
 0x3ce   : > { %v5593_v28 = vsel %vm1426_vm1, %v3741_v38, -1e+30 }
 0x3cf   : > { %v1380_v44 = vpop.f32.mrf.mxu1  ;;  %1457 = vmax.xlane.f32.xlu1 %v5593_v28  ;;  %1455 = vmax.xlane.f32.xlu0 %v5597_v62 }
 0x3d0   : > { %v5603_v39 = vsel %vm1426_vm1, %v1380_v44, -1e+30 }
 0x3d1   : > { %v3744_v11 = vpop.f32.mrf.mxu1 }
 0x3d2   : > { %v5617_v3 = vsel %vm1426_vm1, %v3744_v11, -1e+30 }
 0x3d3   : > { %v1393_v59 = vpop.f32.mrf.mxu1  ;;  %1453 = vmax.xlane.f32.xlu1 %v5603_v39  ;;  %1451 = vmax.xlane.f32.xlu0 %v5607_v48 }
 0x3d4   : > { %v5627_v25 = vsel %vm1426_vm1, %v1393_v59, -1e+30 }
 0x3d5   : > { %v3745_v60 = vpop.f32.mrf.mxu1 }
 0x3d6   : > { %v5613_v0 = vsel %vm1426_vm1, %v3745_v60, -1e+30  ;;  %v5678_v60 = vpop.permute.xlu1 %2662 }
 0x3d7   : > { %v1396_v7 = vpop.f32.mrf.mxu1  ;;  %1465 = vmax.xlane.f32.xlu1 %v5613_v0  ;;  %1463 = vmax.xlane.f32.xlu0 %v5617_v3  ;;  %6731 = vst [vmem:[#allocation36_spill] sm:$0xff] %v5678_v60 }
 0x3d8   : > { %v5623_v30 = vsel %vm1426_vm1, %v1396_v7, -1e+30 }
 0x3d9   : > { %v3748_v45 = vpop.f32.mrf.mxu1 }
 0x3da   : > { %v5637_v52 = vsel %vm1426_vm1, %v3748_v45, -1e+30 }
 0x3db   : > { %v1409_v31 = vpop.f32.mrf.mxu1  ;;  %1461 = vmax.xlane.f32.xlu1 %v5623_v30  ;;  %1459 = vmax.xlane.f32.xlu0 %v5627_v25 }
 0x3dc   : > { %v5647_v58 = vsel %vm1426_vm1, %v1409_v31, -1e+30 }
 0x3dd   : > { %v3749_v8 = vpop.f32.mrf.mxu1 }
 0x3de   : > { %v5633_v55 = vsel %vm1426_vm1, %v3749_v8, -1e+30 }
 0x3df   : > { %v1412_v33 = vpop.f32.mrf.mxu1  ;;  %1473 = vmax.xlane.f32.xlu1 %v5633_v55  ;;  %1471 = vmax.xlane.f32.xlu0 %v5637_v52 }
 0x3e0   : > { %v5643_v23 = vsel %vm1426_vm1, %v1412_v33, -1e+30 }
 0x3e3   : > { %1469 = vmax.xlane.f32.xlu1 %v5643_v23  ;;  %1467 = vmax.xlane.f32.xlu0 %v5647_v58 }
 0x433   : > { %v3800_v16 = vpop.f32.mrf.mxu0 }
 0x434   : > { %v5655_v49 = vsel %vm1426_vm1, %v3800_v16, -1e+30  ;;  %v5690_v16 = vpop.permute.xlu1 %2039 }
 0x435   : > { %1913 = vmax.xlane.f32.xlu1 %v5655_v49  ;;  %v1830_v22 = vpop.f32.mrf.mxu0 }
 0x436   : > { %v5660_v50 = vsel %vm1426_vm1, %v1830_v22, -1e+30 }
 0x437   : > { %1909 = vmax.xlane.f32.xlu0 %v5660_v50  ;;  %v3801_v14 = vpop.f32.mrf.mxu0 }
 0x438   : > { %v5665_v41 = vsel %vm1426_vm1, %v3801_v14, -1e+30 }
 0x439   : > { %1915 = vmax.xlane.f32.xlu1 %v5665_v41  ;;  %v1833_v5 = vpop.f32.mrf.mxu0 }
 0x43a   : > { %v5670_v38 = vsel %vm1426_vm1, %v1833_v5, -1e+30 }
 0x43b   : > { %v3804_v24 = vpop.f32.mrf.mxu0 }
 0x43c   : > { %v5682_v7 = vsel %vm1426_vm1, %v3804_v24, -1e+30 }
 0x43d   : > { %1911 = vmax.xlane.f32.xlu1 %v5670_v38  ;;  %v1846_v44 = vpop.f32.mrf.mxu0 }
 0x43e   : > { %v5675_v11 = vsel %vm1426_vm1, %v1846_v44, -1e+30  ;;  %v5702_v44 = vpop.permute.xlu1 %2045 }
 0x43f   : > { %1917 = vmax.xlane.f32.xlu0 %v5675_v11  ;;  %v3805_v59 = vpop.f32.mrf.mxu0 }
 0x440   : > { %v5687_v8 = vsel %vm1426_vm1, %v3805_v59, -1e+30 }
 0x441   : > { %1921 = vmax.xlane.f32.xlu1 %v5682_v7  ;;  %v1849_v45 = vpop.f32.mrf.mxu0 }
 0x442   : > { %v5699_v5 = vsel %vm1426_vm1, %v1849_v45, -1e+30  ;;  %v5709_v34 = vpop.permute.xlu1 %2049 }
 0x443   : > { %v3808_v31 = vpop.f32.mrf.mxu0 }
 0x444   : > { %v5706_v32 = vsel %vm1426_vm1, %v3808_v31, -1e+30 }
 0x445   : > { %1923 = vmax.xlane.f32.xlu1 %v5687_v8  ;;  %v1862_v33 = vpop.f32.mrf.mxu0 }
 0x446   : > { %v5694_v22 = vsel %vm1426_vm1, %v1862_v33, -1e+30 }
 0x447   : > { %1925 = vmax.xlane.f32.xlu0 %v5694_v22  ;;  %v3809_v14 = vpop.f32.mrf.mxu0 }
 0x448   : > { %v5714_v43 = vsel %vm1426_vm1, %v3809_v14, -1e+30 }
 0x449   : > { %1919 = vmax.xlane.f32.xlu1 %v5699_v5  ;;  %v1865_v24 = vpop.f32.mrf.mxu0 }
 0x44a   : > { %v5726_v14 = vsel %vm1426_vm1, %v1865_v24, -1e+30 }
 0x44b   : > { %v3812_v59 = vpop.f32.mrf.mxu0 }
 0x44c   : > { %v1448_v51 = vpop.xlane.xlu0 %1447  ;;  %v5737_v24 = vsel %vm1426_vm1, %v3812_v59, -1e+30 }
 0x44d   : > { %1929 = vmax.xlane.f32.xlu1 %v5706_v32  ;;  %v1878_v33 = vpop.f32.mrf.mxu0  ;;  %v1477_v45 = vsub.f32 %v5567_v27, %v1448_v51 }
 0x44f   : > { %v3813_v60 = vpop.f32.mrf.mxu0  ;;  %v1495_v27 = vmul.f32 1.442695, %v1477_v45 }
 0x450   : > { %v1444_v10 = vpop.xlane.xlu0 %1443  ;;  %v5718_v54 = vsel %vm1426_vm1, %v3813_v60, -1e+30 }
 0x451   : > { %v1475_v31 = vsub.f32 %v5576_v19, %v1444_v10  ;;  %1931 = vmax.xlane.f32.xlu1 %v5714_v43  ;;  %1939 = vmax.xlane.f32.xlu0 %v5718_v54  ;;  %v1881_v61 = vpop.f32.mrf.mxu0 }
 0x452   : > { %v1446_v57 = vpop.xlane.xlu1 %1445  ;;  %v5730_v60 = vsel %vm1426_vm1, %v1881_v61, -1e+30 }
 0x453   : > { %v1491_v29 = vmul.f32 1.442695, %v1475_v31  ;;  %v1476_v51 = vsub.f32 %v5581_v2, %v1446_v57 }
 0x454   : > { %v1450_v1 = vpop.xlane.xlu0 %1449 }
 0x455   : > { %v1493_v10 = vmul.f32 1.442695, %v1476_v51  ;;  %v1478_v19 = vsub.f32 %v5586_v63, %v1450_v1  ;;  %1927 = vmax.xlane.f32.xlu1 %v5726_v14  ;;  %1935 = vmax.xlane.f32.xlu0 %v5730_v60  ;;  %4221 = vpow2.f32 %v1491_v29 }
 0x457   : > { %4223 = vpow2.f32 %v1493_v10  ;;  %v1497_v57 = vmul.f32 1.442695, %v1478_v19 }
 0x458   : > { %4225 = vpow2.f32 %v1495_v27  ;;  %v1458_v2 = vpop.xlane.xlu1 %1457  ;;  %v1456_v45 = vpop.xlane.xlu0 %1455  ;;  %v5744_v27 = vsel %vm1426_vm1, %v1878_v33, -1e+30 }
 0x459   : > { %4227 = vpow2.f32 %v1497_v57  ;;  %v1482_v61 = vsub.f32 %v5593_v28, %v1458_v2  ;;  %v1481_v31 = vsub.f32 %v5597_v62, %v1456_v45  ;;  %1937 = vmax.xlane.f32.xlu1 %v5737_v24 }
 0x45b   : > { %v1505_v1 = vmul.f32 1.442695, %v1482_v61  ;;  %v1503_v63 = vmul.f32 1.442695, %v1481_v31 }
 0x45c   : > { %v1454_v51 = vpop.xlane.xlu1 %1453  ;;  %v1452_v29 = vpop.xlane.xlu0 %1451 }
 0x45d   : > { %v1480_v10 = vsub.f32 %v5603_v39, %v1454_v51  ;;  %v1479_v59 = vsub.f32 %v5607_v48, %v1452_v29  ;;  %1933 = vmax.xlane.f32.xlu1 %v5744_v27  ;;  %4229 = vpow2.f32 %v1505_v1 }
 0x45e   : > { %4231 = vpow2.f32 %v1503_v63 }
 0x45f   : > { %v1501_v28 = vmul.f32 1.442695, %v1480_v10  ;;  %v1499_v19 = vmul.f32 1.442695, %v1479_v59 }
 0x460   : > { %v1466_v62 = vpop.xlane.xlu1 %1465  ;;  %v1464_v57 = vpop.xlane.xlu0 %1463 }
 0x461   : > { %4233 = vpow2.f32 %v1501_v28  ;;  %v1486_v2 = vsub.f32 %v5613_v0, %v1466_v62  ;;  %v1485_v45 = vsub.f32 %v5617_v3, %v1464_v57 }
 0x462   : > { %4235 = vpow2.f32 %v1499_v19  ;;  %v5751_v33 = vpop.eup %4221 }
 0x463   : > { %v1513_v61 = vmul.f32 1.442695, %v1486_v2  ;;  %v1511_v48 = vmul.f32 1.442695, %v1485_v45 }
 0x464   : > { %v5753_v39 = vpop.eup %4223  ;;  %v1462_v31 = vpop.xlane.xlu1 %1461 }
 0x465   : > { %v1460_v51 = vpop.xlane.xlu0 %1459  ;;  %v5755_v1 = vpop.eup %4225  ;;  %v1484_v63 = vsub.f32 %v5623_v30, %v1462_v31  ;;  %v1555_v0 = vpack.c.bf16 %v5753_v39, %v5751_v33  ;;  %4237 = vpow2.f32 %v1513_v61 }
 0x466   : > { %v1483_v29 = vsub.f32 %v5627_v25, %v1460_v51  ;;  %v5761_v10 = vpop.eup %4227  ;;  %4239 = vpow2.f32 %v1511_v48 }
 0x467   : > { %v1509_v3 = vmul.f32 1.442695, %v1484_v63  ;;  %3766 = vmatprep.mubr.bf16.mxu1 %v1555_v0  ;;  %v1556_v28 = vpack.c.bf16 %v5761_v10, %v5755_v1 }
 0x468   : > { %v1507_v59 = vmul.f32 1.442695, %v1483_v29  ;;  %v1474_v19 = vpop.xlane.xlu1 %1473 }
 0x469   : > { %v1472_v62 = vpop.xlane.xlu0 %1471  ;;  %4241 = vpow2.f32 %v1509_v3  ;;  %v1490_v30 = vsub.f32 %v5633_v55, %v1474_v19  ;;  %3767 = vmatmul.mubr.bf16.vlgmr.msra.gmra.mxu1 %v1556_v28 }
 0x46a   : > { %v1489_v25 = vsub.f32 %v5637_v52, %v1472_v62  ;;  %4243 = vpow2.f32 %v1507_v59  ;;  %3815 = vmatpush3.bf16.msra.mxu1 %v5512_v26  ;;  %v5771_v2 = vpop.eup %4229 }
 0x46b   : > { %v1521_v57 = vmul.f32 1.442695, %v1490_v30  ;;  %3816 = vmatprep.subr.bf16.mxu1 %v5709_v34  ;;  %2656 = vrot.lane.b32.xlu0 %v5320_v35, %s4703_s21  ;;  %v5773_v31 = vpop.eup %4231 }
 0x46c   : > { %v1519_v45 = vmul.f32 1.442695, %v1489_v25  ;;  %v1470_v61 = vpop.xlane.xlu1 %1469 }
 0x46d   : > { %v1468_v48 = vpop.xlane.xlu0 %1467  ;;  %v1488_v55 = vsub.f32 %v5643_v23, %v1470_v61  ;;  %4245 = vpow2.f32 %v1521_v57  ;;  %v1558_v23 = vpack.c.bf16 %v5771_v2, %v5773_v31 }
 0x46e   : > { %v1487_v52 = vsub.f32 %v5647_v58, %v1468_v48  ;;  %v5777_v51 = vpop.eup %4233  ;;  %3817 = vmatpush3.bf16.msra.mxu1 %v5709_v34  ;;  %4247 = vpow2.f32 %v1519_v45 }
 0x46f   : > { %v5780_v26 = vpop.eup %4235  ;;  %v1517_v63 = vmul.f32 1.442695, %v1488_v55  ;;  %3818 = vmatprep.subr.bf16.mxu1 %v5510_v17 }
 0x470   : > { %v1515_v35 = vmul.f32 1.442695, %v1487_v52  ;;  %v1557_v29 = vpack.c.bf16 %v5777_v51, %v5780_v26 }
 0x471   : > { %4249 = vpow2.f32 %v1517_v63 }
 0x472   : > { %4251 = vpow2.f32 %v1515_v35  ;;  %3770 = vmatprep.mubr.bf16.mxu1 %v1557_v29  ;;  %3819 = vmatpush3.bf16.msra.mxu1 %v5510_v17  ;;  %v5789_v58 = vpop.eup %4237 }
 0x473   : > { %3771 = vmatmul.mubr.bf16.gmra.mxu1 %v1558_v23  ;;  %3820 = vmatprep.subr.bf16.mxu1 %v5702_v44  ;;  %v3864_v34 = vpop.f32.mrf.mxu0  ;;  %6732 = vst [vmem:[#allocation37_spill] sm:$0xff] %v5789_v58  ;;  %v5795_v3 = vpop.eup %4239 }
 0x474   : > { %v5793_v0 = vsel %vm1426_vm1, %v3864_v34, -1e+30  ;;  %6733 = vst [vmem:[#allocation38_spill] sm:$0xff] %v5795_v3  ;;  %v1560_v25 = vpack.c.bf16 %v5789_v58, %v5795_v3 }
 0x475   : > { %2363 = vmax.xlane.f32.xlu1 %v5793_v0  ;;  %v2280_v59 = vpop.f32.mrf.mxu0 }
 0x476   : > { %v5798_v28 = vpop.eup %4241  ;;  %3821 = vmatpush3.bf16.msra.mxu1 %v5702_v44  ;;  %v5808_v30 = vsel %vm1426_vm1, %v2280_v59, -1e+30 }
 0x477   : > { %6734 = vst [vmem:[#allocation39_spill] sm:$0xff] %v5798_v28  ;;  %v5801_v17 = vpop.eup %4243  ;;  %3822 = vmatprep.subr.bf16.mxu1 %v5505_v6  ;;  %v3865_v19 = vpop.f32.mrf.mxu0 }
 0x478   : > { %6735 = vst [vmem:[#allocation40_spill] sm:$0xff] %v5801_v17  ;;  %v1559_v62 = vpack.c.bf16 %v5798_v28, %v5801_v17  ;;  %v5819_v61 = vsel %vm1426_vm1, %v3865_v19, -1e+30 }
 0x479   : > { %2359 = vmax.xlane.f32.xlu1 %v5808_v30  ;;  %v2283_v57 = vpop.f32.mrf.mxu0 }
 0x47a   : > { %3774 = vmatprep.mubr.bf16.mxu1 %v1559_v62  ;;  %3823 = vmatpush3.bf16.msra.mxu1 %v5505_v6  ;;  %v5815_v45 = vpop.eup %4245  ;;  %v5844_v34 = vsel %vm1426_vm1, %v2283_v57, -1e+30 }
 0x47b   : > { %3775 = vmatmul.mubr.bf16.gmra.mxu1 %v1560_v25  ;;  %3824 = vmatprep.subr.bf16.mxu1 %v5502_v4  ;;  %v3868_v44 = vpop.f32.mrf.mxu0  ;;  %6736 = vst [vmem:[#allocation41_spill] sm:$0xff] %v5815_v45  ;;  %v5821_v48 = vpop.eup %4247 }
 0x47c   : > { %6737 = vst [vmem:[#allocation42_spill] sm:$0xff] %v5821_v48  ;;  %v1562_v35 = vpack.c.bf16 %v5815_v45, %v5821_v48 }
 0x47d   : > { %2365 = vmax.xlane.f32.xlu1 %v5819_v61  ;;  %v2296_v52 = vpop.f32.mrf.mxu0 }
 0x47e   : > { %v5824_v55 = vpop.eup %4249  ;;  %3825 = vmatpush3.bf16.msra.mxu1 %v5502_v4  ;;  %v5838_v4 = vpack.c.bf16 %v5651_v36, %v5462_v18  ;;  %v6797_v13 = vld [vmem:[#allocation39_spill] sm:$0xff] }
 0x47f   : > { %6738 = vst [vmem:[#allocation43_spill] sm:$0xff] %v5824_v55  ;;  %v5827_v6 = vpop.eup %4251  ;;  %3826 = vmatprep.subr.bf16.mxu1 %v5690_v16  ;;  %v3869_v29 = vpop.f32.mrf.mxu0 }
 0x480   : > { %6739 = vst [vmem:[#allocation44_spill] sm:$0xff] %v5827_v6  ;;  %v1561_v63 = vpack.c.bf16 %v5824_v55, %v5827_v6  ;;  %v5856_v18 = vsel %vm1426_vm1, %v3869_v29, -1e+30 }
 0x481   : > { %v2299_v23 = vpop.f32.mrf.mxu0 }
 0x482   : > { %3778 = vmatprep.mubr.bf16.mxu1 %v1561_v63  ;;  %3827 = vmatpush3.bf16.msra.mxu1 %v5690_v16  ;;  %v5849_v16 = vsel %vm1426_vm1, %v3868_v44, -1e+30  ;;  %v5861_v36 = vsel %vm1426_vm1, %v2299_v23, -1e+30  ;;  %v5876_v44 = vsel %vm1426_vm1, %v2296_v52, -1e+30 }
 0x483   : > { %3779 = vmatmul.mubr.bf16.gmra.mxu1 %v1562_v35  ;;  %3828 = vmatprep.subr.bf16.mxu1 %v5499_v37  ;;  %v3872_v59 = vpop.f32.mrf.mxu0 }
 0x484   : > { %v5883_v63 = vsel %vm1426_vm1, %v3872_v59, -1e+30 }
 0x485   : > { %v2312_v19 = vpop.f32.mrf.mxu0 }
 0x486   : > { %3829 = vmatpush3.bf16.msra.mxu1 %v5499_v37  ;;  %v5888_v35 = vsel %vm1426_vm1, %v2312_v19, -1e+30 }
 0x487   : > { %3878 = vmatprep.subr.bf16.mxu1 %v5838_v4  ;;  %v3873_v37 = vpop.f32.mrf.mxu0 }
 0x488   : > { %v5893_v52 = vsel %vm1426_vm1, %v3873_v37, -1e+30 }
 0x489   : > { %v2315_v62 = vpop.f32.mrf.mxu0 }
 0x48a   : > { %2361 = vmax.xlane.f32.xlu0 %v5844_v34  ;;  %v5866_v25 = vsel %vm1426_vm1, %v2315_v62, -1e+30 }
 0x48e   : > { %2658 = vrot.lane.b32.xlu1 %v5328_v47, %s4703_s21  ;;  %2371 = vmax.xlane.f32.xlu0 %v5849_v16  ;;  %v3876_v47 = vpop.f32.mrf.mxu0 }
 0x48f   : > { %v5871_v57 = vsel %vm1426_vm1, %v3876_v47, -1e+30 }
 0x490   : > { %v2328_v29 = vpop.f32.mrf.mxu0 }
 0x491   : > { %v5898_v59 = vsel %vm1426_vm1, %v2328_v29, -1e+30 }
 0x492   : > { %2373 = vmax.xlane.f32.xlu0 %v5856_v18  ;;  %v3877_v28 = vpop.f32.mrf.mxu0 }
 0x496   : > { %2369 = vmax.xlane.f32.xlu0 %v5861_v36 }
 0x49a   : > { %2377 = vmax.xlane.f32.xlu0 %v5866_v25 }
 0x49e   : > { %2387 = vmax.xlane.f32.xlu0 %v5871_v57 }
 0x4b2   : > { %2367 = vmax.xlane.f32.xlu1 %v5876_v44 }
 0x4b4   : > { %2652 = vrot.lane.b32.xlu0 %v5304_v12, %s4703_s21 }
 0x4b6   : > { %2379 = vmax.xlane.f32.xlu1 %v5883_v63 }
 0x4ba   : > { %2375 = vmax.xlane.f32.xlu1 %v5888_v35 }
 0x4be   : > { %v1914_v23 = vpop.xlane.xlu1 %1913  ;;  %2381 = vmax.xlane.f32.xlu1 %v5893_v52 }
 0x4bf   : > { %v1943_v48 = vsub.f32 %v5655_v49, %v1914_v23 }
 0x4c0   : > { %v1910_v12 = vpop.xlane.xlu0 %1909 }
 0x4c1   : > { %v1941_v62 = vsub.f32 %v5660_v50, %v1910_v12  ;;  %v1961_v3 = vmul.f32 1.442695, %v1943_v48 }
 0x4c2   : > { %v1916_v47 = vpop.xlane.xlu1 %1915  ;;  %2383 = vmax.xlane.f32.xlu1 %v5898_v59 }
 0x4c3   : > { %v1944_v19 = vsub.f32 %v5665_v41, %v1916_v47  ;;  %v1957_v37 = vmul.f32 1.442695, %v1941_v62 }
 0x4c5   : > { %v1963_v45 = vmul.f32 1.442695, %v1944_v19  ;;  %4253 = vpow2.f32 %v1957_v37 }
 0x4c6   : > { %v1912_v6 = vpop.xlane.xlu1 %1911 }
 0x4c7   : > { %v1942_v55 = vsub.f32 %v5670_v38, %v1912_v6  ;;  %4255 = vpow2.f32 %v1963_v45  ;;  %v5910_v38 = vsel %vm1426_vm1, %v3877_v28, -1e+30  ;;  %v2331_v45 = vpop.f32.mrf.mxu0 }
 0x4c8   : > { %v1918_v29 = vpop.xlane.xlu0 %1917 }
 0x4c9   : > { %v1959_v58 = vmul.f32 1.442695, %v1942_v55  ;;  %v1945_v50 = vsub.f32 %v5675_v11, %v1918_v29 }
 0x4ca   : > { %v1922_v17 = vpop.xlane.xlu1 %1921 }
 0x4cb   : > { %4257 = vpow2.f32 %v1959_v58  ;;  %v1947_v49 = vsub.f32 %v5682_v7, %v1922_v17  ;;  %v1965_v23 = vmul.f32 1.442695, %v1945_v50  ;;  %v5920_v7 = vsel %vm1426_vm1, %v2331_v45, -1e+30 }
 0x4cc   : > { %4259 = vpow2.f32 %v1961_v3 }
 0x4cd   : > { %v1969_v11 = vmul.f32 1.442695, %v1947_v49  ;;  %4261 = vpow2.f32 %v1965_v23 }
 0x4ce   : > { %v1924_v12 = vpop.xlane.xlu1 %1923 }
 0x4cf   : > { %v1948_v41 = vsub.f32 %v5687_v8, %v1924_v12 }
 0x4d0   : > { %v1926_v3 = vpop.xlane.xlu0 %1925 }
 0x4d1   : > { %v1971_v48 = vmul.f32 1.442695, %v1948_v41  ;;  %v1949_v62 = vsub.f32 %v5694_v22, %v1926_v3 }
 0x4d2   : > { %v1920_v55 = vpop.xlane.xlu1 %1919  ;;  %v5916_v58 = vpop.eup %4253 }
 0x4d3   : > { %v1946_v6 = vsub.f32 %v5699_v5, %v1920_v55  ;;  %2654 = vrot.lane.b32.xlu1 %v5312_v21, %s4703_s21  ;;  %2389 = vmax.xlane.f32.xlu0 %v5910_v38  ;;  %4263 = vpow2.f32 %v1971_v48  ;;  %v1973_v12 = vmul.f32 1.442695, %v1949_v62 }
 0x4d4   : > { %v5922_v17 = vpop.eup %4255 }
 0x4d5   : > { %v1967_v8 = vmul.f32 1.442695, %v1946_v6 }
 0x4d6   : > { %v1930_v28 = vpop.xlane.xlu1 %1929 }
 0x4d7   : > { %4265 = vpow2.f32 %v1967_v8  ;;  %2626 = vrot.lane.b32.xlu1 %v5290_v9, %s4703_s21  ;;  %2385 = vmax.xlane.f32.xlu0 %v5920_v7  ;;  %v1951_v9 = vsub.f32 %v5706_v32, %v1930_v28 }
 0x4d8   : > { %v5927_v21 = vpop.eup %4257  ;;  %4267 = vpow2.f32 %v1969_v11 }
 0x4d9   : > { %v5929_v5 = vpop.eup %4259  ;;  %v2021_v47 = vpack.c.bf16 %v5927_v21, %v5916_v58  ;;  %4269 = vpow2.f32 %v1973_v12 }
 0x4da   : > { %v1932_v19 = vpop.xlane.xlu1 %1931  ;;  %v1940_v37 = vpop.xlane.xlu0 %1939  ;;  %v2022_v29 = vpack.c.bf16 %v5922_v17, %v5929_v5 }
 0x4db   : > { %v1952_v50 = vsub.f32 %v5714_v43, %v1932_v19  ;;  %3830 = vmatprep.mubr.bf16.mxu1 %v2021_v47  ;;  %2630 = vrot.lane.b32.xlu1 %v5310_v53, %s4703_s21  ;;  %v1977_v43 = vmul.f32 1.442695, %v1951_v9  ;;  %v5947_v32 = vpop.eup %4261  ;;  %v6741_v47 = vld [vmem:[#allocation34_spill] sm:$0xff]  ;;  %v6743_v9 = vld [vmem:[#allocation33_spill] sm:$0xff] }
 0x4dc   : > { %3831 = vmatmul.mubr.bf16.vlgmr.msra.gmra.mxu1 %v2022_v29 }
 0x4dd   : > { %3879 = vmatpush3.bf16.msra.mxu1 %v5838_v4  ;;  %v1979_v22 = vmul.f32 1.442695, %v1952_v50 }
 0x4de   : > { %3880 = vmatprep.subr.bf16.mxu1 %v5457_v42  ;;  %v1928_v41 = vpop.xlane.xlu1 %1927  ;;  %v1936_v49 = vpop.xlane.xlu0 %1935 }
 0x4df   : > { %v1950_v23 = vsub.f32 %v5726_v14, %v1928_v41  ;;  %2634 = vrot.lane.b32.xlu1 %v5326_v46, %s4703_s21  ;;  %v1954_v53 = vsub.f32 %v5730_v60, %v1936_v49  ;;  %4271 = vpow2.f32 %v1979_v22  ;;  %v1956_v60 = vsub.f32 %v5718_v54, %v1940_v37  ;;  %v6744_v22 = vld [vmem:[#allocation26_spill] sm:$0xff]  ;;  %v6745_v49 = vld [vmem:[#allocation32_spill] sm:$0xff] }
 0x4e0   : > { %v5950_v45 = vpop.eup %4263 }
 0x4e1   : > { %v1975_v48 = vmul.f32 1.442695, %v1950_v23  ;;  %3881 = vmatpush3.bf16.msra.mxu1 %v5457_v42  ;;  %v1983_v11 = vmul.f32 1.442695, %v1954_v53  ;;  %v1987_v54 = vmul.f32 1.442695, %v1956_v60 }
 0x4e2   : > { %3882 = vmatprep.subr.bf16.mxu1 %v5450_v40  ;;  %v1938_v55 = vpop.xlane.xlu1 %1937  ;;  %v6746_v53 = vld [vmem:[#allocation29_spill] sm:$0xff] }
 0x4e3   : > { %4273 = vpow2.f32 %v1975_v48  ;;  %v1955_v14 = vsub.f32 %v5737_v24, %v1938_v55  ;;  %2638 = vrot.lane.b32.xlu1 %v5342_v20, %s4703_s21 }
 0x4e4   : > { %v5955_v46 = vpop.eup %4265  ;;  %4275 = vpow2.f32 %v1977_v43 }
 0x4e5   : > { %v5958_v6 = vpop.eup %4267  ;;  %3883 = vmatpush3.bf16.msra.mxu1 %v5450_v40  ;;  %v2023_v8 = vpack.c.bf16 %v5955_v46, %v5947_v32  ;;  %v1985_v3 = vmul.f32 1.442695, %v1955_v14  ;;  %4277 = vpow2.f32 %v1983_v11  ;;  %v6747_v14 = vld [vmem:[#allocation36_spill] sm:$0xff]  ;;  %v6748_v11 = vld [vmem:[#allocation30_spill] sm:$0xff] }
 0x4e6   : > { %3884 = vmatprep.subr.bf16.mxu1 %v5442_v15  ;;  %v1934_v24 = vpop.xlane.xlu1 %1933  ;;  %v2024_v20 = vpack.c.bf16 %v5950_v45, %v5958_v6 }
 0x4e7   : > { %v1953_v28 = vsub.f32 %v5744_v27, %v1934_v24  ;;  %3834 = vmatprep.mubr.bf16.mxu1 %v2023_v8  ;;  %2965 = vrot.lane.b32.xlu1 %v5457_v42, %s4703_s21  ;;  %4279 = vpow2.f32 %v1985_v3  ;;  %v6740_v27 = vld [vmem:[#allocation28_spill] sm:$0xff]  ;;  %v5976_v42 = vpop.eup %4269  ;;  %v6749_v3 = vld [vmem:[#allocation31_spill] sm:$0xff] }
 0x4e8   : > { %3835 = vmatmul.mubr.bf16.gmra.mxu1 %v2024_v20 }
 0x4e9   : > { %v1981_v62 = vmul.f32 1.442695, %v1953_v28  ;;  %3885 = vmatpush3.bf16.msra.mxu1 %v5442_v15 }
 0x4ea   : > { %3886 = vmatprep.subr.bf16.mxu1 %v5432_v56 }
 0x4eb   : > { %4281 = vpow2.f32 %v1981_v62  ;;  %2961 = vrot.lane.b32.xlu1 %v5442_v15, %s4703_s21  ;;  %v6742_v15 = vld [vmem:[#allocation27_spill] sm:$0xff] }
 0x4ec   : > { %4283 = vpow2.f32 %v1987_v54  ;;  %v5979_v19 = vpop.eup %4271  ;;  %v2657_v54 = vpop.permute.xlu0 %2656 }
 0x4ed   : > { %3887 = vmatpush3.bf16.msra.mxu1 %v5432_v56  ;;  %2650 = vrot.lane.b32.xlu0 %v6740_v27, %s4703_s21 }
 0x4ee   : > { %3888 = vmatprep.subr.bf16.mxu1 %v6741_v47 }
 0x4ef   : > { %2957 = vrot.lane.b32.xlu1 %v6741_v47, %s4703_s21 }
 0x4f0   : > { %v5983_v37 = vpop.eup %4273 }
 0x4f1   : > { %v5985_v29 = vpop.eup %4275  ;;  %3889 = vmatpush3.bf16.msra.mxu1 %v6741_v47  ;;  %2648 = vrot.lane.b32.xlu0 %v6742_v15, %s4703_s21  ;;  %v2025_v50 = vpack.c.bf16 %v5983_v37, %v5976_v42 }
 0x4f2   : > { %3890 = vmatprep.subr.bf16.mxu1 %v6743_v9  ;;  %v2026_v12 = vpack.c.bf16 %v5979_v19, %v5985_v29  ;;  %v5998_v41 = vpop.eup %4277 }
 0x4f3   : > { %3838 = vmatprep.mubr.bf16.mxu1 %v2025_v50 }
 0x4f4   : > { %3839 = vmatmul.mubr.bf16.gmra.mxu1 %v2026_v12  ;;  %v6001_v23 = vpop.eup %4279 }
 0x4f5   : > { %3891 = vmatpush3.bf16.msra.mxu1 %v6743_v9  ;;  %2624 = vrot.lane.b32.xlu0 %v6744_v22, %s4703_s21 }
 0x4f6   : > { %3892 = vmatprep.subr.bf16.mxu1 %v6745_v49 }
 0x4f8   : > { %v6003_v43 = vpop.eup %4281 }
 0x4f9   : > { %v6005_v48 = vpop.eup %4283  ;;  %3893 = vmatpush3.bf16.msra.mxu1 %v6745_v49  ;;  %2628 = vrot.lane.b32.xlu0 %v6746_v53, %s4703_s21  ;;  %v2027_v55 = vpack.c.bf16 %v5998_v41, %v6003_v43 }
 0x4fa   : > { %3998 = vmatprep.subr.msk.bf16.mxu1 %vm462_vm0, %v6747_v14  ;;  %v2028_v60 = vpack.c.bf16 %v6005_v48, %v6001_v23 }
 0x4fb   : > { %3842 = vmatprep.mubr.bf16.mxu1 %v2027_v55  ;;  %v2710_v55 = vsel %vm462_vm0, %v6747_v14, 0 }
 0x4fc   : > { %3843 = vmatmul.mubr.bf16.gmra.mxu1 %v2028_v60  ;;  %v6750_v60 = vld [vmem:[#allocation35_spill] sm:$0xff] }
 0x4fd   : > { %2632 = vrot.lane.b32.xlu0 %v6748_v11, %s4703_s21 }
 0x4fe   : > { %v2364_v8 = vpop.xlane.xlu1 %2363 }
 0x4ff   : > { %v2393_v27 = vsub.f32 %v5793_v0, %v2364_v8  ;;  %v2707_v8 = vsel %vm462_vm0, %v6750_v60, 0 }
 0x501   : > { %2636 = vrot.lane.b32.xlu0 %v6749_v3, %s4703_s21  ;;  %v2411_v12 = vmul.f32 1.442695, %v2393_v27 }
 0x502   : > { %v2360_v24 = vpop.xlane.xlu1 %2359 }
 0x503   : > { %v2391_v28 = vsub.f32 %v5808_v30, %v2360_v24 }
 0x505   : > { %2967 = vrot.lane.b32.xlu0 %v5838_v4, %s4703_s21  ;;  %v2407_v47 = vmul.f32 1.442695, %v2391_v28 }
 0x506   : > { %v2366_v20 = vpop.xlane.xlu1 %2365 }
 0x507   : > { %v2394_v62 = vsub.f32 %v5819_v61, %v2366_v20  ;;  %4285 = vpow2.f32 %v2407_v47 }
 0x509   : > { %2963 = vrot.lane.b32.xlu0 %v5450_v40, %s4703_s21  ;;  %v2413_v15 = vmul.f32 1.442695, %v2394_v62 }
 0x50a   : > { %v2659_v3 = vpop.permute.xlu1 %2658 }
 0x50b   : > { %4287 = vpow2.f32 %v2413_v15  ;;  %v2704_v14 = vsel %vm462_vm0, %v2659_v3, 0 }
 0x50d   : > { %2959 = vrot.lane.b32.xlu0 %v5432_v56, %s4703_s21 }
 0x513   : > { %v2362_v50 = vpop.xlane.xlu0 %2361 }
 0x514   : > { %v2392_v4 = vsub.f32 %v5844_v34, %v2362_v50  ;;  %v6030_v40 = vpop.eup %4285 }
 0x516   : > { %v2409_v22 = vmul.f32 1.442695, %v2392_v4 }
 0x517   : > { %v2372_v53 = vpop.xlane.xlu0 %2371 }
 0x518   : > { %4289 = vpow2.f32 %v2409_v22  ;;  %v6032_v56 = vpop.eup %4287  ;;  %v2397_v62 = vsub.f32 %v5849_v16, %v2372_v53  ;;  %v2701_v16 = vsel %vm462_vm0, %v2657_v54, 0 }
 0x519   : > { %4291 = vpow2.f32 %v2411_v12 }
 0x51a   : > { %v2419_v12 = vmul.f32 1.442695, %v2397_v62 }
 0x51b   : > { %v2374_v11 = vpop.xlane.xlu0 %2373 }
 0x51c   : > { %v2398_v20 = vsub.f32 %v5856_v18, %v2374_v11 }
 0x51e   : > { %v2421_v27 = vmul.f32 1.442695, %v2398_v20 }
 0x51f   : > { %v2370_v24 = vpop.xlane.xlu0 %2369 }
 0x520   : > { %v2396_v28 = vsub.f32 %v5861_v36, %v2370_v24  ;;  %4293 = vpow2.f32 %v2421_v27 }
 0x522   : > { %v2417_v47 = vmul.f32 1.442695, %v2396_v28 }
 0x523   : > { %v2378_v50 = vpop.xlane.xlu0 %2377 }
 0x524   : > { %4295 = vpow2.f32 %v2417_v47  ;;  %v2400_v18 = vsub.f32 %v5866_v25, %v2378_v50 }
 0x525   : > { %v6034_v30 = vpop.eup %4289 }
 0x526   : > { %v6036_v61 = vpop.eup %4291  ;;  %v2471_v0 = vpack.c.bf16 %v6034_v30, %v6030_v40 }
 0x527   : > { %v2472_v34 = vpack.c.bf16 %v6032_v56, %v6036_v61  ;;  %v2388_v20 = vpop.xlane.xlu0 %2387 }
 0x528   : > { %3894 = vmatprep.mubr.bf16.mxu1 %v2471_v0  ;;  %v2425_v0 = vmul.f32 1.442695, %v2400_v18 }
 0x529   : > { %3895 = vmatmul.mubr.bf16.vlgmr.msra.gmra.mxu1 %v2472_v34 }
 0x52a   : > { %3911 = vmatpush3.bf16.xpose.msra.mxu1 %v2710_v55 }
 0x52b   : > { %3999 = vmatprep.subr.msk.bf16.mxu1 %vm462_vm0, %v6750_v60  ;;  %v2653_v27 = vpop.permute.xlu0 %2652 }
 0x532   : > { %3913 = vmatpush3.bf16.xpose.msra.mxu1 %v2707_v8 }
 0x533   : > { %4000 = vmatprep.subr.msk.bf16.mxu1 %vm462_vm0, %v2659_v3  ;;  %v6060_v3 = vpop.eup %4293 }
 0x53a   : > { %3915 = vmatpush3.bf16.xpose.msra.mxu1 %v2704_v14 }
 0x53b   : > { %4001 = vmatprep.subr.msk.bf16.mxu1 %vm462_vm0, %v2657_v54  ;;  %v2368_v15 = vpop.xlane.xlu1 %2367  ;;  %v6062_v54 = vpop.eup %4295 }
 0x53c   : > { %v2395_v4 = vsub.f32 %v5876_v44, %v2368_v15 }
 0x53e   : > { %v2415_v22 = vmul.f32 1.442695, %v2395_v4 }
 0x53f   : > { %v2380_v36 = vpop.xlane.xlu1 %2379 }
 0x540   : > { %4297 = vpow2.f32 %v2415_v22  ;;  %v2401_v34 = vsub.f32 %v5883_v63, %v2380_v36  ;;  %v2695_v22 = vsel %vm462_vm0, %v2653_v27, 0 }
 0x541   : > { %4299 = vpow2.f32 %v2419_v12 }
 0x542   : > { %3917 = vmatpush3.bf16.xpose.msra.mxu1 %v2701_v16  ;;  %4301 = vpow2.f32 %v2425_v0  ;;  %v2427_v44 = vmul.f32 1.442695, %v2401_v34  ;;  %v2405_v34 = vsub.f32 %v5871_v57, %v2388_v20 }
 0x543   : > { %v2376_v53 = vpop.xlane.xlu1 %2375 }
 0x544   : > { %v2399_v55 = vsub.f32 %v5888_v35, %v2376_v53 }
 0x546   : > { %v2423_v60 = vmul.f32 1.442695, %v2399_v55 }
 0x547   : > { %v2382_v11 = vpop.xlane.xlu1 %2381 }
 0x548   : > { %4303 = vpow2.f32 %v2423_v60  ;;  %v2402_v8 = vsub.f32 %v5893_v52, %v2382_v11  ;;  %v2435_v11 = vmul.f32 1.442695, %v2405_v34 }
 0x549   : > { %4305 = vpow2.f32 %v2427_v44 }
 0x54a   : > { %v2429_v25 = vmul.f32 1.442695, %v2402_v8 }
 0x54b   : > { %v2384_v24 = vpop.xlane.xlu1 %2383 }
 0x54c   : > { %4307 = vpow2.f32 %v2429_v25  ;;  %v2403_v36 = vsub.f32 %v5898_v59, %v2384_v24 }
 0x54d   : > { %v6064_v63 = vpop.eup %4297 }
 0x54e   : > { %v6066_v28 = vpop.eup %4299  ;;  %v2473_v35 = vpack.c.bf16 %v6062_v54, %v6064_v63  ;;  %v2431_v53 = vmul.f32 1.442695, %v2403_v36 }
 0x54f   : > { %v2655_v62 = vpop.permute.xlu1 %2654  ;;  %v2474_v52 = vpack.c.bf16 %v6060_v3, %v6066_v28  ;;  %v6075_v47 = vpop.eup %4301 }
 0x550   : > { %3898 = vmatprep.mubr.bf16.mxu1 %v2473_v35  ;;  %4002 = vmatprep.subr.msk.bf16.mxu1 %vm462_vm0, %v2655_v62  ;;  %v2698_v14 = vsel %vm462_vm0, %v2655_v62, 0  ;;  %4309 = vpow2.f32 %v2431_v53 }
 0x551   : > { %3899 = vmatmul.mubr.bf16.gmra.mxu1 %v2474_v52 }
 0x552   : > { %3919 = vmatpush3.bf16.xpose.msra.mxu1 %v2698_v14 }
 0x553   : > { %4003 = vmatprep.subr.msk.bf16.mxu1 %vm462_vm0, %v2653_v27  ;;  %v2627_v24 = vpop.permute.xlu1 %2626 }
 0x555   : > { %v6077_v15 = vpop.eup %4303 }
 0x556   : > { %v2475_v50 = vpack.c.bf16 %v6075_v47, %v6077_v15  ;;  %v6081_v4 = vpop.eup %4305 }
 0x557   : > { %v2631_v57 = vpop.permute.xlu1 %2630 }
 0x558   : > { %3902 = vmatprep.mubr.bf16.mxu1 %v2475_v50 }
 0x559   : > { %v6083_v12 = vpop.eup %4307 }
 0x55a   : > { %3921 = vmatpush3.bf16.xpose.msra.mxu1 %v2695_v22  ;;  %v2476_v18 = vpack.c.bf16 %v6083_v12, %v6081_v4 }
 0x55b   : > { %v2635_v27 = vpop.permute.xlu1 %2634 }
 0x55c   : > { %3903 = vmatmul.mubr.bf16.gmra.mxu1 %v2476_v18  ;;  %v2390_v16 = vpop.xlane.xlu0 %2389 }
 0x55d   : > { %v2406_v0 = vsub.f32 %v5910_v38, %v2390_v16  ;;  %v6096_v35 = vpop.eup %4309 }
 0x55f   : > { %v2437_v55 = vmul.f32 1.442695, %v2406_v0  ;;  %v2639_v16 = vpop.permute.xlu1 %2638 }
 0x560   : > { %v2386_v60 = vpop.xlane.xlu0 %2385 }
 0x561   : > { %v2404_v44 = vsub.f32 %v5920_v7, %v2386_v60  ;;  %4311 = vpow2.f32 %v2437_v55 }
 0x563   : > { %v2433_v8 = vmul.f32 1.442695, %v2404_v44  ;;  %v2966_v53 = vpop.permute.xlu1 %2965 }
 0x564   : > { %v2651_v25 = vpop.permute.xlu0 %2650 }
 0x565   : > { %4313 = vpow2.f32 %v2433_v8  ;;  %4004 = vmatprep.subr.msk.bf16.mxu1 %vm462_vm0, %v2651_v25  ;;  %v2692_v59 = vsel %vm462_vm0, %v2651_v25, 0  ;;  %v6115_v8 = vpop.f32.mrf.mxu1 }
 0x566   : > { %4315 = vpow2.f32 %v2435_v11  ;;  %3923 = vmatpush3.bf16.xpose.msra.mxu1 %v2692_v59  ;;  %6751 = vst [vmem:[#allocation28_spill] sm:$0xff] %v6115_v8 }
 0x567   : > { %v2962_v60 = vpop.permute.xlu1 %2961  ;;  %v6118_v25 = vpop.f32.mrf.mxu1 }
 0x568   : > { %v2649_v38 = vpop.permute.xlu0 %2648  ;;  %6752 = vst [vmem:[#allocation34_spill] sm:$0xff] %v6118_v25 }
 0x569   : > { %4005 = vmatprep.subr.msk.bf16.mxu1 %vm462_vm0, %v2649_v38  ;;  %v2689_v7 = vsel %vm462_vm0, %v2649_v38, 0  ;;  %v6120_v59 = vpop.f32.mrf.mxu1 }
 0x56a   : > { %6753 = vst [vmem:[#allocation27_spill] sm:$0xff] %v6120_v59 }
 0x56b   : > { %v2958_v11 = vpop.permute.xlu1 %2957 }
 0x56c   : > { %v2625_v20 = vpop.permute.xlu0 %2624 }
 0x56e   : > { %3925 = vmatpush3.bf16.xpose.msra.mxu1 %v2689_v7  ;;  %v6098_v52 = vpop.eup %4311 }
 0x570   : > { %v2629_v62 = vpop.permute.xlu0 %2628 }
 0x572   : > { %v6100_v14 = vpop.eup %4313 }
 0x573   : > { %v6102_v50 = vpop.eup %4315  ;;  %v2477_v22 = vpack.c.bf16 %v6100_v14, %v6096_v35 }
 0x574   : > { %v2633_v18 = vpop.permute.xlu0 %2632  ;;  %v2478_v36 = vpack.c.bf16 %v6098_v52, %v6102_v50 }
 0x575   : > { %3906 = vmatprep.mubr.bf16.mxu1 %v2477_v22 }
 0x576   : > { %3907 = vmatmul.mubr.bf16.gmra.mxu1 %v2478_v36 }
 0x577   : > { %3926 = vmatprep.mubr.msk.bf16.mxu1 %vm462_vm0, %v2625_v20 }
 0x578   : > { %v2637_v0 = vpop.permute.xlu0 %2636 }
 0x57c   : > { %v2968_v34 = vpop.permute.xlu0 %2967 }
 0x57d   : > { %3942 = vmatprep.subr.bf16.mxu0 %v2968_v34 }
 0x57e   : > { %3927 = vmatmul.mubr.msk.bf16.vlgmr.msra.gmra.mxu1 %vm462_vm0, %v2627_v24  ;;  %3943 = vmatpush3.bf16.msra.mxu0 %v2968_v34  ;;  %v6122_v24 = vpop.f32.mrf.mxu1 }
 0x57f   : > { %3930 = vmatprep.mubr.msk.bf16.mxu1 %vm462_vm0, %v2629_v62  ;;  %3944 = vmatprep.subr.bf16.mxu0 %v2966_v53  ;;  %6754 = vst [vmem:[#allocation33_spill] sm:$0xff] %v6122_v24 }
 0x580   : > { %v2964_v55 = vpop.permute.xlu0 %2963  ;;  %v6124_v38 = vpop.f32.mrf.mxu1 }
 0x581   : > { %6755 = vst [vmem:[#allocation26_spill] sm:$0xff] %v6124_v38 }
 0x582   : > { %3945 = vmatpush3.bf16.msra.mxu0 %v2966_v53 }
 0x583   : > { %3946 = vmatprep.subr.bf16.mxu0 %v2964_v55 }
 0x584   : > { %v2960_v44 = vpop.permute.xlu0 %2959 }
 0x586   : > { %3931 = vmatmul.mubr.msk.bf16.gmra.mxu1 %vm462_vm0, %v2631_v57  ;;  %3947 = vmatpush3.bf16.msra.mxu0 %v2964_v55  ;;  %v6126_v57 = vpop.f32.mrf.mxu1 }
 0x587   : > { %3934 = vmatprep.mubr.msk.bf16.mxu1 %vm462_vm0, %v2633_v18  ;;  %3948 = vmatprep.subr.bf16.mxu0 %v2962_v60  ;;  %6756 = vst [vmem:[#allocation32_spill] sm:$0xff] %v6126_v57 }
 0x588   : > { %v6128_v20 = vpop.f32.mrf.mxu1 }
 0x589   : > { %6757 = vst [vmem:[#allocation29_spill] sm:$0xff] %v6128_v20 }
 0x58a   : > { %3949 = vmatpush3.bf16.msra.mxu0 %v2962_v60  ;;  %v6130_v7 = vpop.f32.mrf.mxu1 }
 0x58b   : > { %3950 = vmatprep.subr.bf16.mxu0 %v2960_v44  ;;  %6758 = vst [vmem:[#allocation36_spill] sm:$0xff] %v6130_v7 }
 0x58c   : > { %v6132_v62 = vpop.f32.mrf.mxu1 }
 0x58d   : > { %6759 = vst [vmem:[#allocation30_spill] sm:$0xff] %v6132_v62 }
 0x58e   : > { %3935 = vmatmul.mubr.msk.bf16.gmra.mxu1 %vm462_vm0, %v2635_v27  ;;  %3951 = vmatpush3.bf16.msra.mxu0 %v2960_v44  ;;  %v6134_v27 = vpop.f32.mrf.mxu1 }
 0x58f   : > { %3938 = vmatprep.mubr.msk.bf16.mxu1 %vm462_vm0, %v2637_v0  ;;  %3952 = vmatprep.subr.bf16.mxu0 %v2958_v11  ;;  %6760 = vst [vmem:[#allocation31_spill] sm:$0xff] %v6134_v27 }
 0x590   : > { %v6136_v22 = vpop.f32.mrf.mxu1 }
 0x591   : > { %6761 = vst [vmem:[#allocation35_spill] sm:$0xff] %v6136_v22 }
 0x592   : > { %3953 = vmatpush3.bf16.msra.mxu0 %v2958_v11  ;;  %v6138_v18 = vpop.f32.mrf.mxu1 }
 0x593   : > { %6762 = vst [vmem:[#allocation45_spill] sm:$0xff] %v6138_v18 }
 0x594   : > { %v6140_v36 = vpop.f32.mrf.mxu1 }
 0x595   : > { %6763 = vst [vmem:[#allocation46_spill] sm:$0xff] %v6140_v36 }
 0x596   : > { %3939 = vmatmul.mubr.msk.bf16.gmra.mxu1 %vm462_vm0, %v2639_v16  ;;  %v6142_v16 = vpop.f32.mrf.mxu1 }
 0x597   : > { %6764 = vst [vmem:[#allocation47_spill] sm:$0xff] %v6142_v16 }
 0x598   : > { %v6144_v0 = vpop.f32.mrf.mxu1 }
 0x599   : > { %6765 = vst [vmem:[#allocation48_spill] sm:$0xff] %v6144_v0 }
 0x59a   : > { %v6146_v34 = vpop.f32.mrf.mxu1 }
 0x59b   : > { %6766 = vst [vmem:[#allocation49_spill] sm:$0xff] %v6146_v34 }
 0x59c   : > { %v6148_v53 = vpop.f32.mrf.mxu1 }
 0x59e   : > { %v6150_v55 = vpop.f32.mrf.mxu1 }
 0x59f   : > { %6767 = vst [vmem:[#allocation50_spill] sm:$0xff] %v6150_v55 }
 0x5a0   : > { %v6152_v60 = vpop.f32.mrf.mxu1 }
 0x5a1   : > { %6768 = vst [vmem:[#allocation51_spill] sm:$0xff] %v6152_v60 }
 0x5a2   : > { %v6154_v44 = vpop.f32.mrf.mxu1 }
 0x5a8   : > { %v6156_v11 = vpop.f32.mrf.mxu1 }
 0x5a9   : > { %6769 = vst [vmem:[#allocation52_spill] sm:$0xff] %v6156_v11 }
 0x5aa   : > { %v6158_v62 = vpop.f32.mrf.mxu1 }
 0x5ab   : > { %6770 = vst [vmem:[#allocation53_spill] sm:$0xff] %v6158_v62 }
 0x5ac   : > { %v6160_v22 = vpop.f32.mrf.mxu1 }
 0x5ad   : > { %6771 = vst [vmem:[#allocation54_spill] sm:$0xff] %v6160_v22 }
 0x5ae   : > { %v6162_v36 = vpop.f32.mrf.mxu1 }
 0x5af   : > { %6772 = vst [vmem:[#allocation55_spill] sm:$0xff] %v6162_v36 }
 0x5b4   : > { %v6164_v16 = vpop.f32.mrf.mxu1 }
 0x5b5   : > { %6773 = vst [vmem:[#allocation56_spill] sm:$0xff] %v6164_v16 }
 0x5b6   : > { %v6166_v0 = vpop.f32.mrf.mxu1 }
 0x5b7   : > { %6774 = vst [vmem:[#allocation57_spill] sm:$0xff] %v6166_v0 }
 0x5b8   : > { %v6168_v34 = vpop.f32.mrf.mxu1 }
 0x5b9   : > { %6775 = vst [vmem:[#allocation58_spill] sm:$0xff] %v6168_v34 }
 0x5ba   : > { %v6170_v18 = vpop.f32.mrf.mxu1 }
 0x5bb   : > { %6776 = vst [vmem:[#allocation59_spill] sm:$0xff] %v6170_v18 }
 0x5bc   : > { %v6172_v27 = vpop.f32.mrf.mxu1 }
 0x5bd   : > { %6777 = vst [vmem:[#allocation60_spill] sm:$0xff] %v6172_v27 }
 0x5be   : > { %v6174_v38 = vpop.f32.mrf.mxu1 }
 0x5bf   : > { %6778 = vst [vmem:[#allocation61_spill] sm:$0xff] %v6174_v38 }
 0x5c0   : > { %v6176_v20 = vpop.f32.mrf.mxu1 }
 0x5c1   : > { %6779 = vst [vmem:[#allocation62_spill] sm:$0xff] %v6176_v20 }
 0x5c2   : > { %v6178_v57 = vpop.f32.mrf.mxu1 }
 0x5c3   : > { %6780 = vst [vmem:[#allocation63_spill] sm:$0xff] %v6178_v57 }
 0x5e9   : > { %v6180_v7 = vpop.f32.mrf.mxu1 }
 0x5ea   : > { %6781 = vst [vmem:[#allocation64_spill] sm:$0xff] %v6180_v7 }
 0x5eb   : > { %v6182_v8 = vpop.f32.mrf.mxu1 }
 0x5ec   : > { %6782 = vst [vmem:[#allocation65_spill] sm:$0xff] %v6182_v8 }
 0x5ed   : > { %v6184_v59 = vpop.f32.mrf.mxu1 }
 0x5ee   : > { %6783 = vst [vmem:[#allocation66_spill] sm:$0xff] %v6184_v59 }
 0x5ef   : > { %v6186_v24 = vpop.f32.mrf.mxu1 }
 0x5f0   : > { %6784 = vst [vmem:[#allocation67_spill] sm:$0xff] %v6186_v24 }
 0x611   : > { %v6188_v25 = vpop.f32.mrf.mxu1 }
 0x612   : > { %6785 = vst [vmem:[#allocation68_spill] sm:$0xff] %v6188_v25 }
 0x613   : > { %v6190_v34 = vpop.f32.mrf.mxu1 }
 0x614   : > { %6786 = vst [vmem:[#allocation69_spill] sm:$0xff] %v6190_v34 }
 0x615   : > { %v6192_v16 = vpop.f32.mrf.mxu1 }
 0x616   : > { %6787 = vst [vmem:[#allocation70_spill] sm:$0xff] %v6192_v16 }
 0x617   : > { %v6194_v27 = vpop.f32.mrf.mxu1 }
 0x618   : > { %6788 = vst [vmem:[#allocation71_spill] sm:$0xff] %v6194_v27 }
 0x61c   : > { %v6196_v38 = vpop.f32.mrf.mxu1 }
 0x61d   : > { %6789 = vst [vmem:[#allocation72_spill] sm:$0xff] %v6196_v38 }
 0x61e   : > { %v6198_v20 = vpop.f32.mrf.mxu1 }
 0x61f   : > { %6790 = vst [vmem:[#allocation73_spill] sm:$0xff] %v6198_v20 }
 0x620   : > { %v6200_v57 = vpop.f32.mrf.mxu1 }
 0x621   : > { %6791 = vst [vmem:[#allocation74_spill] sm:$0xff] %v6200_v57 }
 0x622   : > { %v6202_v7 = vpop.f32.mrf.mxu1 }
 0x623   : > { %6792 = vst [vmem:[#allocation75_spill] sm:$0xff] %v6202_v7 }
 0x636   : > { %v6204_v8 = vpop.f32.mrf.mxu1 }
 0x637   : > { %6793 = vst [vmem:[#allocation76_spill] sm:$0xff] %v6204_v8 }
 0x638   : > { %v6206_v59 = vpop.f32.mrf.mxu1 }
 0x639   : > { %6794 = vst [vmem:[#allocation77_spill] sm:$0xff] %v6206_v59 }
 0x63a   : > { %v6208_v24 = vpop.f32.mrf.mxu1 }
 0x63b   : > { %6795 = vst [vmem:[#allocation78_spill] sm:$0xff] %v6208_v24 }
 0x63c   : > { %v6210_v25 = vpop.f32.mrf.mxu1 }
 0x63d   : > { %6796 = vst [vmem:[#allocation79_spill] sm:$0xff] %v6210_v25 }
 0x63e   : > { %v3928_v34 = vpop.f32.mrf.mxu1 }
 0x63f   : > { %v6214_v27 = vsel %vm1426_vm1, %v3928_v34, -1e+30 }
 0x640   : > { %2829 = vmax.xlane.f32.xlu0 %v6214_v27  ;;  %v2746_v20 = vpop.f32.mrf.mxu1 }
 0x641   : > { %v6219_v7 = vsel %vm1426_vm1, %v2746_v20, -1e+30 }
 0x642   : > { %v3929_v38 = vpop.f32.mrf.mxu1 }
 0x643   : > { %v6229_v34 = vsel %vm1426_vm1, %v3929_v38, -1e+30 }
 0x644   : > { %2825 = vmax.xlane.f32.xlu0 %v6219_v7  ;;  %v2749_v59 = vpop.f32.mrf.mxu1 }
 0x645   : > { %v6224_v8 = vsel %vm1426_vm1, %v2749_v59, -1e+30 }
 0x646   : > { %2827 = vmax.xlane.f32.xlu1 %v6224_v8  ;;  %v3932_v25 = vpop.f32.mrf.mxu1 }
 0x647   : > { %v6239_v59 = vsel %vm1426_vm1, %v3932_v25, -1e+30 }
 0x648   : > { %2831 = vmax.xlane.f32.xlu0 %v6229_v34  ;;  %v2762_v24 = vpop.f32.mrf.mxu1 }
 0x649   : > { %v6234_v20 = vsel %vm1426_vm1, %v2762_v24, -1e+30 }
 0x64a   : > { %2833 = vmax.xlane.f32.xlu1 %v6234_v20  ;;  %v3933_v57 = vpop.f32.mrf.mxu1 }
 0x64b   : > { %v6244_v38 = vsel %vm1426_vm1, %v3933_v57, -1e+30 }
 0x64c   : > { %2837 = vmax.xlane.f32.xlu0 %v6239_v59  ;;  %v2765_v16 = vpop.f32.mrf.mxu1 }
 0x64d   : > { %v6249_v24 = vsel %vm1426_vm1, %v2765_v16, -1e+30 }
 0x64e   : > { %2839 = vmax.xlane.f32.xlu1 %v6244_v38  ;;  %v3936_v18 = vpop.f32.mrf.mxu1 }
 0x64f   : > { %v6259_v57 = vsel %vm1426_vm1, %v3936_v18, -1e+30 }
 0x650   : > { %2835 = vmax.xlane.f32.xlu0 %v6249_v24  ;;  %v2778_v0 = vpop.f32.mrf.mxu1 }
 0x651   : > { %v6254_v25 = vsel %vm1426_vm1, %v2778_v0, -1e+30 }
 0x652   : > { %2841 = vmax.xlane.f32.xlu1 %v6254_v25  ;;  %v3937_v22 = vpop.f32.mrf.mxu1 }
 0x653   : > { %v6264_v16 = vsel %vm1426_vm1, %v3937_v22, -1e+30 }
 0x654   : > { %2845 = vmax.xlane.f32.xlu0 %v6259_v57  ;;  %v2781_v11 = vpop.f32.mrf.mxu1 }
 0x655   : > { %v6269_v0 = vsel %vm1426_vm1, %v2781_v11, -1e+30 }
 0x656   : > { %2847 = vmax.xlane.f32.xlu1 %v6264_v16  ;;  %v3940_v36 = vpop.f32.mrf.mxu1 }
 0x657   : > { %v6279_v22 = vsel %vm1426_vm1, %v3940_v36, -1e+30 }
 0x658   : > { %2843 = vmax.xlane.f32.xlu0 %v6269_v0  ;;  %v2794_v62 = vpop.f32.mrf.mxu1 }
 0x659   : > { %v6274_v18 = vsel %vm1426_vm1, %v2794_v62, -1e+30 }
 0x65a   : > { %2849 = vmax.xlane.f32.xlu1 %v6274_v18  ;;  %v3941_v55 = vpop.f32.mrf.mxu1 }
 0x65b   : > { %v6284_v11 = vsel %vm1426_vm1, %v3941_v55, -1e+30 }
 0x65c   : > { %2853 = vmax.xlane.f32.xlu0 %v6279_v22  ;;  %v2797_v60 = vpop.f32.mrf.mxu1 }
 0x65d   : > { %v6289_v62 = vsel %vm1426_vm1, %v2797_v60, -1e+30 }
 0x65e   : > { %2855 = vmax.xlane.f32.xlu1 %v6284_v11 }
 0x660   : > { %2851 = vmax.xlane.f32.xlu0 %v6289_v62 }
 0x66f   : > { %2953 = vrot.lane.b32.xlu1 %v6745_v49, %s4703_s21 }
 0x676   : > { %2955 = vrot.lane.b32.xlu0 %v6743_v9, %s4703_s21 }
 0x693   : > { %1989 = vadd.xlane.f32.xlu1 %v5916_v58  ;;  %v6798_v58 = vld [vmem:[#allocation40_spill] sm:$0xff] }
 0x695   : > { %1991 = vadd.xlane.f32.xlu0 %v5927_v21  ;;  %v6802_v21 = vld [vmem:[#allocation44_spill] sm:$0xff] }
 0x697   : > { %1995 = vadd.xlane.f32.xlu1 %v5922_v17  ;;  %v6799_v17 = vld [vmem:[#allocation37_spill] sm:$0xff] }
 0x699   : > { %1993 = vadd.xlane.f32.xlu0 %v5929_v5 }
 0x69b   : > { %1999 = vadd.xlane.f32.xlu1 %v5955_v46 }
 0x69d   : > { %1997 = vadd.xlane.f32.xlu0 %v5947_v32 }
 0x69f   : > { %2003 = vadd.xlane.f32.xlu1 %v5950_v45 }
 0x6a1   : > { %2001 = vadd.xlane.f32.xlu0 %v5958_v6 }
 0x6a3   : > { %2007 = vadd.xlane.f32.xlu1 %v5983_v37 }
 0x6a5   : > { %2005 = vadd.xlane.f32.xlu0 %v5976_v42 }
 0x6a7   : > { %2011 = vadd.xlane.f32.xlu1 %v5979_v19 }
 0x6a9   : > { %2009 = vadd.xlane.f32.xlu0 %v5985_v29 }
 0x6ab   : > { %2015 = vadd.xlane.f32.xlu1 %v5998_v41 }
 0x6ad   : > { %2013 = vadd.xlane.f32.xlu0 %v6003_v43 }
 0x6af   : > { %2019 = vadd.xlane.f32.xlu1 %v6005_v48 }
 0x6b1   : > { %2017 = vadd.xlane.f32.xlu0 %v6001_v23 }
 0x6b3   : > { %1525 = vadd.xlane.f32.xlu1 %v5753_v39  ;;  %v6800_v39 = vld [vmem:[#allocation38_spill] sm:$0xff] }
 0x6b5   : > { %1523 = vadd.xlane.f32.xlu0 %v5751_v33 }
 0x6b7   : > { %1529 = vadd.xlane.f32.xlu1 %v5761_v10 }
 0x6b9   : > { %1527 = vadd.xlane.f32.xlu0 %v5755_v1  ;;  %v6801_v1 = vld [vmem:[#allocation43_spill] sm:$0xff] }
 0x6bb   : > { %1533 = vadd.xlane.f32.xlu1 %v5777_v51 }
 0x6bd   : > { %1531 = vadd.xlane.f32.xlu0 %v5780_v26 }
 0x6bf   : > { %1537 = vadd.xlane.f32.xlu1 %v5771_v2 }
 0x6c1   : > { %1535 = vadd.xlane.f32.xlu0 %v5773_v31 }
 0x6c3   : > { %1541 = vadd.xlane.f32.xlu1 %v6797_v13 }
 0x6c5   : > { %1539 = vadd.xlane.f32.xlu0 %v6798_v58 }
 0x6c7   : > { %1545 = vadd.xlane.f32.xlu1 %v6799_v17 }
 0x6c9   : > { %1543 = vadd.xlane.f32.xlu0 %v6800_v39  ;;  %v2830_v33 = vpop.xlane.xlu0 %2829 }
 0x6ca   : > { %v2859_v10 = vsub.f32 %v6214_v27, %v2830_v33 }
 0x6cb   : > { %1549 = vadd.xlane.f32.xlu1 %v6801_v1 }
 0x6cc   : > { %v2877_v51 = vmul.f32 1.442695, %v2859_v10 }
 0x6cd   : > { %1547 = vadd.xlane.f32.xlu0 %v6802_v21  ;;  %v2826_v26 = vpop.xlane.xlu0 %2825 }
 0x6ce   : > { %4317 = vpow2.f32 %v2877_v51  ;;  %v2857_v2 = vsub.f32 %v6219_v7, %v2826_v26 }
 0x6cf   : > { %v2828_v31 = vpop.xlane.xlu1 %2827 }
 0x6d0   : > { %v2873_v5 = vmul.f32 1.442695, %v2857_v2  ;;  %v2858_v32 = vsub.f32 %v6224_v8, %v2828_v31 }
 0x6d1   : > { %v2832_v45 = vpop.xlane.xlu0 %2831 }
 0x6d2   : > { %4319 = vpow2.f32 %v2873_v5  ;;  %v2875_v46 = vmul.f32 1.442695, %v2858_v32  ;;  %v2860_v6 = vsub.f32 %v6229_v34, %v2832_v45 }
 0x6d3   : > { %v2834_v42 = vpop.xlane.xlu1 %2833 }
 0x6d4   : > { %4321 = vpow2.f32 %v2875_v46  ;;  %v2879_v19 = vmul.f32 1.442695, %v2860_v6  ;;  %v2861_v37 = vsub.f32 %v6234_v20, %v2834_v42 }
 0x6d5   : > { %v2838_v29 = vpop.xlane.xlu0 %2837 }
 0x6d6   : > { %4323 = vpow2.f32 %v2879_v19  ;;  %v2863_v9 = vsub.f32 %v6239_v59, %v2838_v29  ;;  %v2881_v43 = vmul.f32 1.442695, %v2861_v37 }
 0x6d7   : > { %v2840_v41 = vpop.xlane.xlu1 %2839 }
 0x6d8   : > { %v2885_v49 = vmul.f32 1.442695, %v2863_v9  ;;  %v2864_v23 = vsub.f32 %v6244_v38, %v2840_v41 }
 0x6d9   : > { %v2836_v48 = vpop.xlane.xlu0 %2835 }
 0x6da   : > { %4325 = vpow2.f32 %v2885_v49  ;;  %v2887_v8 = vmul.f32 1.442695, %v2864_v23  ;;  %v2862_v7 = vsub.f32 %v6249_v24, %v2836_v48 }
 0x6db   : > { %v6334_v27 = vpop.eup %4317  ;;  %v2842_v36 = vpop.xlane.xlu1 %2841  ;;  %4327 = vpow2.f32 %v2881_v43 }
 0x6dc   : > { %2909 = vadd.xlane.f32.xlu0 %v6334_v27  ;;  %v2883_v55 = vmul.f32 1.442695, %v2862_v7  ;;  %v2865_v60 = vsub.f32 %v6254_v25, %v2842_v36  ;;  %4329 = vpow2.f32 %v2887_v8  ;;  %v6803_v7 = vld [vmem:[#allocation41_spill] sm:$0xff] }
 0x6dd   : > { %v2846_v34 = vpop.xlane.xlu0 %2845 }
 0x6de   : > { %v2867_v20 = vsub.f32 %v6259_v57, %v2846_v34  ;;  %4331 = vpow2.f32 %v2883_v55  ;;  %v2889_v17 = vmul.f32 1.442695, %v2865_v60 }
 0x6df   : > { %v4320_v59 = vpop.eup %4319  ;;  %v2848_v38 = vpop.xlane.xlu1 %2847 }
 0x6e0   : > { %v2893_v13 = vmul.f32 1.442695, %v2867_v20  ;;  %v2868_v58 = vsub.f32 %v6264_v16, %v2848_v38  ;;  %2905 = vadd.xlane.f32.xlu0 %v4320_v59 }
 0x6e1   : > { %v4322_v24 = vpop.eup %4321  ;;  %v2844_v39 = vpop.xlane.xlu0 %2843 }
 0x6e2   : > { %4333 = vpow2.f32 %v2893_v13  ;;  %v2895_v33 = vmul.f32 1.442695, %v2868_v58  ;;  %v2866_v10 = vsub.f32 %v6269_v0, %v2844_v39  ;;  %v2937_v1 = vpack.c.bf16 %v4322_v24, %v4320_v59  ;;  %v6805_v13 = vld [vmem:[#allocation51_spill] sm:$0xff]  ;;  %v6806_v39 = vld [vmem:[#allocation50_spill] sm:$0xff] }
 0x6e3   : > { %v4324_v25 = vpop.eup %4323  ;;  %v2850_v51 = vpop.xlane.xlu1 %2849  ;;  %4335 = vpow2.f32 %v2889_v17 }
 0x6e4   : > { %3958 = vmatprep.mubr.bf16.mxu0 %v2937_v1  ;;  %2911 = vadd.xlane.f32.xlu1 %v4324_v25  ;;  %v2891_v57 = vmul.f32 1.442695, %v2866_v10  ;;  %4337 = vpow2.f32 %v2895_v33  ;;  %v2869_v16 = vsub.f32 %v6274_v18, %v2850_v51 }
 0x6e5   : > { %v2854_v21 = vpop.xlane.xlu0 %2853 }
 0x6e6   : > { %v2871_v26 = vsub.f32 %v6279_v22, %v2854_v21  ;;  %4339 = vpow2.f32 %v2891_v57  ;;  %v2897_v32 = vmul.f32 1.442695, %v2869_v16  ;;  %v6807_v57 = vld [vmem:[#allocation53_spill] sm:$0xff] }
 0x6e7   : > { %v4326_v2 = vpop.eup %4325  ;;  %v2856_v45 = vpop.xlane.xlu1 %2855 }
 0x6e8   : > { %v2901_v31 = vmul.f32 1.442695, %v2871_v26  ;;  %2907 = vadd.xlane.f32.xlu1 %v4322_v24  ;;  %2917 = vadd.xlane.f32.xlu0 %v4326_v2  ;;  %v4328_v0 = vpop.eup %4327  ;;  %v2872_v41 = vsub.f32 %v6284_v11, %v2856_v45  ;;  %v6810_v45 = vld [vmem:[#allocation54_spill] sm:$0xff] }
 0x6e9   : > { %v2852_v5 = vpop.xlane.xlu0 %2851  ;;  %v4330_v46 = vpop.eup %4329 }
 0x6ea   : > { %4341 = vpow2.f32 %v2901_v31  ;;  %v2870_v6 = vsub.f32 %v6289_v62, %v2852_v5  ;;  %v2938_v62 = vpack.c.bf16 %v4324_v25, %v6334_v27  ;;  %v2903_v48 = vmul.f32 1.442695, %v2872_v41  ;;  %v6804_v27 = vld [vmem:[#allocation42_spill] sm:$0xff] }
 0x6eb   : > { %v4332_v19 = vpop.eup %4331  ;;  %4343 = vpow2.f32 %v2897_v32  ;;  %v2954_v22 = vpop.permute.xlu1 %2953  ;;  %v2940_v36 = vpack.c.bf16 %v4330_v46, %v4326_v2 }
 0x6ec   : > { %2919 = vadd.xlane.f32.xlu1 %v4330_v46  ;;  %2913 = vadd.xlane.f32.xlu0 %v4328_v0  ;;  %v2899_v37 = vmul.f32 1.442695, %v2870_v6  ;;  %v2939_v49 = vpack.c.bf16 %v4332_v19, %v4328_v0  ;;  %v6809_v0 = vld [vmem:[#allocation52_spill] sm:$0xff] }
 0x6ed   : > { %v2956_v42 = vpop.permute.xlu0 %2955 }
 0x6ee   : > { %3954 = vmatprep.subr.bf16.mxu0 %v2956_v42  ;;  %4345 = vpow2.f32 %v2899_v37  ;;  %v6811_v37 = vld [vmem:[#allocation57_spill] sm:$0xff] }
 0x6ef   : > { %v4334_v18 = vpop.eup %4333  ;;  %3955 = vmatpush3.bf16.msra.mxu0 %v2956_v42  ;;  %4347 = vpow2.f32 %v2903_v48 }
 0x6f0   : > { %2915 = vadd.xlane.f32.xlu1 %v4332_v19  ;;  %2925 = vadd.xlane.f32.xlu0 %v4334_v18  ;;  %v4336_v29 = vpop.eup %4335 }
 0x6f1   : > { %3956 = vmatprep.subr.bf16.mxu0 %v2954_v22  ;;  %v4338_v9 = vpop.eup %4337 }
 0x6f2   : > { %v2942_v60 = vpack.c.bf16 %v4338_v9, %v4334_v18 }
 0x6f3   : > { %3957 = vmatpush3.bf16.msra.mxu0 %v2954_v22  ;;  %v4340_v23 = vpop.eup %4339 }
 0x6f4   : > { %2927 = vadd.xlane.f32.xlu1 %v4338_v9  ;;  %2921 = vadd.xlane.f32.xlu0 %v4336_v29  ;;  %v2941_v11 = vpack.c.bf16 %v4340_v23, %v4336_v29  ;;  %v6812_v9 = vld [vmem:[#allocation59_spill] sm:$0xff] }
 0x6f6   : > { %3959 = vmatmul.mubr.bf16.vlgmr.msra.gmra.mxu0 %v2938_v62 }
 0x6f7   : > { %v4342_v43 = vpop.eup %4341  ;;  %3962 = vmatprep.mubr.bf16.mxu0 %v2939_v49 }
 0x6f8   : > { %2923 = vadd.xlane.f32.xlu1 %v4340_v23  ;;  %2933 = vadd.xlane.f32.xlu0 %v4342_v43  ;;  %v4344_v8 = vpop.eup %4343 }
 0x6fb   : > { %v4346_v55 = vpop.eup %4345 }
 0x6fc   : > { %1553 = vadd.xlane.f32.xlu1 %v6803_v7  ;;  %2929 = vadd.xlane.f32.xlu0 %v4344_v8  ;;  %v2943_v34 = vpack.c.bf16 %v4346_v55, %v4344_v8  ;;  %v4348_v20 = vpop.eup %4347  ;;  %v6813_v8 = vld [vmem:[#allocation56_spill] sm:$0xff] }
 0x6fe   : > { %3963 = vmatmul.mubr.bf16.gmra.mxu0 %v2940_v36  ;;  %v6814_v36 = vld [vmem:[#allocation58_spill] sm:$0xff] }
 0x6ff   : > { %3966 = vmatprep.mubr.bf16.mxu0 %v2941_v11 }
 0x700   : > { %2441 = vadd.xlane.f32.xlu1 %v6034_v30  ;;  %1551 = vadd.xlane.f32.xlu0 %v6804_v27  ;;  %v2944_v30 = vpack.c.bf16 %v4348_v20, %v4342_v43 }
 0x704   : > { %2445 = vadd.xlane.f32.xlu1 %v6032_v56  ;;  %2439 = vadd.xlane.f32.xlu0 %v6030_v40 }
 0x706   : > { %3967 = vmatmul.mubr.bf16.gmra.mxu0 %v2942_v60 }
 0x707   : > { %3970 = vmatprep.mubr.bf16.mxu0 %v2943_v34 }
 0x708   : > { %2449 = vadd.xlane.f32.xlu1 %v6062_v54  ;;  %2443 = vadd.xlane.f32.xlu0 %v6036_v61 }
 0x70c   : > { %2935 = vadd.xlane.f32.xlu1 %v4348_v20  ;;  %2447 = vadd.xlane.f32.xlu0 %v6064_v63 }
 0x70e   : > { %3971 = vmatmul.mubr.bf16.gmra.mxu0 %v2944_v30  ;;  %v6815_v30 = vld [vmem:[#allocation61_spill] sm:$0xff] }
 0x710   : > { %2451 = vadd.xlane.f32.xlu0 %v6066_v28  ;;  %2931 = vadd.xlane.f32.xlu1 %v4346_v55 }
 0x714   : > { %2455 = vadd.xlane.f32.xlu0 %v6077_v15  ;;  %2453 = vadd.xlane.f32.xlu1 %v6060_v3 }
 0x718   : > { %2459 = vadd.xlane.f32.xlu0 %v6081_v4  ;;  %2457 = vadd.xlane.f32.xlu1 %v6075_v47 }
 0x71c   : > { %v1990_v40 = vpop.xlane.xlu1 %1989  ;;  %2463 = vadd.xlane.f32.xlu0 %v6096_v35  ;;  %2461 = vadd.xlane.f32.xlu1 %v6083_v12 }
 0x71e   : > { %v1992_v56 = vpop.xlane.xlu0 %1991 }
 0x71f   : > { %4349 = vrcp.f32 %v1992_v56  ;;  %v6816_v56 = vld [vmem:[#allocation63_spill] sm:$0xff] }
 0x720   : > { %v1996_v61 = vpop.xlane.xlu1 %1995  ;;  %2467 = vadd.xlane.f32.xlu0 %v6102_v50  ;;  %2465 = vadd.xlane.f32.xlu1 %v6100_v14 }
 0x721   : > { %4351 = vrcp.f32 %v1996_v61 }
 0x722   : > { %4353 = vrcp.f32 %v1990_v40  ;;  %v1994_v54 = vpop.xlane.xlu0 %1993 }
 0x723   : > { %4355 = vrcp.f32 %v1994_v54 }
 0x724   : > { %v2000_v3 = vpop.xlane.xlu1 %1999  ;;  %2469 = vadd.xlane.f32.xlu1 %v6098_v52 }
 0x725   : > { %4357 = vrcp.f32 %v2000_v3 }
 0x726   : > { %v1998_v63 = vpop.xlane.xlu0 %1997 }
 0x727   : > { %4359 = vrcp.f32 %v1998_v63 }
 0x728   : > { %v2004_v28 = vpop.xlane.xlu1 %2003 }
 0x729   : > { %4361 = vrcp.f32 %v2004_v28 }
 0x72a   : > { %v2002_v47 = vpop.xlane.xlu0 %2001 }
 0x72b   : > { %4363 = vrcp.f32 %v2002_v47 }
 0x72c   : > { %v2008_v15 = vpop.xlane.xlu1 %2007  ;;  %v4350_v4 = vpop.eup %4349 }
 0x72d   : > { %4365 = vrcp.f32 %v2008_v15  ;;  %v2175_v38 = vmul.f32 %v4350_v4, %v6154_v44  ;;  %v6808_v44 = vld [vmem:[#allocation55_spill] sm:$0xff]  ;;  %v6817_v15 = vld [vmem:[#allocation60_spill] sm:$0xff] }
 0x72e   : > { %v4352_v12 = vpop.eup %4351  ;;  %v2006_v35 = vpop.xlane.xlu0 %2005 }
 0x72f   : > { %v4354_v14 = vpop.eup %4353  ;;  %4367 = vrcp.f32 %v2006_v35  ;;  %v2177_v58 = vmul.f32 %v4352_v12, %v6805_v13  ;;  %v6818_v12 = vld [vmem:[#allocation62_spill] sm:$0xff] }
 0x730   : > { %v4356_v50 = vpop.eup %4355  ;;  %v2012_v59 = vpop.xlane.xlu1 %2011  ;;  %v2174_v33 = vmul.f32 %v4354_v14, %v6806_v39  ;;  %v6819_v13 = vld [vmem:[#allocation34_spill] sm:$0xff] }
 0x731   : > { %4369 = vrcp.f32 %v2012_v59  ;;  %v2176_v52 = vmul.f32 %v4356_v50, %v6148_v53 }
 0x732   : > { %v4358_v24 = vpop.eup %4357  ;;  %v2010_v17 = vpop.xlane.xlu0 %2009  ;;  %v2190_v51 = vpack.c.bf16 %v2175_v38, %v2174_v33 }
 0x733   : > { %4371 = vrcp.f32 %v2010_v17  ;;  %v2191_v10 = vpack.c.bf16 %v2177_v58, %v2176_v52  ;;  %v2179_v16 = vmul.f32 %v4358_v24, %v6808_v44  ;;  %v6820_v24 = vld [vmem:[#allocation33_spill] sm:$0xff] }
 0x734   : > { %v4360_v1 = vpop.eup %4359  ;;  %v2016_v25 = vpop.xlane.xlu1 %2015 }
 0x735   : > { %4373 = vrcp.f32 %v2016_v25  ;;  %3124 = vrot.lane.b32.xlu1 %v2191_v10, %s4703_s21  ;;  %v2178_v21 = vmul.f32 %v4360_v1, %v6807_v57 }
 0x736   : > { %v4362_v26 = vpop.eup %4361  ;;  %3122 = vrot.lane.b32.xlu0 %v2190_v51, %s4703_s21  ;;  %v2014_v53 = vpop.xlane.xlu0 %2013  ;;  %v6821_v51 = vld [vmem:[#allocation27_spill] sm:$0xff] }
 0x737   : > { %4375 = vrcp.f32 %v2014_v53  ;;  %v2192_v2 = vpack.c.bf16 %v2179_v16, %v2178_v21  ;;  %v2181_v46 = vmul.f32 %v4362_v26, %v6810_v45  ;;  %v6822_v21 = vld [vmem:[#allocation28_spill] sm:$0xff] }
 0x738   : > { %v4364_v31 = vpop.eup %4363  ;;  %v2020_v5 = vpop.xlane.xlu1 %2019 }
 0x739   : > { %4377 = vrcp.f32 %v2020_v5  ;;  %3126 = vrot.lane.b32.xlu1 %v2192_v2, %s4703_s21  ;;  %v2180_v32 = vmul.f32 %v4364_v31, %v6809_v0  ;;  %v6823_v5 = vld [vmem:[#allocation36_spill] sm:$0xff] }
 0x73a   : > { %v4366_v6 = vpop.eup %4365  ;;  %v2018_v42 = vpop.xlane.xlu0 %2017 }
 0x73b   : > { %4379 = vrcp.f32 %v2018_v42  ;;  %v2193_v19 = vpack.c.bf16 %v2181_v46, %v2180_v32  ;;  %v2183_v41 = vmul.f32 %v4366_v6, %v6812_v9  ;;  %v6824_v32 = vld [vmem:[#allocation32_spill] sm:$0xff] }
 0x73c   : > { %v4368_v18 = vpop.eup %4367  ;;  %v1526_v22 = vpop.xlane.xlu1 %1525 }
 0x73d   : > { %4381 = vrcp.f32 %v1526_v22  ;;  %3128 = vrot.lane.b32.xlu1 %v2193_v19, %s4703_s21  ;;  %v2182_v29 = vmul.f32 %v4368_v18, %v6811_v37  ;;  %v6825_v18 = vld [vmem:[#allocation29_spill] sm:$0xff]  ;;  %v6826_v37 = vld [vmem:[#allocation26_spill] sm:$0xff] }
 0x73e   : > { %v4370_v62 = vpop.eup %4369  ;;  %v1524_v49 = vpop.xlane.xlu0 %1523 }
 0x73f   : > { %4383 = vrcp.f32 %v1524_v49  ;;  %v2194_v23 = vpack.c.bf16 %v2183_v41, %v2182_v29  ;;  %v2185_v11 = vmul.f32 %v4370_v62, %v6814_v36  ;;  %v6827_v49 = vld [vmem:[#allocation31_spill] sm:$0xff] }
 0x740   : > { %v4372_v43 = vpop.eup %4371  ;;  %v1530_v48 = vpop.xlane.xlu1 %1529 }
 0x741   : > { %4385 = vrcp.f32 %v1530_v48  ;;  %3130 = vrot.lane.b32.xlu0 %v2194_v23, %s4703_s21  ;;  %v2184_v7 = vmul.f32 %v4372_v43, %v6813_v8  ;;  %v6828_v43 = vld [vmem:[#allocation45_spill] sm:$0xff] }
 0x742   : > { %v4374_v27 = vpop.eup %4373  ;;  %v1528_v55 = vpop.xlane.xlu0 %1527 }
 0x743   : > { %4387 = vrcp.f32 %v1528_v55  ;;  %v2195_v60 = vpack.c.bf16 %v2185_v11, %v2184_v7  ;;  %v2187_v61 = vmul.f32 %v4374_v27, %v6816_v56  ;;  %v6829_v11 = vld [vmem:[#allocation35_spill] sm:$0xff]  ;;  %v6830_v55 = vld [vmem:[#allocation30_spill] sm:$0xff] }
 0x744   : > { %v4376_v34 = vpop.eup %4375  ;;  %v1534_v20 = vpop.xlane.xlu1 %1533 }
 0x745   : > { %4389 = vrcp.f32 %v1534_v20  ;;  %3132 = vrot.lane.b32.xlu1 %v2195_v60, %s4703_s21  ;;  %v2186_v40 = vmul.f32 %v4376_v34, %v6815_v30 }
 0x746   : > { %v4378_v54 = vpop.eup %4377  ;;  %v1532_v3 = vpop.xlane.xlu0 %1531 }
 0x747   : > { %4391 = vrcp.f32 %v1532_v3  ;;  %v2196_v63 = vpack.c.bf16 %v2187_v61, %v2186_v40  ;;  %v2189_v35 = vmul.f32 %v4378_v54, %v6818_v12  ;;  %v6831_v40 = vld [vmem:[#allocation47_spill] sm:$0xff]  ;;  %v6832_v61 = vld [vmem:[#allocation49_spill] sm:$0xff] }
 0x748   : > { %v4380_v28 = vpop.eup %4379  ;;  %v1538_v47 = vpop.xlane.xlu1 %1537 }
 0x749   : > { %4393 = vrcp.f32 %v1538_v47  ;;  %3134 = vrot.lane.b32.xlu0 %v2196_v63, %s4703_s21  ;;  %v2188_v4 = vmul.f32 %v4380_v28, %v6817_v15 }
 0x74a   : > { %v4382_v14 = vpop.eup %4381  ;;  %v1536_v50 = vpop.xlane.xlu0 %1535 }
 0x74b   : > { %4395 = vrcp.f32 %v1536_v50  ;;  %v2197_v59 = vpack.c.bf16 %v2189_v35, %v2188_v4  ;;  %v6392_v17 = vmul.f32 %v4382_v14, %v6820_v24 }
 0x74c   : > { %v4384_v38 = vpop.eup %4383  ;;  %v1542_v52 = vpop.xlane.xlu1 %1541 }
 0x74d   : > { %4397 = vrcp.f32 %v1542_v52  ;;  %3136 = vrot.lane.b32.xlu1 %v2197_v59, %s4703_s21  ;;  %v6389_v58 = vmul.f32 %v4384_v38, %v6819_v13 }
 0x74e   : > { %v4386_v39 = vpop.eup %4385  ;;  %v1540_v33 = vpop.xlane.xlu0 %1539 }
 0x74f   : > { %4399 = vrcp.f32 %v1540_v33  ;;  %v1692_v10 = vpack.c.bf16 %v6392_v17, %v6389_v58  ;;  %v6397_v57 = vmul.f32 %v4386_v39, %v6821_v51  ;;  %v6838_v58 = vld [vmem:[#allocation68_spill] sm:$0xff] }
 0x750   : > { %v4388_v1 = vpop.eup %4387  ;;  %v1546_v25 = vpop.xlane.xlu1 %1545 }
 0x751   : > { %4401 = vrcp.f32 %v1546_v25  ;;  %v6400_v44 = vmul.f32 %v4388_v1, %v6822_v21 }
 0x752   : > { %v4390_v16 = vpop.eup %4389  ;;  %v1544_v26 = vpop.xlane.xlu0 %1543 }
 0x753   : > { %4403 = vrcp.f32 %v1544_v26  ;;  %v1693_v53 = vpack.c.bf16 %v6397_v57, %v6400_v44  ;;  %v6405_v0 = vmul.f32 %v4390_v16, %v6823_v5 }
 0x754   : > { %v4392_v2 = vpop.eup %4391  ;;  %v1550_v31 = vpop.xlane.xlu1 %1549 }
 0x755   : > { %4405 = vrcp.f32 %v1550_v31  ;;  %v6408_v45 = vmul.f32 %v4392_v2, %v6824_v32 }
 0x756   : > { %v4394_v46 = vpop.eup %4393  ;;  %v1548_v6 = vpop.xlane.xlu0 %1547 }
 0x757   : > { %4407 = vrcp.f32 %v1548_v6  ;;  %v1694_v42 = vpack.c.bf16 %v6405_v0, %v6408_v45  ;;  %v6413_v22 = vmul.f32 %v4394_v46, %v6825_v18 }
 0x758   : > { %v4396_v19 = vpop.eup %4395 }
 0x759   : > { %v6416_v29 = vmul.f32 %v4396_v19, %v6826_v37 }
 0x75a   : > { %v4398_v9 = vpop.eup %4397 }
 0x75b   : > { %v1695_v41 = vpack.c.bf16 %v6413_v22, %v6416_v29  ;;  %v6424_v48 = vmul.f32 %v4398_v9, %v6828_v43  ;;  %v6841_v22 = vld [vmem:[#allocation74_spill] sm:$0xff] }
 0x75c   : > { %v4400_v62 = vpop.eup %4399 }
 0x75d   : > { %v6421_v23 = vmul.f32 %v4400_v62, %v6827_v49 }
 0x75e   : > { %v4402_v8 = vpop.eup %4401 }
 0x75f   : > { %v1696_v7 = vpack.c.bf16 %v6424_v48, %v6421_v23  ;;  %v6429_v27 = vmul.f32 %v4402_v8, %v6829_v11 }
 0x760   : > { %v4404_v36 = vpop.eup %4403 }
 0x761   : > { %v6432_v60 = vmul.f32 %v4404_v36, %v6830_v55 }
 0x762   : > { %v4406_v34 = vpop.eup %4405 }
 0x763   : > { %v1697_v20 = vpack.c.bf16 %v6429_v27, %v6432_v60  ;;  %v6440_v54 = vmul.f32 %v4406_v34, %v6832_v61  ;;  %v6846_v60 = vld [vmem:[#allocation46_spill] sm:$0xff] }
 0x764   : > { %v4408_v30 = vpop.eup %4407 }
 0x765   : > { %v6437_v56 = vmul.f32 %v4408_v30, %v6831_v40  ;;  %v2910_v12 = vpop.xlane.xlu0 %2909 }
 0x766   : > { %4409 = vrcp.f32 %v2910_v12 }
 0x767   : > { %v1698_v3 = vpack.c.bf16 %v6440_v54, %v6437_v56 }
 0x769   : > { %v2906_v14 = vpop.xlane.xlu0 %2905 }
 0x76d   : > { %v2912_v63 = vpop.xlane.xlu1 %2911 }
 0x76e   : > { %4411 = vrcp.f32 %v2912_v63 }
 0x76f   : > { %4413 = vrcp.f32 %v2906_v14 }
 0x771   : > { %v2908_v28 = vpop.xlane.xlu1 %2907  ;;  %v2918_v50 = vpop.xlane.xlu0 %2917 }
 0x772   : > { %4415 = vrcp.f32 %v2908_v28 }
 0x773   : > { %4417 = vrcp.f32 %v2918_v50  ;;  %v4410_v51 = vpop.eup %4409 }
 0x775   : > { %v2920_v47 = vpop.xlane.xlu1 %2919  ;;  %v2914_v38 = vpop.xlane.xlu0 %2913 }
 0x776   : > { %4419 = vrcp.f32 %v2920_v47 }
 0x777   : > { %4421 = vrcp.f32 %v2914_v38 }
 0x779   : > { %v2916_v15 = vpop.xlane.xlu1 %2915  ;;  %v2926_v13 = vpop.xlane.xlu0 %2925 }
 0x77a   : > { %4423 = vrcp.f32 %v2916_v15 }
 0x77b   : > { %v4412_v21 = vpop.eup %4411  ;;  %4425 = vrcp.f32 %v2926_v13 }
 0x77c   : > { %v4414_v26 = vpop.eup %4413 }
 0x77d   : > { %v2928_v4 = vpop.xlane.xlu1 %2927  ;;  %v2922_v33 = vpop.xlane.xlu0 %2921 }
 0x77e   : > { %4427 = vrcp.f32 %v2928_v4 }
 0x77f   : > { %v4416_v5 = vpop.eup %4415  ;;  %4429 = vrcp.f32 %v2922_v33 }
 0x780   : > { %v4418_v43 = vpop.eup %4417 }
 0x781   : > { %v2924_v35 = vpop.xlane.xlu1 %2923  ;;  %v2934_v46 = vpop.xlane.xlu0 %2933 }
 0x782   : > { %4431 = vrcp.f32 %v2924_v35 }
 0x783   : > { %v4420_v8 = vpop.eup %4419  ;;  %4433 = vrcp.f32 %v2934_v46 }
 0x784   : > { %v4422_v11 = vpop.eup %4421 }
 0x785   : > { %v6444_v59 = vpop.xlane.xlu1 %1553  ;;  %v2930_v55 = vpop.xlane.xlu0 %2929 }
 0x787   : > { %v4424_v40 = vpop.eup %4423 }
 0x788   : > { %v4426_v14 = vpop.eup %4425 }
 0x789   : > { %v6446_v52 = vpop.xlane.xlu1 %2441 }
 0x78b   : > { %v4428_v50 = vpop.eup %4427 }
 0x78c   : > { %v4430_v13 = vpop.eup %4429 }
 0x78d   : > { %v6448_v24 = vpop.xlane.xlu1 %2445 }
 0x791   : > { %v6450_v1 = vpop.xlane.xlu1 %2449 }
 0x795   : > { %v2936_v37 = vpop.xlane.xlu1 %2935 }
 0x796   : > { %4435 = vrcp.f32 %v2936_v37 }
 0x797   : > { %4437 = vrcp.f32 %v2930_v55 }
 0x799   : > { %v2932_v61 = vpop.xlane.xlu1 %2931 }
 0x79a   : > { %4439 = vrcp.f32 %v2932_v61 }
 0x7b6   : > { %v3960_v39 = vpop.f32.mrf.mxu0 }
 0x7b7   : > { %v3092_v2 = vmul.f32 %v4410_v51, %v3960_v39 }
 0x7b8   : > { %v3011_v25 = vpop.f32.mrf.mxu0 }
 0x7b9   : > { %v3090_v6 = vmul.f32 %v4414_v26, %v3011_v25  ;;  %v4432_v25 = vpop.eup %4431 }
 0x7ba   : > { %v3961_v16 = vpop.f32.mrf.mxu0 }
 0x7bb   : > { %v3093_v31 = vmul.f32 %v4412_v21, %v3961_v16 }
 0x7bc   : > { %v3014_v32 = vpop.f32.mrf.mxu0 }
 0x7bd   : > { %v3107_v19 = vpack.c.bf16 %v3093_v31, %v3092_v2  ;;  %v3091_v18 = vmul.f32 %v4416_v5, %v3014_v32  ;;  %v4434_v32 = vpop.eup %4433 }
 0x7be   : > { %v3964_v9 = vpop.f32.mrf.mxu0  ;;  %v4436_v46 = vpop.eup %4435 }
 0x7bf   : > { %v3106_v62 = vpack.c.bf16 %v3091_v18, %v3090_v6  ;;  %3148 = vrot.lane.b32.xlu1 %v3107_v19, %s4703_s21  ;;  %v3096_v34 = vmul.f32 %v4418_v43, %v3964_v9  ;;  %v4438_v19 = vpop.eup %4437 }
 0x7c0   : > { %v3027_v49 = vpop.f32.mrf.mxu0  ;;  %v4440_v9 = vpop.eup %4439 }
 0x7c1   : > { %3146 = vrot.lane.b32.xlu0 %v3106_v62, %s4703_s21  ;;  %v3094_v28 = vmul.f32 %v4422_v11, %v3027_v49  ;;  %v1552_v11 = vpop.xlane.xlu0 %1551 }
 0x7c2   : > { %v3965_v36 = vpop.f32.mrf.mxu0 }
 0x7c3   : > { %v3097_v30 = vmul.f32 %v4420_v8, %v3965_v36 }
 0x7c4   : > { %v3030_v63 = vpop.f32.mrf.mxu0 }
 0x7c5   : > { %v3109_v47 = vpack.c.bf16 %v3097_v30, %v3096_v34  ;;  %v3095_v15 = vmul.f32 %v4424_v40, %v3030_v63  ;;  %v2440_v55 = vpop.xlane.xlu0 %2439  ;;  %v2454_v34 = vpop.xlane.xlu1 %2453 }
 0x7c6   : > { %v3968_v4 = vpop.f32.mrf.mxu0 }
 0x7c7   : > { %v3108_v12 = vpack.c.bf16 %v3095_v15, %v3094_v28  ;;  %3152 = vrot.lane.b32.xlu1 %v3109_v47, %s4703_s21  ;;  %v3100_v39 = vmul.f32 %v4426_v14, %v3968_v4 }
 0x7c8   : > { %v3043_v35 = vpop.f32.mrf.mxu0 }
 0x7c9   : > { %3150 = vrot.lane.b32.xlu0 %v3108_v12, %s4703_s21  ;;  %v3098_v21 = vmul.f32 %v4430_v13, %v3043_v35  ;;  %v2444_v30 = vpop.xlane.xlu0 %2443  ;;  %v2458_v40 = vpop.xlane.xlu1 %2457 }
 0x7ca   : > { %v3969_v38 = vpop.f32.mrf.mxu0  ;;  %4441 = vrcp.f32 %v2444_v30 }
 0x7cb   : > { %v3101_v33 = vmul.f32 %v4428_v50, %v3969_v38  ;;  %4443 = vrcp.f32 %v6448_v24  ;;  %v6833_v24 = vld [vmem:[#allocation64_spill] sm:$0xff] }
 0x7cc   : > { %v3046_v51 = vpop.f32.mrf.mxu0  ;;  %4445 = vrcp.f32 %v2440_v55 }
 0x7cd   : > { %v3111_v16 = vpack.c.bf16 %v3101_v33, %v3100_v39  ;;  %v3099_v26 = vmul.f32 %v4432_v25, %v3046_v51  ;;  %v2448_v61 = vpop.xlane.xlu0 %2447  ;;  %v2462_v63 = vpop.xlane.xlu1 %2461  ;;  %4447 = vrcp.f32 %v6446_v52 }
 0x7ce   : > { %v3972_v2 = vpop.f32.mrf.mxu0  ;;  %4449 = vrcp.f32 %v2454_v34 }
 0x7cf   : > { %v3110_v31 = vpack.c.bf16 %v3099_v26, %v3098_v21  ;;  %3156 = vrot.lane.b32.xlu1 %v3111_v16, %s4703_s21  ;;  %v3104_v18 = vmul.f32 %v4434_v32, %v3972_v2  ;;  %4451 = vrcp.f32 %v2448_v61  ;;  %v6835_v32 = vld [vmem:[#allocation65_spill] sm:$0xff]  ;;  %v6837_v61 = vld [vmem:[#allocation70_spill] sm:$0xff] }
 0x7d0   : > { %v3059_v5 = vpop.f32.mrf.mxu0 }
 0x7d1   : > { %3154 = vrot.lane.b32.xlu0 %v3110_v31, %s4703_s21  ;;  %v3102_v49 = vmul.f32 %v4438_v19, %v3059_v5  ;;  %v2452_v28 = vpop.xlane.xlu0 %2451  ;;  %v2466_v47 = vpop.xlane.xlu1 %2465  ;;  %v6834_v31 = vld [vmem:[#allocation66_spill] sm:$0xff]  ;;  %v6836_v19 = vld [vmem:[#allocation67_spill] sm:$0xff] }
 0x7d2   : > { %v3973_v6 = vpop.f32.mrf.mxu0  ;;  %4453 = vrcp.f32 %v2452_v28 }
 0x7d3   : > { %v3105_v37 = vmul.f32 %v4436_v46, %v3973_v6  ;;  %4455 = vrcp.f32 %v6450_v1 }
 0x7d4   : > { %v3062_v62 = vpop.f32.mrf.mxu0  ;;  %4457 = vrcp.f32 %v2462_v63 }
 0x7d5   : > { %v3113_v43 = vpack.c.bf16 %v3105_v37, %v3104_v18  ;;  %v3103_v8 = vmul.f32 %v4440_v9, %v3062_v62  ;;  %v2456_v15 = vpop.xlane.xlu0 %2455  ;;  %v2470_v4 = vpop.xlane.xlu1 %2469  ;;  %4459 = vrcp.f32 %v2458_v40 }
 0x7d7   : > { %v3112_v36 = vpack.c.bf16 %v3103_v8, %v3102_v49  ;;  %3160 = vrot.lane.b32.xlu1 %v3113_v43, %s4703_s21  ;;  %v4442_v25 = vpop.eup %4441 }
 0x7d8   : > { %v4444_v51 = vpop.eup %4443  ;;  %v2594_v52 = vmul.f32 %v4442_v25, %v6833_v24 }
 0x7d9   : > { %3158 = vrot.lane.b32.xlu0 %v3112_v36, %s4703_s21  ;;  %v2460_v12 = vpop.xlane.xlu0 %2459  ;;  %v3125_v35 = vpop.permute.xlu1 %3124  ;;  %v2595_v5 = vmul.f32 %v4444_v51, %v6834_v31 }
 0x7da   : > { %v4446_v21 = vpop.eup %4445  ;;  %4461 = vrcp.f32 %v2460_v12  ;;  %v3167_v49 = vsel %vm462_vm0, %v1693_v53, %v3125_v35 }
 0x7db   : > { %v4448_v26 = vpop.eup %4447  ;;  %v2592_v46 = vmul.f32 %v4446_v21, %v6835_v32  ;;  %4463 = vrcp.f32 %v2456_v15  ;;  %v2609_v1 = vpack.c.bf16 %v2595_v5, %v2594_v52  ;;  %v6842_v5 = vld [vmem:[#allocation72_spill] sm:$0xff] }
 0x7dc   : > { %v2593_v18 = vmul.f32 %v4448_v26, %v6836_v19  ;;  %v4450_v37 = vpop.eup %4449  ;;  %4465 = vrcp.f32 %v6444_v59 }
 0x7dd   : > { %v2464_v14 = vpop.xlane.xlu0 %2463  ;;  %v6460_v50 = vpop.permute.xlu1 %3126  ;;  %4467 = vrcp.f32 %v1552_v11  ;;  %v2599_v57 = vmul.f32 %v4450_v37, %v6837_v61 }
 0x7de   : > { %v4452_v62 = vpop.eup %4451  ;;  %v2608_v8 = vpack.c.bf16 %v2593_v18, %v2592_v46  ;;  %4469 = vrcp.f32 %v2470_v4  ;;  %v3170_v52 = vsel %vm462_vm0, %v1694_v42, %v6460_v50  ;;  %v6843_v46 = vld [vmem:[#allocation75_spill] sm:$0xff]  ;;  %v6845_v42 = vld [vmem:[#allocation73_spill] sm:$0xff] }
 0x7df   : > { %v4454_v36 = vpop.eup %4453  ;;  %4471 = vrcp.f32 %v2466_v47  ;;  %v6840_v47 = vld [vmem:[#allocation71_spill] sm:$0xff] }
 0x7e0   : > { %v4456_v44 = vpop.eup %4455  ;;  %v2598_v17 = vmul.f32 %v4454_v36, %v6838_v58 }
 0x7e1   : > { %v2468_v38 = vpop.xlane.xlu0 %2467  ;;  %v3129_v13 = vpop.permute.xlu1 %3128  ;;  %v2597_v15 = vmul.f32 %v4456_v44, %v6840_v47  ;;  %v6848_v44 = vld [vmem:[#allocation48_spill] sm:$0xff] }
 0x7e2   : > { %4473 = vrcp.f32 %v2468_v38  ;;  %v2611_v28 = vpack.c.bf16 %v2599_v57, %v2598_v17  ;;  %v4458_v4 = vpop.eup %4457  ;;  %v3173_v38 = vsel %vm462_vm0, %v1695_v41, %v3129_v13  ;;  %v6850_v17 = vld [vmem:[#allocation79_spill] sm:$0xff] }
 0x7e3   : > { %4475 = vrcp.f32 %v2464_v14  ;;  %v4460_v35 = vpop.eup %4459  ;;  %v2603_v29 = vmul.f32 %v4458_v4, %v6841_v22 }
 0x7e5   : > { %v3123_v39 = vpop.permute.xlu0 %3122  ;;  %v6464_v33 = vpop.permute.xlu1 %3132 }
 0x7e6   : > { %v3164_v40 = vsel %vm462_vm0, %v1692_v10, %v3123_v39  ;;  %v6839_v10 = vld [vmem:[#allocation69_spill] sm:$0xff] }
 0x7e7   : > { %v2596_v63 = vmul.f32 %v4452_v62, %v6839_v10  ;;  %v4462_v51 = vpop.eup %4461  ;;  %v3179_v62 = vsel %vm462_vm0, %v1697_v20, %v6464_v33  ;;  %v6847_v33 = vld [vmem:[#allocation78_spill] sm:$0xff] }
 0x7e8   : > { %v4464_v41 = vpop.eup %4463  ;;  %v2602_v32 = vmul.f32 %v4462_v51, %v6842_v5 }
 0x7e9   : > { %v6467_v16 = vpop.permute.xlu0 %3130  ;;  %v6471_v2 = vpop.permute.xlu1 %3136  ;;  %v2610_v25 = vpack.c.bf16 %v2597_v15, %v2596_v63  ;;  %v2600_v50 = vmul.f32 %v4464_v41, %v6845_v42 }
 0x7ea   : > { %v4466_v19 = vpop.eup %4465  ;;  %v2613_v45 = vpack.c.bf16 %v2603_v29, %v2602_v32  ;;  %v3176_v27 = vsel %vm462_vm0, %v1696_v7, %v6467_v16  ;;  %v6851_v16 = vld [vmem:[#allocation77_spill] sm:$0xff] }
 0x7eb   : > { %v4468_v0 = vpop.eup %4467 }
 0x7ec   : > { %v4470_v18 = vpop.eup %4469 }
 0x7ed   : > { %v6475_v6 = vpop.permute.xlu0 %3134 }
 0x831   : > { %v3149_v9 = vpop.permute.xlu1 %3148 }
 0x832   : > { %v3191_v43 = vsel %vm462_vm0, %v2609_v1, %v3149_v9  ;;  %v2601_v1 = vmul.f32 %v4460_v35, %v6843_v46  ;;  %v4472_v9 = vpop.eup %4471 }
 0x833   : > { %v3567_v55 = vcombine.low %v3167_v49, %v3191_v43  ;;  %v3568_v34 = vcombine.high %v3167_v49, %v3191_v43  ;;  %v3147_v30 = vpop.permute.xlu0 %3146  ;;  %v2605_v23 = vmul.f32 %v4472_v9, %v6850_v17 }
 0x834   : > { %v3188_v59 = vsel %vm462_vm0, %v2608_v8, %v3147_v30  ;;  %v2612_v43 = vpack.c.bf16 %v2601_v1, %v2600_v50  ;;  %v4474_v8 = vpop.eup %4473  ;;  %v1690_v30 = vmul.f32 %v4468_v0, %v6846_v60 }
 0x835   : > { %3292 = vst [vmem:[%s6492_s16 + $0x10] sm:$0xff] %v3567_v55  ;;  %3293 = vst [vmem:[%s6492_s16 + $0x18] sm:$0xff] %v3568_v34  ;;  %v3565_v53 = vcombine.low %v3164_v40, %v3188_v59  ;;  %v3566_v11 = vcombine.high %v3164_v40, %v3188_v59  ;;  %v2607_v40 = vmul.f32 %v4470_v18, %v6847_v33  ;;  %v4476_v59 = vpop.eup %4475 }
 0x836   : > { %v2604_v10 = vmul.f32 %v4476_v59, %v6851_v16 }
 0x837   : > { %3290 = vst [vmem:[%s6492_s16] sm:$0xff] %v3565_v53  ;;  %3291 = vst [vmem:[%s6492_s16 + $0x8] sm:$0xff] %v3566_v11  ;;  %v1691_v53 = vmul.f32 %v4466_v19, %v6848_v44  ;;  %v6849_v11 = vld [vmem:[#allocation76_spill] sm:$0xff] }
 0x838   : > { %v2606_v58 = vmul.f32 %v4474_v8, %v6849_v11  ;;  %v2614_v15 = vpack.c.bf16 %v2605_v23, %v2604_v10 }
 0x839   : > { %v3153_v12 = vpop.permute.xlu1 %3152  ;;  %v1699_v48 = vpack.c.bf16 %v1691_v53, %v1690_v30 }
 0x83a   : > { %v3197_v39 = vsel %vm462_vm0, %v2611_v28, %v3153_v12  ;;  %v2615_v7 = vpack.c.bf16 %v2607_v40, %v2606_v58 }
 0x83b   : > { %v3571_v14 = vcombine.low %v3173_v38, %v3197_v39  ;;  %v3572_v21 = vcombine.high %v3173_v38, %v3197_v39  ;;  %v3151_v24 = vpop.permute.xlu0 %3150  ;;  %v3185_v28 = vsel %vm462_vm0, %v1699_v48, %v6471_v2  ;;  %v3182_v38 = vsel %vm462_vm0, %v1698_v3, %v6475_v6 }
 0x83c   : > { %v3194_v26 = vsel %vm462_vm0, %v2610_v25, %v3151_v24 }
 0x83d   : > { %3296 = vst [vmem:[%s6492_s16 + $0x30] sm:$0xff] %v3571_v14  ;;  %3297 = vst [vmem:[%s6492_s16 + $0x38] sm:$0xff] %v3572_v21  ;;  %v3569_v13 = vcombine.low %v3170_v52, %v3194_v26  ;;  %v3570_v31 = vcombine.high %v3170_v52, %v3194_v26 }
 0x83f   : > { %3294 = vst [vmem:[%s6492_s16 + $0x20] sm:$0xff] %v3569_v13  ;;  %3295 = vst [vmem:[%s6492_s16 + $0x28] sm:$0xff] %v3570_v31 }
 0x841   : > { %v3157_v37 = vpop.permute.xlu1 %3156 }
 0x842   : > { %v3203_v49 = vsel %vm462_vm0, %v2613_v45, %v3157_v37 }
 0x843   : > { %v3575_v36 = vcombine.low %v3179_v62, %v3203_v49  ;;  %v3576_v55 = vcombine.high %v3179_v62, %v3203_v49  ;;  %v3155_v34 = vpop.permute.xlu0 %3154 }
 0x844   : > { %v3200_v20 = vsel %vm462_vm0, %v2612_v43, %v3155_v34 }
 0x845   : > { %3300 = vst [vmem:[%s6492_s16 + $0x50] sm:$0xff] %v3575_v36  ;;  %3301 = vst [vmem:[%s6492_s16 + $0x58] sm:$0xff] %v3576_v55  ;;  %v3573_v61 = vcombine.low %v3176_v27, %v3200_v20  ;;  %v3574_v57 = vcombine.high %v3176_v27, %v3200_v20 }
 0x847   : > { %3298 = vst [vmem:[%s6492_s16 + $0x40] sm:$0xff] %v3573_v61  ;;  %3299 = vst [vmem:[%s6492_s16 + $0x48] sm:$0xff] %v3574_v57 }
 0x849   : > { %v3161_v63 = vpop.permute.xlu1 %3160 }
 0x84a   : > { %v3209_v47 = vsel %vm462_vm0, %v2615_v7, %v3161_v63 }
 0x84b   : > { %v3579_v4 = vcombine.low %v3185_v28, %v3209_v47  ;;  %v3580_v12 = vcombine.high %v3185_v28, %v3209_v47  ;;  %v3159_v35 = vpop.permute.xlu0 %3158 }
 0x84c   : > { %v3206_v2 = vsel %vm462_vm0, %v2614_v15, %v3159_v35 }
 0x84d   : > { %3304 = vst [vmem:[%s6492_s16 + $0x70] sm:$0xff] %v3579_v4  ;;  %3305 = vst [vmem:[%s6492_s16 + $0x78] sm:$0xff] %v3580_v12  ;;  %v3577_v39 = vcombine.low %v3182_v38, %v3206_v2  ;;  %v3578_v25 = vcombine.high %v3182_v38, %v3206_v2 }
 0x84f   : > { %3302 = vst [vmem:[%s6492_s16 + $0x60] sm:$0xff] %v3577_v39  ;;  %3303 = vst [vmem:[%s6492_s16 + $0x68] sm:$0xff] %v3578_v25 }
 0x850   : > { %4544 = shalt.err (!%p4541_p6)
}
 0x851   : > { %s4545_s20 = scalar_lea.hbm %s6559_s6, 2048  ;;  %s4549_s7 = scalar_lea.hbm %s6852_s2, 8192 }
 0x852   : > { %p4546_p7 = scmp.ne.s32.totalorder %s6559_s6, %s4545_s20  ;;  %p4550_p9 = scmp.lt.s32.totalorder %s6559_s6, %s6852_s2 }
 0x853   : > { %p4551_p1 = scmp.lt.s32.totalorder %s4549_s7, %s4545_s20 }
 0x854   : > { %p4547_p8 = pnand %p4546_p7, %p4909_p12 }
 0x855   : > { %p4552_p11 = por %p4551_p1, %p4550_p9 }
 0x856   : > { %p4548_p2 = pneg %p4547_p8 }
 0x858   : > { %p4553_p4 = pnand %p4552_p11, %p4548_p2 }
 0x85a   : > { %4556 = shalt.err (!%p4553_p4)
}
 0x85b   : > { %s4705_s13 = smov 128   ;;  %s4706_s16 = smov 256  }
 0x85c   : > { %s4707_s15 = smov 8  }
 0x85d   : > { %4010 = dma.vmem_to_hbm [thread:$0]  (%p4909_p12), %s6548_s18, 2048, %s6559_s6, %s6567_s27, %s4705_s13, %s4706_s16, %s4707_s15  }
 0x85e PF: > { %s6853_s0 = sld [smem:[#allocation12_spill]]  ;;  %p4016_p3 = scmp.ge.s32.totalorder %s4695_s12, 2 }
 0x860   : > { %p4013_p0 = pnand %p4016_p3, %p4915_p13 }
 0x862   : > { %p4014_p10 = pneg %p4013_p0 }
 0x864   : > { %s3338_s23 = sand.u32 1, %s6853_s0  }
 0x865   : > { %s3339_s11 = scalar_lea.sflag [#allocation5], %s3338_s23 }
 0x866   : > { %4630 = dma.done.wait (%p4014_p10), %s3339_s11, 2048  }
 0x867   : > { %4632 = vsyncadd (%p4014_p10), %s3339_s11, 4294965248  ;;  %s25_s12 = sadd.s32 1, %s4695_s12   ;;  %s6856_s8 = sld [smem:[#allocation13_spill]] }
 0x868   : > { %p6595_p5 = scmp.ge.s32.totalorder %s25_s12, 6   ;;  %s6857_s23 = sld [smem:[#allocation24_spill]] }
 0x869   : > { %s6858_s18 = sld [smem:[#allocation23_spill]]  ;;  %s6866_s21 = smov %s4639_s22 }
 0x86a   : > { %s6859_s19 = sld [smem:[#allocation14_spill]]  ;;  %s6869_s24 = smov %s4651_s25 }
 0x86b   : > { %s6860_s29 = sld [smem:[#allocation22_spill]]  ;;  %s6870_s25 = smov %s4655_s26 }
 0x86c   : > { %s6861_s6 = sld [smem:[#allocation15_spill]]  ;;  %s6872_s27 = smov %s4663_s28 }
 0x86d   : > { %s6862_s7 = sld [smem:[#allocation21_spill]]  ;;  %s6868_s22 = smov %s6856_s8 }
 0x86e   : > { %s6863_s9 = sld [smem:[#allocation18_spill]]  ;;  %s6875_s8 = smov %s4687_s10 }
 0x86f   : > { %s6864_s17 = sld [smem:[#allocation19_spill]]  ;;  %s6871_s26 = smov %s6858_s18 }
 0x870   : > { %s6865_s11 = sld [smem:[#allocation20_spill]]  ;;  %s6873_s28 = smov %s6859_s19 }
 0x871   :  { %24 = sbr.rel (!%p6595_p5) target bundleno = 20 (0x14), region = 151 }
 0x872   : > { %s6874_s30 = smov %s6861_s6 }
 0x875   : > { %s6876_s10 = smov %s6864_s17 }
 0x876   :  { %3344 = vsyncpa [#allocation4], 1 }
 0x877   :  { %3346 = vsyncpa [#allocation4 + $0x1], 1 }
 0x878   :  { %3347 = vsyncpa [#allocation7], 1 }
 0x879   :  { %3349 = vsyncpa [#allocation7 + $0x1], 1 }
 0x87a   :  { %3350 = vsyncpa [#allocation5], 1 }
 0x87b   :  { %3352 = vsyncpa [#allocation5 + $0x1], 1 }

</bundles_post_ra>
